<compile_context>
chip_gen: v7x
topology: tpu7x:2x2x1
jax: 0.10.0
libtpu: 0.0.40
codegen_flags: <defaults>
</compile_context>

<pallas_src>
import functools

import jax
import jax.numpy as jnp
from jax.experimental import pallas as pl
from jax.experimental.pallas import tpu as pltpu


# ----------------------------------------------------------------------------
# Recurrence kernel: one grid step == TB timesteps, layer-by-layer inside the block
# ----------------------------------------------------------------------------
def _lstm_model_kernel(
    # inputs
    x_ref,                        # (TB, BB, V)  input block (compute dtype)
    wih1_ref, whh1_ref, b1_ref,   # (V, 4H), (H, 4H), (1, 4H)
    wih2_ref, whh2_ref, b2_ref,   # (H, 4H), (H, 4H), (1, 4H)
    wih3_ref, whh3_ref, b3_ref,   # (H, 4H), (H, 4H), (1, 4H)
    wlin_ref, blin_ref,           # (H, V), (1, V)
    h0_ref, c0_ref,               # (BB, 3H) packed initial states
    # outputs
    out_ref,                      # (TB, BB, V) probs
    hf_ref, cf_ref,               # (BB, 3H) packed final states
    # scratch
    h_s, c_s,                     # (BB, 3H) f32 carried state
    hslab_s,                      # (TB*BB, H) compute-dtype: current layer's outputs
    *, approx_recip,
):
    ti = pl.program_id(1)                 # time-block axis ("arbitrary", carries state)
    TB, BB, V = x_ref.shape
    H = whh1_ref.shape[0]
    cd = whh1_ref.dtype                   # MXU compute dtype (f32 or bf16)
    f32 = jnp.float32

    @pl.when(ti == 0)
    def _init():
        h_s[...] = h0_ref[...]
        c_s[...] = c0_ref[...]

    hp = h_s[...]
    cp = c_s[...]
    h1, h2, h3 = hp[:, 0:H], hp[:, H:2 * H], hp[:, 2 * H:3 * H]
    c1, c2, c3 = cp[:, 0:H], cp[:, H:2 * H], cp[:, 2 * H:3 * H]

    def cell(gates, c_prev):
        # PyTorch gate order [i, f, g, o]; all elementwise math stays in f32.
        i_g = jax.nn.sigmoid(gates[:, 0 * H:1 * H])
        f_g = jax.nn.sigmoid(gates[:, 1 * H:2 * H])
        g_g = jnp.tanh(gates[:, 2 * H:3 * H])
        o_g = jax.nn.sigmoid(gates[:, 3 * H:4 * H])
        c_new = f_g * c_prev + i_g * g_g
        h_new = o_g * jnp.tanh(c_new)
        return h_new, c_new

    # ---- layer 1: batched input projection over the whole time block (1 GEMM) ----
    x2d = x_ref[...].reshape(TB * BB, V).astype(cd)
    g1_all = jnp.dot(x2d, wih1_ref[...], preferred_element_type=f32) + b1_ref[...]
    for s in range(TB):                    # static unroll; only h@W_hh is serial
        g = g1_all[s * BB:(s + 1) * BB, :] + jnp.dot(
            h1.astype(cd), whh1_ref[...], preferred_element_type=f32)
        h1, c1 = cell(g, c1)
        hslab_s[s * BB:(s + 1) * BB, :] = h1.astype(cd)
    # TODO(synk): nn.Dropout treated as identity (eval / inference semantics).

    # ---- layer 2: batched input projection from layer-1 slab (1 GEMM) ----
    g2_all = jnp.dot(hslab_s[...], wih2_ref[...], preferred_element_type=f32) + b2_ref[...]
    for s in range(TB):
        g = g2_all[s * BB:(s + 1) * BB, :] + jnp.dot(
            h2.astype(cd), whh2_ref[...], preferred_element_type=f32)
        h2, c2 = cell(g, c2)
        hslab_s[s * BB:(s + 1) * BB, :] = h2.astype(cd)

    # ---- layer 3 ----
    g3_all = jnp.dot(hslab_s[...], wih3_ref[...], preferred_element_type=f32) + b3_ref[...]
    for s in range(TB):
        g = g3_all[s * BB:(s + 1) * BB, :] + jnp.dot(
            h3.astype(cd), whh3_ref[...], preferred_element_type=f32)
        h3, c3 = cell(g, c3)
        hslab_s[s * BB:(s + 1) * BB, :] = h3.astype(cd)

    # ---- linear: ONE block-wide GEMM, then softmax over dim=1 (the batch axis) ----
    logits = jnp.dot(hslab_s[...], wlin_ref[...], preferred_element_type=f32) + blin_ref[...]
    logits = logits.reshape(TB, BB, V)
    m = jnp.max(logits, axis=1, keepdims=True)
    e = jnp.exp(logits - m)
    den = jnp.sum(e, axis=1, keepdims=True)
    out_ref[...] = e * pl.reciprocal(den, approx=approx_recip)   # single block store

    # ---- carry state; write final states only on the last time block ----
    h_s[:, 0:H] = h1
    h_s[:, H:2 * H] = h2
    h_s[:, 2 * H:3 * H] = h3
    c_s[:, 0:H] = c1
    c_s[:, H:2 * H] = c2
    c_s[:, 2 * H:3 * H] = c3

    @pl.when(ti == pl.num_programs(1) - 1)
    def _fin():
        hf_ref[...] = h_s[...]
        cf_ref[...] = c_s[...]


# ----------------------------------------------------------------------------
# Wrapper
# ----------------------------------------------------------------------------
@functools.partial(jax.jit, static_argnames=("compute_dtype", "time_block"))
def lstm_model_forward(x, params, h1, c1, h2, c2, h3, c3,
                       compute_dtype=jnp.float32, time_block=8):
    """x: (T, B, V) f32. h*/c*: (1, B, H). Returns the PyTorch-shaped 7-tuple."""
    T, B, V = x.shape
    H = h1.shape[-1]
    cd = jnp.dtype(compute_dtype)

    (w_ih1, w_hh1, b_1, w_ih2, w_hh2, b_2,
     w_ih3, w_hh3, b_3, w_lin, b_lin) = params

    # Pick a timestep block size that divides T.
    tb = min(int(time_block), T)
    while T % tb != 0:
        tb -= 1
    n_tb = T // tb

    # Softmax(dim=1) normalizes over the full batch, so one batch tile per block.
    BB = B
    n_bt = B // BB

    # Cast inputs / weights once outside the kernel (bf16 path halves their DMA bytes).
    xc = x.astype(cd)
    wih1 = w_ih1.astype(cd)
    whh1 = w_hh1.astype(cd)
    wih2 = w_ih2.astype(cd)
    whh2 = w_hh2.astype(cd)
    wih3 = w_ih3.astype(cd)
    whh3 = w_hh3.astype(cd)
    wlin = w_lin.astype(cd)
    h0p = jnp.concatenate([h1[0], h2[0], h3[0]], axis=1)      # (B, 3H)
    c0p = jnp.concatenate([c1[0], c2[0], c3[0]], axis=1)      # (B, 3H)

    const = lambda shape: pl.BlockSpec(shape, lambda bi, ti: (0, 0))
    in_specs = [
        pl.BlockSpec((tb, BB, V), lambda bi, ti: (ti, bi, 0)),       # x block
        const((V, 4 * H)), const((H, 4 * H)), const((1, 4 * H)),     # layer 1
        const((H, 4 * H)), const((H, 4 * H)), const((1, 4 * H)),     # layer 2
        const((H, 4 * H)), const((H, 4 * H)), const((1, 4 * H)),     # layer 3
        const((H, V)), const((1, V)),                                # linear
        pl.BlockSpec((BB, 3 * H), lambda bi, ti: (bi, 0)),           # h0 packed
        pl.BlockSpec((BB, 3 * H), lambda bi, ti: (bi, 0)),           # c0 packed
    ]
    out_specs = [
        pl.BlockSpec((tb, BB, V), lambda bi, ti: (ti, bi, 0)),       # probs
        pl.BlockSpec((BB, 3 * H), lambda bi, ti: (bi, 0)),           # final h packed
        pl.BlockSpec((BB, 3 * H), lambda bi, ti: (bi, 0)),           # final c packed
    ]
    out_shape = (
        jax.ShapeDtypeStruct((T, B, V), jnp.float32),
        jax.ShapeDtypeStruct((B, 3 * H), jnp.float32),
        jax.ShapeDtypeStruct((B, 3 * H), jnp.float32),
    )
    scratch_shapes = [
        pltpu.VMEM((BB, 3 * H), jnp.float32),        # packed h state (all 3 layers)
        pltpu.VMEM((BB, 3 * H), jnp.float32),        # packed c state
        pltpu.VMEM((tb * BB, H), cd),                # per-block layer-output slab
    ]

    kernel = functools.partial(_lstm_model_kernel,
                               approx_recip=(cd == jnp.bfloat16))

    probs, hfp, cfp = pl.pallas_call(
        kernel,
        out_shape=out_shape,
        grid_spec=pltpu.PrefetchScalarGridSpec(
            num_scalar_prefetch=0,
            grid=(n_bt, n_tb),
            in_specs=in_specs,
            out_specs=out_specs,
            scratch_shapes=scratch_shapes,
        ),
        compiler_params=pltpu.CompilerParams(
            dimension_semantics=("parallel", "arbitrary"),  # batch tiles || , time serial
        ),
    )(xc, wih1, whh1, b_1, wih2, whh2, b_2, wih3, whh3, b_3, wlin, b_lin, h0p, c0p)

    # Unpack to PyTorch state shapes (1, B, H).
    h1f = hfp[:, 0:H][None]
    h2f = hfp[:, H:2 * H][None]
    h3f = hfp[:, 2 * H:3 * H][None]
    c1f = cfp[:, 0:H][None]
    c2f = cfp[:, H:2 * H][None]
    c3f = cfp[:, 2 * H:3 * H][None]
    return probs, h1f, c1f, h2f, c2f, h3f, c3f


# ----------------------------------------------------------------------------
# Deterministic parameter init (PyTorch shapes / gate order / init range)
# ----------------------------------------------------------------------------
def init_params(key, vocab_size, hidden_size):
    V, H = vocab_size, hidden_size
    bound = 1.0 / jnp.sqrt(jnp.float32(H))
    ks = jax.random.split(key, 14)

    def u(k, shape):
        return jax.random.uniform(k, shape, jnp.float32, -bound, bound)

    # PyTorch stores W_ih: (4H, in), W_hh: (4H, H); pre-transpose for x @ W.
    def lstm_layer(k4, in_dim):
        k_ih, k_hh, k_bih, k_bhh = k4
        w_ih = u(k_ih, (4 * H, in_dim))
        w_hh = u(k_hh, (4 * H, H))
        b_ih = u(k_bih, (4 * H,))
        b_hh = u(k_bhh, (4 * H,))
        return w_ih.T, w_hh.T, (b_ih + b_hh)[None, :]   # (in,4H), (H,4H), (1,4H)

    w_ih1, w_hh1, b_1 = lstm_layer(ks[0:4], V)
    w_ih2, w_hh2, b_2 = lstm_layer(ks[4:8], H)
    w_ih3, w_hh3, b_3 = lstm_layer(ks[8:12], H)

    w_lin = jax.random.uniform(ks[12], (V, H), jnp.float32, -bound, bound)
    b_lin = jax.random.uniform(ks[13], (V,), jnp.float32, -bound, bound)
    return (w_ih1, w_hh1, b_1, w_ih2, w_hh2, b_2, w_ih3, w_hh3, b_3,
            w_lin.T, b_lin[None, :])


# ----------------------------------------------------------------------------
# Pure-JAX reference (f32, unfused) for correctness checks
# ----------------------------------------------------------------------------
def reference_forward(x, params, h1, c1, h2, c2, h3, c3):
    (w_ih1, w_hh1, b_1, w_ih2, w_hh2, b_2, w_ih3, w_hh3, b_3, w_lin, b_lin) = params

    def layer(x_seq, w_ih_t, w_hh_t, b, h0, c0):
        H = h0.shape[-1]

        def step(carry, x_t):
            h, c = carry
            gates = x_t @ w_ih_t + h @ w_hh_t + b
            i = jax.nn.sigmoid(gates[:, 0 * H:1 * H])
            f = jax.nn.sigmoid(gates[:, 1 * H:2 * H])
            g = jnp.tanh(gates[:, 2 * H:3 * H])
            o = jax.nn.sigmoid(gates[:, 3 * H:4 * H])
            c = f * c + i * g
            h = o * jnp.tanh(c)
            return (h, c), h

        (hT, cT), out = jax.lax.scan(step, (h0, c0), x_seq)
        return out, hT, cT

    o1, h1f, c1f = layer(x, w_ih1, w_hh1, b_1, h1[0], c1[0])
    o2, h2f, c2f = layer(o1, w_ih2, w_hh2, b_2, h2[0], c2[0])
    o3, h3f, c3f = layer(o2, w_ih3, w_hh3, b_3, h3[0], c3[0])
    logits = o3 @ w_lin + b_lin                 # (T, B, V)
    probs = jax.nn.softmax(logits, axis=1)      # softmax over dim=1 (batch), as the module
    return probs, h1f, c1f, h2f, c2f, h3f, c3f


if __name__ == "__main__":
    T, B, V, H = 16, 2, 16, 32   # seq, batch, vocab_size, hidden_size
    key = jax.random.PRNGKey(0)
    k_x, k_p = jax.random.split(key)

    x = jax.random.normal(k_x, (T, B, V), jnp.float32)
    params = init_params(k_p, V, H)
    zeros = jnp.zeros((1, B, H), jnp.float32)

    ref = reference_forward(x, params, zeros, zeros, zeros, zeros, zeros, zeros)

    # --- f32 compute path: tight correctness check ---
    outs = lstm_model_forward(x, params, zeros, zeros, zeros, zeros, zeros, zeros,
                              compute_dtype=jnp.float32, time_block=8)
    outs = jax.tree_util.tree_map(jax.block_until_ready, outs)
    assert jnp.allclose(outs[0], ref[0], atol=1e-4, rtol=1e-4)
    for got, exp in zip(outs[1:], ref[1:]):
        assert jnp.allclose(got[0], exp, atol=1e-4, rtol=1e-4)

    # --- bf16 MXU path (weights/activations bf16, f32 accumulation/state): loose check ---
    outs_bf = lstm_model_forward(x, params, zeros, zeros, zeros, zeros, zeros, zeros,
                                 compute_dtype=jnp.bfloat16, time_block=8)
    outs_bf = jax.tree_util.tree_map(jax.block_until_ready, outs_bf)
    assert jnp.allclose(outs_bf[0], ref[0], atol=3e-2, rtol=0.0)
    for got, exp in zip(outs_bf[1:], ref[1:]):
        assert jnp.allclose(got[0], exp, atol=3e-2, rtol=0.0)

    print("KERNEL_OK")
</pallas_src>

<mosaic_0001>
module attributes {stable_mosaic.version = 11 : i64} {
  func.func @_lstm_model_kernel(%arg0: i32, %arg1: i32, %arg2: memref<8x2x16xf32, #tpu.memory_space<vmem>>, %arg3: memref<16x128xf32, #tpu.memory_space<vmem>>, %arg4: memref<32x128xf32, #tpu.memory_space<vmem>>, %arg5: memref<1x128xf32, #tpu.memory_space<vmem>>, %arg6: memref<32x128xf32, #tpu.memory_space<vmem>>, %arg7: memref<32x128xf32, #tpu.memory_space<vmem>>, %arg8: memref<1x128xf32, #tpu.memory_space<vmem>>, %arg9: memref<32x128xf32, #tpu.memory_space<vmem>>, %arg10: memref<32x128xf32, #tpu.memory_space<vmem>>, %arg11: memref<1x128xf32, #tpu.memory_space<vmem>>, %arg12: memref<32x16xf32, #tpu.memory_space<vmem>>, %arg13: memref<1x16xf32, #tpu.memory_space<vmem>>, %arg14: memref<2x96xf32, #tpu.memory_space<vmem>>, %arg15: memref<2x96xf32, #tpu.memory_space<vmem>>, %arg16: memref<8x2x16xf32, #tpu.memory_space<vmem>>, %arg17: memref<2x96xf32, #tpu.memory_space<vmem>>, %arg18: memref<2x96xf32, #tpu.memory_space<vmem>>, %arg19: memref<2x96xf32, #tpu.memory_space<vmem>>, %arg20: memref<2x96xf32, #tpu.memory_space<vmem>>, %arg21: memref<16x32xf32, #tpu.memory_space<vmem>>) attributes {dimension_semantics = [#tpu.dimension_semantics<parallel>, #tpu.dimension_semantics<arbitrary>], iteration_bounds = array<i64: 1, 2>, scalar_prefetch = 0 : i64, scratch_operands = 3 : i64, tpu.core_type = #tpu.core_type<tc>, window_params = [{transform_indices = @transform_0, window_bounds = array<i64: 8, 2, 16>}, {pipeline_mode = #tpu.pipeline_mode<synchronous>, transform_indices = @transform_1, window_bounds = array<i64: 16, 128>}, {pipeline_mode = #tpu.pipeline_mode<synchronous>, transform_indices = @transform_2, window_bounds = array<i64: 32, 128>}, {pipeline_mode = #tpu.pipeline_mode<synchronous>, transform_indices = @transform_3, window_bounds = array<i64: 1, 128>}, {pipeline_mode = #tpu.pipeline_mode<synchronous>, transform_indices = @transform_4, window_bounds = array<i64: 32, 128>}, {pipeline_mode = #tpu.pipeline_mode<synchronous>, transform_indices = @transform_5, window_bounds = array<i64: 32, 128>}, {pipeline_mode = #tpu.pipeline_mode<synchronous>, transform_indices = @transform_6, window_bounds = array<i64: 1, 128>}, {pipeline_mode = #tpu.pipeline_mode<synchronous>, transform_indices = @transform_7, window_bounds = array<i64: 32, 128>}, {pipeline_mode = #tpu.pipeline_mode<synchronous>, transform_indices = @transform_8, window_bounds = array<i64: 32, 128>}, {pipeline_mode = #tpu.pipeline_mode<synchronous>, transform_indices = @transform_9, window_bounds = array<i64: 1, 128>}, {pipeline_mode = #tpu.pipeline_mode<synchronous>, transform_indices = @transform_10, window_bounds = array<i64: 32, 16>}, {pipeline_mode = #tpu.pipeline_mode<synchronous>, transform_indices = @transform_11, window_bounds = array<i64: 1, 16>}, {transform_indices = @transform_12, window_bounds = array<i64: 2, 96>}, {transform_indices = @transform_13, window_bounds = array<i64: 2, 96>}, {transform_indices = @transform_14, window_bounds = array<i64: 8, 2, 16>}, {transform_indices = @transform_15, window_bounds = array<i64: 2, 96>}, {transform_indices = @transform_16, window_bounds = array<i64: 2, 96>}]} {
    %c0_i32 = arith.constant 0 : i32
    %0 = arith.cmpi eq, %arg1, %c0_i32 : i32
    %1 = arith.extui %0 : i1 to i32
    %c0_i32_0 = arith.constant 0 : i32
    %2 = arith.cmpi ne, %1, %c0_i32_0 : i32
    scf.if %2 {
      %c0_233 = arith.constant 0 : index
      %c0_234 = arith.constant 0 : index
      %777 = vector.load %arg14[%c0_233, %c0_234] : memref<2x96xf32, #tpu.memory_space<vmem>>, vector<2x96xf32>
      %c0_235 = arith.constant 0 : index
      %c0_236 = arith.constant 0 : index
      %778 = vector.load %arg19[%c0_235, %c0_236] : memref<2x96xf32, #tpu.memory_space<vmem>>, vector<2x96xf32>
      tpu.vector_store %arg19[%c0_235, %c0_236], %777 {strides = array<i32>} : memref<2x96xf32, #tpu.memory_space<vmem>>, vector<2x96xf32>,
      %c0_237 = arith.constant 0 : index
      %c0_238 = arith.constant 0 : index
      %779 = vector.load %arg15[%c0_237, %c0_238] : memref<2x96xf32, #tpu.memory_space<vmem>>, vector<2x96xf32>
      %c0_239 = arith.constant 0 : index
      %c0_240 = arith.constant 0 : index
      %780 = vector.load %arg20[%c0_239, %c0_240] : memref<2x96xf32, #tpu.memory_space<vmem>>, vector<2x96xf32>
      tpu.vector_store %arg20[%c0_239, %c0_240], %779 {strides = array<i32>} : memref<2x96xf32, #tpu.memory_space<vmem>>, vector<2x96xf32>,
    } else {
    }
    %c0 = arith.constant 0 : index
    %c0_1 = arith.constant 0 : index
    %3 = vector.load %arg19[%c0, %c0_1] : memref<2x96xf32, #tpu.memory_space<vmem>>, vector<2x96xf32>
    %c0_2 = arith.constant 0 : index
    %c0_3 = arith.constant 0 : index
    %4 = vector.load %arg20[%c0_2, %c0_3] : memref<2x96xf32, #tpu.memory_space<vmem>>, vector<2x96xf32>
    %5 = vector.extract_strided_slice %3 {offsets = [0, 0], sizes = [2, 32], strides = [1, 1]} : vector<2x96xf32> to vector<2x32xf32>
    %6 = vector.extract_strided_slice %3 {offsets = [0, 32], sizes = [2, 32], strides = [1, 1]} : vector<2x96xf32> to vector<2x32xf32>
    %7 = vector.extract_strided_slice %3 {offsets = [0, 64], sizes = [2, 32], strides = [1, 1]} : vector<2x96xf32> to vector<2x32xf32>
    %8 = vector.extract_strided_slice %4 {offsets = [0, 0], sizes = [2, 32], strides = [1, 1]} : vector<2x96xf32> to vector<2x32xf32>
    %9 = vector.extract_strided_slice %4 {offsets = [0, 32], sizes = [2, 32], strides = [1, 1]} : vector<2x96xf32> to vector<2x32xf32>
    %10 = vector.extract_strided_slice %4 {offsets = [0, 64], sizes = [2, 32], strides = [1, 1]} : vector<2x96xf32> to vector<2x32xf32>
    %c0_4 = arith.constant 0 : index
    %c0_5 = arith.constant 0 : index
    %c0_6 = arith.constant 0 : index
    %11 = vector.load %arg2[%c0_4, %c0_5, %c0_6] : memref<8x2x16xf32, #tpu.memory_space<vmem>>, vector<8x2x16xf32>
    %12 = vector.shape_cast %11 : vector<8x2x16xf32> to vector<16x16xf32>
    %c0_7 = arith.constant 0 : index
    %c0_8 = arith.constant 0 : index
    %13 = vector.load %arg3[%c0_7, %c0_8] : memref<16x128xf32, #tpu.memory_space<vmem>>, vector<16x128xf32>
    %cst = arith.constant dense<0.000000e+00> : vector<16x128xf32>
    %14 = tpu.matmul %12, %13, %cst {dimension_numbers = #tpu.dot_dimension_numbers<[1], [0], [0], [1], [0, 0, 1, 1], [], []>} : vector<16x16xf32>, vector<16x128xf32>, vector<16x128xf32> -> vector<16x128xf32>
    %c0_9 = arith.constant 0 : index
    %c0_10 = arith.constant 0 : index
    %15 = vector.load %arg5[%c0_9, %c0_10] : memref<1x128xf32, #tpu.memory_space<vmem>>, vector<1x128xf32>
    %16 = vector.broadcast %15 : vector<1x128xf32> to vector<16x128xf32>
    %17 = arith.addf %14, %16 : vector<16x128xf32>
    %18 = vector.extract_strided_slice %17 {offsets = [0, 0], sizes = [2, 128], strides = [1, 1]} : vector<16x128xf32> to vector<2x128xf32>
    %c0_11 = arith.constant 0 : index
    %c0_12 = arith.constant 0 : index
    %19 = vector.load %arg4[%c0_11, %c0_12] : memref<32x128xf32, #tpu.memory_space<vmem>>, vector<32x128xf32>
    %cst_13 = arith.constant dense<0.000000e+00> : vector<2x128xf32>
    %20 = tpu.matmul %5, %19, %cst_13 {dimension_numbers = #tpu.dot_dimension_numbers<[1], [0], [0], [1], [0, 0, 1, 1], [], []>} : vector<2x32xf32>, vector<32x128xf32>, vector<2x128xf32> -> vector<2x128xf32>
    %21 = arith.addf %18, %20 : vector<2x128xf32>
    %22 = vector.extract_strided_slice %21 {offsets = [0, 0], sizes = [2, 32], strides = [1, 1]} : vector<2x128xf32> to vector<2x32xf32>
    %23 = arith.negf %22 : vector<2x32xf32>
    %24 = math.exp %23 : vector<2x32xf32>
    %cst_14 = arith.constant 1.000000e+00 : f32
    %25 = vector.broadcast %cst_14 : f32 to vector<2x32xf32>
    %26 = arith.addf %25, %24 : vector<2x32xf32>
    %27 = arith.divf %25, %26 : vector<2x32xf32>
    %28 = vector.extract_strided_slice %21 {offsets = [0, 32], sizes = [2, 32], strides = [1, 1]} : vector<2x128xf32> to vector<2x32xf32>
    %29 = arith.negf %28 : vector<2x32xf32>
    %30 = math.exp %29 : vector<2x32xf32>
    %cst_15 = arith.constant 1.000000e+00 : f32
    %31 = vector.broadcast %cst_15 : f32 to vector<2x32xf32>
    %32 = arith.addf %31, %30 : vector<2x32xf32>
    %33 = arith.divf %31, %32 : vector<2x32xf32>
    %34 = vector.extract_strided_slice %21 {offsets = [0, 64], sizes = [2, 32], strides = [1, 1]} : vector<2x128xf32> to vector<2x32xf32>
    %35 = math.tanh %34 : vector<2x32xf32>
    %36 = vector.extract_strided_slice %21 {offsets = [0, 96], sizes = [2, 32], strides = [1, 1]} : vector<2x128xf32> to vector<2x32xf32>
    %37 = arith.negf %36 : vector<2x32xf32>
    %38 = math.exp %37 : vector<2x32xf32>
    %cst_16 = arith.constant 1.000000e+00 : f32
    %39 = vector.broadcast %cst_16 : f32 to vector<2x32xf32>
    %40 = arith.addf %39, %38 : vector<2x32xf32>
    %41 = arith.divf %39, %40 : vector<2x32xf32>
    %42 = arith.mulf %33, %8 : vector<2x32xf32>
    %43 = arith.mulf %27, %35 : vector<2x32xf32>
    %44 = arith.addf %42, %43 : vector<2x32xf32>
    %45 = math.tanh %44 : vector<2x32xf32>
    %46 = arith.mulf %41, %45 : vector<2x32xf32>
    %c0_17 = arith.constant 0 : index
    %c0_18 = arith.constant 0 : index
    %47 = vector.load %arg21[%c0_17, %c0_18] : memref<16x32xf32, #tpu.memory_space<vmem>>, vector<2x32xf32>
    tpu.vector_store %arg21[%c0_17, %c0_18], %46 {strides = array<i32>} : memref<16x32xf32, #tpu.memory_space<vmem>>, vector<2x32xf32>,
    %48 = vector.extract_strided_slice %17 {offsets = [2, 0], sizes = [2, 128], strides = [1, 1]} : vector<16x128xf32> to vector<2x128xf32>
    %c0_19 = arith.constant 0 : index
    %c0_20 = arith.constant 0 : index
    %49 = vector.load %arg4[%c0_19, %c0_20] : memref<32x128xf32, #tpu.memory_space<vmem>>, vector<32x128xf32>
    %cst_21 = arith.constant dense<0.000000e+00> : vector<2x128xf32>
    %50 = tpu.matmul %46, %49, %cst_21 {dimension_numbers = #tpu.dot_dimension_numbers<[1], [0], [0], [1], [0, 0, 1, 1], [], []>} : vector<2x32xf32>, vector<32x128xf32>, vector<2x128xf32> -> vector<2x128xf32>
    %51 = arith.addf %48, %50 : vector<2x128xf32>
    %52 = vector.extract_strided_slice %51 {offsets = [0, 0], sizes = [2, 32], strides = [1, 1]} : vector<2x128xf32> to vector<2x32xf32>
    %53 = arith.negf %52 : vector<2x32xf32>
    %54 = math.exp %53 : vector<2x32xf32>
    %cst_22 = arith.constant 1.000000e+00 : f32
    %55 = vector.broadcast %cst_22 : f32 to vector<2x32xf32>
    %56 = arith.addf %55, %54 : vector<2x32xf32>
    %57 = arith.divf %55, %56 : vector<2x32xf32>
    %58 = vector.extract_strided_slice %51 {offsets = [0, 32], sizes = [2, 32], strides = [1, 1]} : vector<2x128xf32> to vector<2x32xf32>
    %59 = arith.negf %58 : vector<2x32xf32>
    %60 = math.exp %59 : vector<2x32xf32>
    %cst_23 = arith.constant 1.000000e+00 : f32
    %61 = vector.broadcast %cst_23 : f32 to vector<2x32xf32>
    %62 = arith.addf %61, %60 : vector<2x32xf32>
    %63 = arith.divf %61, %62 : vector<2x32xf32>
    %64 = vector.extract_strided_slice %51 {offsets = [0, 64], sizes = [2, 32], strides = [1, 1]} : vector<2x128xf32> to vector<2x32xf32>
    %65 = math.tanh %64 : vector<2x32xf32>
    %66 = vector.extract_strided_slice %51 {offsets = [0, 96], sizes = [2, 32], strides = [1, 1]} : vector<2x128xf32> to vector<2x32xf32>
    %67 = arith.negf %66 : vector<2x32xf32>
    %68 = math.exp %67 : vector<2x32xf32>
    %cst_24 = arith.constant 1.000000e+00 : f32
    %69 = vector.broadcast %cst_24 : f32 to vector<2x32xf32>
    %70 = arith.addf %69, %68 : vector<2x32xf32>
    %71 = arith.divf %69, %70 : vector<2x32xf32>
    %72 = arith.mulf %63, %44 : vector<2x32xf32>
    %73 = arith.mulf %57, %65 : vector<2x32xf32>
    %74 = arith.addf %72, %73 : vector<2x32xf32>
    %75 = math.tanh %74 : vector<2x32xf32>
    %76 = arith.mulf %71, %75 : vector<2x32xf32>
    %c2 = arith.constant 2 : index
    %c0_25 = arith.constant 0 : index
    %77 = vector.load %arg21[%c2, %c0_25] : memref<16x32xf32, #tpu.memory_space<vmem>>, vector<2x32xf32>
    tpu.vector_store %arg21[%c2, %c0_25], %76 {strides = array<i32>} : memref<16x32xf32, #tpu.memory_space<vmem>>, vector<2x32xf32>,
    %78 = vector.extract_strided_slice %17 {offsets = [4, 0], sizes = [2, 128], strides = [1, 1]} : vector<16x128xf32> to vector<2x128xf32>
    %c0_26 = arith.constant 0 : index
    %c0_27 = arith.constant 0 : index
    %79 = vector.load %arg4[%c0_26, %c0_27] : memref<32x128xf32, #tpu.memory_space<vmem>>, vector<32x128xf32>
    %cst_28 = arith.constant dense<0.000000e+00> : vector<2x128xf32>
    %80 = tpu.matmul %76, %79, %cst_28 {dimension_numbers = #tpu.dot_dimension_numbers<[1], [0], [0], [1], [0, 0, 1, 1], [], []>} : vector<2x32xf32>, vector<32x128xf32>, vector<2x128xf32> -> vector<2x128xf32>
    %81 = arith.addf %78, %80 : vector<2x128xf32>
    %82 = vector.extract_strided_slice %81 {offsets = [0, 0], sizes = [2, 32], strides = [1, 1]} : vector<2x128xf32> to vector<2x32xf32>
    %83 = arith.negf %82 : vector<2x32xf32>
    %84 = math.exp %83 : vector<2x32xf32>
    %cst_29 = arith.constant 1.000000e+00 : f32
    %85 = vector.broadcast %cst_29 : f32 to vector<2x32xf32>
    %86 = arith.addf %85, %84 : vector<2x32xf32>
    %87 = arith.divf %85, %86 : vector<2x32xf32>
    %88 = vector.extract_strided_slice %81 {offsets = [0, 32], sizes = [2, 32], strides = [1, 1]} : vector<2x128xf32> to vector<2x32xf32>
    %89 = arith.negf %88 : vector<2x32xf32>
    %90 = math.exp %89 : vector<2x32xf32>
    %cst_30 = arith.constant 1.000000e+00 : f32
    %91 = vector.broadcast %cst_30 : f32 to vector<2x32xf32>
    %92 = arith.addf %91, %90 : vector<2x32xf32>
    %93 = arith.divf %91, %92 : vector<2x32xf32>
    %94 = vector.extract_strided_slice %81 {offsets = [0, 64], sizes = [2, 32], strides = [1, 1]} : vector<2x128xf32> to vector<2x32xf32>
    %95 = math.tanh %94 : vector<2x32xf32>
    %96 = vector.extract_strided_slice %81 {offsets = [0, 96], sizes = [2, 32], strides = [1, 1]} : vector<2x128xf32> to vector<2x32xf32>
    %97 = arith.negf %96 : vector<2x32xf32>
    %98 = math.exp %97 : vector<2x32xf32>
    %cst_31 = arith.constant 1.000000e+00 : f32
    %99 = vector.broadcast %cst_31 : f32 to vector<2x32xf32>
    %100 = arith.addf %99, %98 : vector<2x32xf32>
    %101 = arith.divf %99, %100 : vector<2x32xf32>
    %102 = arith.mulf %93, %74 : vector<2x32xf32>
    %103 = arith.mulf %87, %95 : vector<2x32xf32>
    %104 = arith.addf %102, %103 : vector<2x32xf32>
    %105 = math.tanh %104 : vector<2x32xf32>
    %106 = arith.mulf %101, %105 : vector<2x32xf32>
    %c4 = arith.constant 4 : index
    %c0_32 = arith.constant 0 : index
    %107 = vector.load %arg21[%c4, %c0_32] : memref<16x32xf32, #tpu.memory_space<vmem>>, vector<2x32xf32>
    tpu.vector_store %arg21[%c4, %c0_32], %106 {strides = array<i32>} : memref<16x32xf32, #tpu.memory_space<vmem>>, vector<2x32xf32>,
    %108 = vector.extract_strided_slice %17 {offsets = [6, 0], sizes = [2, 128], strides = [1, 1]} : vector<16x128xf32> to vector<2x128xf32>
    %c0_33 = arith.constant 0 : index
    %c0_34 = arith.constant 0 : index
    %109 = vector.load %arg4[%c0_33, %c0_34] : memref<32x128xf32, #tpu.memory_space<vmem>>, vector<32x128xf32>
    %cst_35 = arith.constant dense<0.000000e+00> : vector<2x128xf32>
    %110 = tpu.matmul %106, %109, %cst_35 {dimension_numbers = #tpu.dot_dimension_numbers<[1], [0], [0], [1], [0, 0, 1, 1], [], []>} : vector<2x32xf32>, vector<32x128xf32>, vector<2x128xf32> -> vector<2x128xf32>
    %111 = arith.addf %108, %110 : vector<2x128xf32>
    %112 = vector.extract_strided_slice %111 {offsets = [0, 0], sizes = [2, 32], strides = [1, 1]} : vector<2x128xf32> to vector<2x32xf32>
    %113 = arith.negf %112 : vector<2x32xf32>
    %114 = math.exp %113 : vector<2x32xf32>
    %cst_36 = arith.constant 1.000000e+00 : f32
    %115 = vector.broadcast %cst_36 : f32 to vector<2x32xf32>
    %116 = arith.addf %115, %114 : vector<2x32xf32>
    %117 = arith.divf %115, %116 : vector<2x32xf32>
    %118 = vector.extract_strided_slice %111 {offsets = [0, 32], sizes = [2, 32], strides = [1, 1]} : vector<2x128xf32> to vector<2x32xf32>
    %119 = arith.negf %118 : vector<2x32xf32>
    %120 = math.exp %119 : vector<2x32xf32>
    %cst_37 = arith.constant 1.000000e+00 : f32
    %121 = vector.broadcast %cst_37 : f32 to vector<2x32xf32>
    %122 = arith.addf %121, %120 : vector<2x32xf32>
    %123 = arith.divf %121, %122 : vector<2x32xf32>
    %124 = vector.extract_strided_slice %111 {offsets = [0, 64], sizes = [2, 32], strides = [1, 1]} : vector<2x128xf32> to vector<2x32xf32>
    %125 = math.tanh %124 : vector<2x32xf32>
    %126 = vector.extract_strided_slice %111 {offsets = [0, 96], sizes = [2, 32], strides = [1, 1]} : vector<2x128xf32> to vector<2x32xf32>
    %127 = arith.negf %126 : vector<2x32xf32>
    %128 = math.exp %127 : vector<2x32xf32>
    %cst_38 = arith.constant 1.000000e+00 : f32
    %129 = vector.broadcast %cst_38 : f32 to vector<2x32xf32>
    %130 = arith.addf %129, %128 : vector<2x32xf32>
    %131 = arith.divf %129, %130 : vector<2x32xf32>
    %132 = arith.mulf %123, %104 : vector<2x32xf32>
    %133 = arith.mulf %117, %125 : vector<2x32xf32>
    %134 = arith.addf %132, %133 : vector<2x32xf32>
    %135 = math.tanh %134 : vector<2x32xf32>
    %136 = arith.mulf %131, %135 : vector<2x32xf32>
    %c6 = arith.constant 6 : index
    %c0_39 = arith.constant 0 : index
    %137 = vector.load %arg21[%c6, %c0_39] : memref<16x32xf32, #tpu.memory_space<vmem>>, vector<2x32xf32>
    tpu.vector_store %arg21[%c6, %c0_39], %136 {strides = array<i32>} : memref<16x32xf32, #tpu.memory_space<vmem>>, vector<2x32xf32>,
    %138 = vector.extract_strided_slice %17 {offsets = [8, 0], sizes = [2, 128], strides = [1, 1]} : vector<16x128xf32> to vector<2x128xf32>
    %c0_40 = arith.constant 0 : index
    %c0_41 = arith.constant 0 : index
    %139 = vector.load %arg4[%c0_40, %c0_41] : memref<32x128xf32, #tpu.memory_space<vmem>>, vector<32x128xf32>
    %cst_42 = arith.constant dense<0.000000e+00> : vector<2x128xf32>
    %140 = tpu.matmul %136, %139, %cst_42 {dimension_numbers = #tpu.dot_dimension_numbers<[1], [0], [0], [1], [0, 0, 1, 1], [], []>} : vector<2x32xf32>, vector<32x128xf32>, vector<2x128xf32> -> vector<2x128xf32>
    %141 = arith.addf %138, %140 : vector<2x128xf32>
    %142 = vector.extract_strided_slice %141 {offsets = [0, 0], sizes = [2, 32], strides = [1, 1]} : vector<2x128xf32> to vector<2x32xf32>
    %143 = arith.negf %142 : vector<2x32xf32>
    %144 = math.exp %143 : vector<2x32xf32>
    %cst_43 = arith.constant 1.000000e+00 : f32
    %145 = vector.broadcast %cst_43 : f32 to vector<2x32xf32>
    %146 = arith.addf %145, %144 : vector<2x32xf32>
    %147 = arith.divf %145, %146 : vector<2x32xf32>
    %148 = vector.extract_strided_slice %141 {offsets = [0, 32], sizes = [2, 32], strides = [1, 1]} : vector<2x128xf32> to vector<2x32xf32>
    %149 = arith.negf %148 : vector<2x32xf32>
    %150 = math.exp %149 : vector<2x32xf32>
    %cst_44 = arith.constant 1.000000e+00 : f32
    %151 = vector.broadcast %cst_44 : f32 to vector<2x32xf32>
    %152 = arith.addf %151, %150 : vector<2x32xf32>
    %153 = arith.divf %151, %152 : vector<2x32xf32>
    %154 = vector.extract_strided_slice %141 {offsets = [0, 64], sizes = [2, 32], strides = [1, 1]} : vector<2x128xf32> to vector<2x32xf32>
    %155 = math.tanh %154 : vector<2x32xf32>
    %156 = vector.extract_strided_slice %141 {offsets = [0, 96], sizes = [2, 32], strides = [1, 1]} : vector<2x128xf32> to vector<2x32xf32>
    %157 = arith.negf %156 : vector<2x32xf32>
    %158 = math.exp %157 : vector<2x32xf32>
    %cst_45 = arith.constant 1.000000e+00 : f32
    %159 = vector.broadcast %cst_45 : f32 to vector<2x32xf32>
    %160 = arith.addf %159, %158 : vector<2x32xf32>
    %161 = arith.divf %159, %160 : vector<2x32xf32>
    %162 = arith.mulf %153, %134 : vector<2x32xf32>
    %163 = arith.mulf %147, %155 : vector<2x32xf32>
    %164 = arith.addf %162, %163 : vector<2x32xf32>
    %165 = math.tanh %164 : vector<2x32xf32>
    %166 = arith.mulf %161, %165 : vector<2x32xf32>
    %c8 = arith.constant 8 : index
    %c0_46 = arith.constant 0 : index
    %167 = vector.load %arg21[%c8, %c0_46] : memref<16x32xf32, #tpu.memory_space<vmem>>, vector<2x32xf32>
    tpu.vector_store %arg21[%c8, %c0_46], %166 {strides = array<i32>} : memref<16x32xf32, #tpu.memory_space<vmem>>, vector<2x32xf32>,
    %168 = vector.extract_strided_slice %17 {offsets = [10, 0], sizes = [2, 128], strides = [1, 1]} : vector<16x128xf32> to vector<2x128xf32>
    %c0_47 = arith.constant 0 : index
    %c0_48 = arith.constant 0 : index
    %169 = vector.load %arg4[%c0_47, %c0_48] : memref<32x128xf32, #tpu.memory_space<vmem>>, vector<32x128xf32>
    %cst_49 = arith.constant dense<0.000000e+00> : vector<2x128xf32>
    %170 = tpu.matmul %166, %169, %cst_49 {dimension_numbers = #tpu.dot_dimension_numbers<[1], [0], [0], [1], [0, 0, 1, 1], [], []>} : vector<2x32xf32>, vector<32x128xf32>, vector<2x128xf32> -> vector<2x128xf32>
    %171 = arith.addf %168, %170 : vector<2x128xf32>
    %172 = vector.extract_strided_slice %171 {offsets = [0, 0], sizes = [2, 32], strides = [1, 1]} : vector<2x128xf32> to vector<2x32xf32>
    %173 = arith.negf %172 : vector<2x32xf32>
    %174 = math.exp %173 : vector<2x32xf32>
    %cst_50 = arith.constant 1.000000e+00 : f32
    %175 = vector.broadcast %cst_50 : f32 to vector<2x32xf32>
    %176 = arith.addf %175, %174 : vector<2x32xf32>
    %177 = arith.divf %175, %176 : vector<2x32xf32>
    %178 = vector.extract_strided_slice %171 {offsets = [0, 32], sizes = [2, 32], strides = [1, 1]} : vector<2x128xf32> to vector<2x32xf32>
    %179 = arith.negf %178 : vector<2x32xf32>
    %180 = math.exp %179 : vector<2x32xf32>
    %cst_51 = arith.constant 1.000000e+00 : f32
    %181 = vector.broadcast %cst_51 : f32 to vector<2x32xf32>
    %182 = arith.addf %181, %180 : vector<2x32xf32>
    %183 = arith.divf %181, %182 : vector<2x32xf32>
    %184 = vector.extract_strided_slice %171 {offsets = [0, 64], sizes = [2, 32], strides = [1, 1]} : vector<2x128xf32> to vector<2x32xf32>
    %185 = math.tanh %184 : vector<2x32xf32>
    %186 = vector.extract_strided_slice %171 {offsets = [0, 96], sizes = [2, 32], strides = [1, 1]} : vector<2x128xf32> to vector<2x32xf32>
    %187 = arith.negf %186 : vector<2x32xf32>
    %188 = math.exp %187 : vector<2x32xf32>
    %cst_52 = arith.constant 1.000000e+00 : f32
    %189 = vector.broadcast %cst_52 : f32 to vector<2x32xf32>
    %190 = arith.addf %189, %188 : vector<2x32xf32>
    %191 = arith.divf %189, %190 : vector<2x32xf32>
    %192 = arith.mulf %183, %164 : vector<2x32xf32>
    %193 = arith.mulf %177, %185 : vector<2x32xf32>
    %194 = arith.addf %192, %193 : vector<2x32xf32>
    %195 = math.tanh %194 : vector<2x32xf32>
    %196 = arith.mulf %191, %195 : vector<2x32xf32>
    %c10 = arith.constant 10 : index
    %c0_53 = arith.constant 0 : index
    %197 = vector.load %arg21[%c10, %c0_53] : memref<16x32xf32, #tpu.memory_space<vmem>>, vector<2x32xf32>
    tpu.vector_store %arg21[%c10, %c0_53], %196 {strides = array<i32>} : memref<16x32xf32, #tpu.memory_space<vmem>>, vector<2x32xf32>,
    %198 = vector.extract_strided_slice %17 {offsets = [12, 0], sizes = [2, 128], strides = [1, 1]} : vector<16x128xf32> to vector<2x128xf32>
    %c0_54 = arith.constant 0 : index
    %c0_55 = arith.constant 0 : index
    %199 = vector.load %arg4[%c0_54, %c0_55] : memref<32x128xf32, #tpu.memory_space<vmem>>, vector<32x128xf32>
    %cst_56 = arith.constant dense<0.000000e+00> : vector<2x128xf32>
    %200 = tpu.matmul %196, %199, %cst_56 {dimension_numbers = #tpu.dot_dimension_numbers<[1], [0], [0], [1], [0, 0, 1, 1], [], []>} : vector<2x32xf32>, vector<32x128xf32>, vector<2x128xf32> -> vector<2x128xf32>
    %201 = arith.addf %198, %200 : vector<2x128xf32>
    %202 = vector.extract_strided_slice %201 {offsets = [0, 0], sizes = [2, 32], strides = [1, 1]} : vector<2x128xf32> to vector<2x32xf32>
    %203 = arith.negf %202 : vector<2x32xf32>
    %204 = math.exp %203 : vector<2x32xf32>
    %cst_57 = arith.constant 1.000000e+00 : f32
    %205 = vector.broadcast %cst_57 : f32 to vector<2x32xf32>
    %206 = arith.addf %205, %204 : vector<2x32xf32>
    %207 = arith.divf %205, %206 : vector<2x32xf32>
    %208 = vector.extract_strided_slice %201 {offsets = [0, 32], sizes = [2, 32], strides = [1, 1]} : vector<2x128xf32> to vector<2x32xf32>
    %209 = arith.negf %208 : vector<2x32xf32>
    %210 = math.exp %209 : vector<2x32xf32>
    %cst_58 = arith.constant 1.000000e+00 : f32
    %211 = vector.broadcast %cst_58 : f32 to vector<2x32xf32>
    %212 = arith.addf %211, %210 : vector<2x32xf32>
    %213 = arith.divf %211, %212 : vector<2x32xf32>
    %214 = vector.extract_strided_slice %201 {offsets = [0, 64], sizes = [2, 32], strides = [1, 1]} : vector<2x128xf32> to vector<2x32xf32>
    %215 = math.tanh %214 : vector<2x32xf32>
    %216 = vector.extract_strided_slice %201 {offsets = [0, 96], sizes = [2, 32], strides = [1, 1]} : vector<2x128xf32> to vector<2x32xf32>
    %217 = arith.negf %216 : vector<2x32xf32>
    %218 = math.exp %217 : vector<2x32xf32>
    %cst_59 = arith.constant 1.000000e+00 : f32
    %219 = vector.broadcast %cst_59 : f32 to vector<2x32xf32>
    %220 = arith.addf %219, %218 : vector<2x32xf32>
    %221 = arith.divf %219, %220 : vector<2x32xf32>
    %222 = arith.mulf %213, %194 : vector<2x32xf32>
    %223 = arith.mulf %207, %215 : vector<2x32xf32>
    %224 = arith.addf %222, %223 : vector<2x32xf32>
    %225 = math.tanh %224 : vector<2x32xf32>
    %226 = arith.mulf %221, %225 : vector<2x32xf32>
    %c12 = arith.constant 12 : index
    %c0_60 = arith.constant 0 : index
    %227 = vector.load %arg21[%c12, %c0_60] : memref<16x32xf32, #tpu.memory_space<vmem>>, vector<2x32xf32>
    tpu.vector_store %arg21[%c12, %c0_60], %226 {strides = array<i32>} : memref<16x32xf32, #tpu.memory_space<vmem>>, vector<2x32xf32>,
    %228 = vector.extract_strided_slice %17 {offsets = [14, 0], sizes = [2, 128], strides = [1, 1]} : vector<16x128xf32> to vector<2x128xf32>
    %c0_61 = arith.constant 0 : index
    %c0_62 = arith.constant 0 : index
    %229 = vector.load %arg4[%c0_61, %c0_62] : memref<32x128xf32, #tpu.memory_space<vmem>>, vector<32x128xf32>
    %cst_63 = arith.constant dense<0.000000e+00> : vector<2x128xf32>
    %230 = tpu.matmul %226, %229, %cst_63 {dimension_numbers = #tpu.dot_dimension_numbers<[1], [0], [0], [1], [0, 0, 1, 1], [], []>} : vector<2x32xf32>, vector<32x128xf32>, vector<2x128xf32> -> vector<2x128xf32>
    %231 = arith.addf %228, %230 : vector<2x128xf32>
    %232 = vector.extract_strided_slice %231 {offsets = [0, 0], sizes = [2, 32], strides = [1, 1]} : vector<2x128xf32> to vector<2x32xf32>
    %233 = arith.negf %232 : vector<2x32xf32>
    %234 = math.exp %233 : vector<2x32xf32>
    %cst_64 = arith.constant 1.000000e+00 : f32
    %235 = vector.broadcast %cst_64 : f32 to vector<2x32xf32>
    %236 = arith.addf %235, %234 : vector<2x32xf32>
    %237 = arith.divf %235, %236 : vector<2x32xf32>
    %238 = vector.extract_strided_slice %231 {offsets = [0, 32], sizes = [2, 32], strides = [1, 1]} : vector<2x128xf32> to vector<2x32xf32>
    %239 = arith.negf %238 : vector<2x32xf32>
    %240 = math.exp %239 : vector<2x32xf32>
    %cst_65 = arith.constant 1.000000e+00 : f32
    %241 = vector.broadcast %cst_65 : f32 to vector<2x32xf32>
    %242 = arith.addf %241, %240 : vector<2x32xf32>
    %243 = arith.divf %241, %242 : vector<2x32xf32>
    %244 = vector.extract_strided_slice %231 {offsets = [0, 64], sizes = [2, 32], strides = [1, 1]} : vector<2x128xf32> to vector<2x32xf32>
    %245 = math.tanh %244 : vector<2x32xf32>
    %246 = vector.extract_strided_slice %231 {offsets = [0, 96], sizes = [2, 32], strides = [1, 1]} : vector<2x128xf32> to vector<2x32xf32>
    %247 = arith.negf %246 : vector<2x32xf32>
    %248 = math.exp %247 : vector<2x32xf32>
    %cst_66 = arith.constant 1.000000e+00 : f32
    %249 = vector.broadcast %cst_66 : f32 to vector<2x32xf32>
    %250 = arith.addf %249, %248 : vector<2x32xf32>
    %251 = arith.divf %249, %250 : vector<2x32xf32>
    %252 = arith.mulf %243, %224 : vector<2x32xf32>
    %253 = arith.mulf %237, %245 : vector<2x32xf32>
    %254 = arith.addf %252, %253 : vector<2x32xf32>
    %255 = math.tanh %254 : vector<2x32xf32>
    %256 = arith.mulf %251, %255 : vector<2x32xf32>
    %c14 = arith.constant 14 : index
    %c0_67 = arith.constant 0 : index
    %257 = vector.load %arg21[%c14, %c0_67] : memref<16x32xf32, #tpu.memory_space<vmem>>, vector<2x32xf32>
    tpu.vector_store %arg21[%c14, %c0_67], %256 {strides = array<i32>} : memref<16x32xf32, #tpu.memory_space<vmem>>, vector<2x32xf32>,
    %c0_68 = arith.constant 0 : index
    %c0_69 = arith.constant 0 : index
    %258 = vector.load %arg21[%c0_68, %c0_69] : memref<16x32xf32, #tpu.memory_space<vmem>>, vector<16x32xf32>
    %c0_70 = arith.constant 0 : index
    %c0_71 = arith.constant 0 : index
    %259 = vector.load %arg6[%c0_70, %c0_71] : memref<32x128xf32, #tpu.memory_space<vmem>>, vector<32x128xf32>
    %cst_72 = arith.constant dense<0.000000e+00> : vector<16x128xf32>
    %260 = tpu.matmul %258, %259, %cst_72 {dimension_numbers = #tpu.dot_dimension_numbers<[1], [0], [0], [1], [0, 0, 1, 1], [], []>} : vector<16x32xf32>, vector<32x128xf32>, vector<16x128xf32> -> vector<16x128xf32>
    %c0_73 = arith.constant 0 : index
    %c0_74 = arith.constant 0 : index
    %261 = vector.load %arg8[%c0_73, %c0_74] : memref<1x128xf32, #tpu.memory_space<vmem>>, vector<1x128xf32>
    %262 = vector.broadcast %261 : vector<1x128xf32> to vector<16x128xf32>
    %263 = arith.addf %260, %262 : vector<16x128xf32>
    %264 = vector.extract_strided_slice %263 {offsets = [0, 0], sizes = [2, 128], strides = [1, 1]} : vector<16x128xf32> to vector<2x128xf32>
    %c0_75 = arith.constant 0 : index
    %c0_76 = arith.constant 0 : index
    %265 = vector.load %arg7[%c0_75, %c0_76] : memref<32x128xf32, #tpu.memory_space<vmem>>, vector<32x128xf32>
    %cst_77 = arith.constant dense<0.000000e+00> : vector<2x128xf32>
    %266 = tpu.matmul %6, %265, %cst_77 {dimension_numbers = #tpu.dot_dimension_numbers<[1], [0], [0], [1], [0, 0, 1, 1], [], []>} : vector<2x32xf32>, vector<32x128xf32>, vector<2x128xf32> -> vector<2x128xf32>
    %267 = arith.addf %264, %266 : vector<2x128xf32>
    %268 = vector.extract_strided_slice %267 {offsets = [0, 0], sizes = [2, 32], strides = [1, 1]} : vector<2x128xf32> to vector<2x32xf32>
    %269 = arith.negf %268 : vector<2x32xf32>
    %270 = math.exp %269 : vector<2x32xf32>
    %cst_78 = arith.constant 1.000000e+00 : f32
    %271 = vector.broadcast %cst_78 : f32 to vector<2x32xf32>
    %272 = arith.addf %271, %270 : vector<2x32xf32>
    %273 = arith.divf %271, %272 : vector<2x32xf32>
    %274 = vector.extract_strided_slice %267 {offsets = [0, 32], sizes = [2, 32], strides = [1, 1]} : vector<2x128xf32> to vector<2x32xf32>
    %275 = arith.negf %274 : vector<2x32xf32>
    %276 = math.exp %275 : vector<2x32xf32>
    %cst_79 = arith.constant 1.000000e+00 : f32
    %277 = vector.broadcast %cst_79 : f32 to vector<2x32xf32>
    %278 = arith.addf %277, %276 : vector<2x32xf32>
    %279 = arith.divf %277, %278 : vector<2x32xf32>
    %280 = vector.extract_strided_slice %267 {offsets = [0, 64], sizes = [2, 32], strides = [1, 1]} : vector<2x128xf32> to vector<2x32xf32>
    %281 = math.tanh %280 : vector<2x32xf32>
    %282 = vector.extract_strided_slice %267 {offsets = [0, 96], sizes = [2, 32], strides = [1, 1]} : vector<2x128xf32> to vector<2x32xf32>
    %283 = arith.negf %282 : vector<2x32xf32>
    %284 = math.exp %283 : vector<2x32xf32>
    %cst_80 = arith.constant 1.000000e+00 : f32
    %285 = vector.broadcast %cst_80 : f32 to vector<2x32xf32>
    %286 = arith.addf %285, %284 : vector<2x32xf32>
    %287 = arith.divf %285, %286 : vector<2x32xf32>
    %288 = arith.mulf %279, %9 : vector<2x32xf32>
    %289 = arith.mulf %273, %281 : vector<2x32xf32>
    %290 = arith.addf %288, %289 : vector<2x32xf32>
    %291 = math.tanh %290 : vector<2x32xf32>
    %292 = arith.mulf %287, %291 : vector<2x32xf32>
    %c0_81 = arith.constant 0 : index
    %c0_82 = arith.constant 0 : index
    %293 = vector.load %arg21[%c0_81, %c0_82] : memref<16x32xf32, #tpu.memory_space<vmem>>, vector<2x32xf32>
    tpu.vector_store %arg21[%c0_81, %c0_82], %292 {strides = array<i32>} : memref<16x32xf32, #tpu.memory_space<vmem>>, vector<2x32xf32>,
    %294 = vector.extract_strided_slice %263 {offsets = [2, 0], sizes = [2, 128], strides = [1, 1]} : vector<16x128xf32> to vector<2x128xf32>
    %c0_83 = arith.constant 0 : index
    %c0_84 = arith.constant 0 : index
    %295 = vector.load %arg7[%c0_83, %c0_84] : memref<32x128xf32, #tpu.memory_space<vmem>>, vector<32x128xf32>
    %cst_85 = arith.constant dense<0.000000e+00> : vector<2x128xf32>
    %296 = tpu.matmul %292, %295, %cst_85 {dimension_numbers = #tpu.dot_dimension_numbers<[1], [0], [0], [1], [0, 0, 1, 1], [], []>} : vector<2x32xf32>, vector<32x128xf32>, vector<2x128xf32> -> vector<2x128xf32>
    %297 = arith.addf %294, %296 : vector<2x128xf32>
    %298 = vector.extract_strided_slice %297 {offsets = [0, 0], sizes = [2, 32], strides = [1, 1]} : vector<2x128xf32> to vector<2x32xf32>
    %299 = arith.negf %298 : vector<2x32xf32>
    %300 = math.exp %299 : vector<2x32xf32>
    %cst_86 = arith.constant 1.000000e+00 : f32
    %301 = vector.broadcast %cst_86 : f32 to vector<2x32xf32>
    %302 = arith.addf %301, %300 : vector<2x32xf32>
    %303 = arith.divf %301, %302 : vector<2x32xf32>
    %304 = vector.extract_strided_slice %297 {offsets = [0, 32], sizes = [2, 32], strides = [1, 1]} : vector<2x128xf32> to vector<2x32xf32>
    %305 = arith.negf %304 : vector<2x32xf32>
    %306 = math.exp %305 : vector<2x32xf32>
    %cst_87 = arith.constant 1.000000e+00 : f32
    %307 = vector.broadcast %cst_87 : f32 to vector<2x32xf32>
    %308 = arith.addf %307, %306 : vector<2x32xf32>
    %309 = arith.divf %307, %308 : vector<2x32xf32>
    %310 = vector.extract_strided_slice %297 {offsets = [0, 64], sizes = [2, 32], strides = [1, 1]} : vector<2x128xf32> to vector<2x32xf32>
    %311 = math.tanh %310 : vector<2x32xf32>
    %312 = vector.extract_strided_slice %297 {offsets = [0, 96], sizes = [2, 32], strides = [1, 1]} : vector<2x128xf32> to vector<2x32xf32>
    %313 = arith.negf %312 : vector<2x32xf32>
    %314 = math.exp %313 : vector<2x32xf32>
    %cst_88 = arith.constant 1.000000e+00 : f32
    %315 = vector.broadcast %cst_88 : f32 to vector<2x32xf32>
    %316 = arith.addf %315, %314 : vector<2x32xf32>
    %317 = arith.divf %315, %316 : vector<2x32xf32>
    %318 = arith.mulf %309, %290 : vector<2x32xf32>
    %319 = arith.mulf %303, %311 : vector<2x32xf32>
    %320 = arith.addf %318, %319 : vector<2x32xf32>
    %321 = math.tanh %320 : vector<2x32xf32>
    %322 = arith.mulf %317, %321 : vector<2x32xf32>
    %c2_89 = arith.constant 2 : index
    %c0_90 = arith.constant 0 : index
    %323 = vector.load %arg21[%c2_89, %c0_90] : memref<16x32xf32, #tpu.memory_space<vmem>>, vector<2x32xf32>
    tpu.vector_store %arg21[%c2_89, %c0_90], %322 {strides = array<i32>} : memref<16x32xf32, #tpu.memory_space<vmem>>, vector<2x32xf32>,
    %324 = vector.extract_strided_slice %263 {offsets = [4, 0], sizes = [2, 128], strides = [1, 1]} : vector<16x128xf32> to vector<2x128xf32>
    %c0_91 = arith.constant 0 : index
    %c0_92 = arith.constant 0 : index
    %325 = vector.load %arg7[%c0_91, %c0_92] : memref<32x128xf32, #tpu.memory_space<vmem>>, vector<32x128xf32>
    %cst_93 = arith.constant dense<0.000000e+00> : vector<2x128xf32>
    %326 = tpu.matmul %322, %325, %cst_93 {dimension_numbers = #tpu.dot_dimension_numbers<[1], [0], [0], [1], [0, 0, 1, 1], [], []>} : vector<2x32xf32>, vector<32x128xf32>, vector<2x128xf32> -> vector<2x128xf32>
    %327 = arith.addf %324, %326 : vector<2x128xf32>
    %328 = vector.extract_strided_slice %327 {offsets = [0, 0], sizes = [2, 32], strides = [1, 1]} : vector<2x128xf32> to vector<2x32xf32>
    %329 = arith.negf %328 : vector<2x32xf32>
    %330 = math.exp %329 : vector<2x32xf32>
    %cst_94 = arith.constant 1.000000e+00 : f32
    %331 = vector.broadcast %cst_94 : f32 to vector<2x32xf32>
    %332 = arith.addf %331, %330 : vector<2x32xf32>
    %333 = arith.divf %331, %332 : vector<2x32xf32>
    %334 = vector.extract_strided_slice %327 {offsets = [0, 32], sizes = [2, 32], strides = [1, 1]} : vector<2x128xf32> to vector<2x32xf32>
    %335 = arith.negf %334 : vector<2x32xf32>
    %336 = math.exp %335 : vector<2x32xf32>
    %cst_95 = arith.constant 1.000000e+00 : f32
    %337 = vector.broadcast %cst_95 : f32 to vector<2x32xf32>
    %338 = arith.addf %337, %336 : vector<2x32xf32>
    %339 = arith.divf %337, %338 : vector<2x32xf32>
    %340 = vector.extract_strided_slice %327 {offsets = [0, 64], sizes = [2, 32], strides = [1, 1]} : vector<2x128xf32> to vector<2x32xf32>
    %341 = math.tanh %340 : vector<2x32xf32>
    %342 = vector.extract_strided_slice %327 {offsets = [0, 96], sizes = [2, 32], strides = [1, 1]} : vector<2x128xf32> to vector<2x32xf32>
    %343 = arith.negf %342 : vector<2x32xf32>
    %344 = math.exp %343 : vector<2x32xf32>
    %cst_96 = arith.constant 1.000000e+00 : f32
    %345 = vector.broadcast %cst_96 : f32 to vector<2x32xf32>
    %346 = arith.addf %345, %344 : vector<2x32xf32>
    %347 = arith.divf %345, %346 : vector<2x32xf32>
    %348 = arith.mulf %339, %320 : vector<2x32xf32>
    %349 = arith.mulf %333, %341 : vector<2x32xf32>
    %350 = arith.addf %348, %349 : vector<2x32xf32>
    %351 = math.tanh %350 : vector<2x32xf32>
    %352 = arith.mulf %347, %351 : vector<2x32xf32>
    %c4_97 = arith.constant 4 : index
    %c0_98 = arith.constant 0 : index
    %353 = vector.load %arg21[%c4_97, %c0_98] : memref<16x32xf32, #tpu.memory_space<vmem>>, vector<2x32xf32>
    tpu.vector_store %arg21[%c4_97, %c0_98], %352 {strides = array<i32>} : memref<16x32xf32, #tpu.memory_space<vmem>>, vector<2x32xf32>,
    %354 = vector.extract_strided_slice %263 {offsets = [6, 0], sizes = [2, 128], strides = [1, 1]} : vector<16x128xf32> to vector<2x128xf32>
    %c0_99 = arith.constant 0 : index
    %c0_100 = arith.constant 0 : index
    %355 = vector.load %arg7[%c0_99, %c0_100] : memref<32x128xf32, #tpu.memory_space<vmem>>, vector<32x128xf32>
    %cst_101 = arith.constant dense<0.000000e+00> : vector<2x128xf32>
    %356 = tpu.matmul %352, %355, %cst_101 {dimension_numbers = #tpu.dot_dimension_numbers<[1], [0], [0], [1], [0, 0, 1, 1], [], []>} : vector<2x32xf32>, vector<32x128xf32>, vector<2x128xf32> -> vector<2x128xf32>
    %357 = arith.addf %354, %356 : vector<2x128xf32>
    %358 = vector.extract_strided_slice %357 {offsets = [0, 0], sizes = [2, 32], strides = [1, 1]} : vector<2x128xf32> to vector<2x32xf32>
    %359 = arith.negf %358 : vector<2x32xf32>
    %360 = math.exp %359 : vector<2x32xf32>
    %cst_102 = arith.constant 1.000000e+00 : f32
    %361 = vector.broadcast %cst_102 : f32 to vector<2x32xf32>
    %362 = arith.addf %361, %360 : vector<2x32xf32>
    %363 = arith.divf %361, %362 : vector<2x32xf32>
    %364 = vector.extract_strided_slice %357 {offsets = [0, 32], sizes = [2, 32], strides = [1, 1]} : vector<2x128xf32> to vector<2x32xf32>
    %365 = arith.negf %364 : vector<2x32xf32>
    %366 = math.exp %365 : vector<2x32xf32>
    %cst_103 = arith.constant 1.000000e+00 : f32
    %367 = vector.broadcast %cst_103 : f32 to vector<2x32xf32>
    %368 = arith.addf %367, %366 : vector<2x32xf32>
    %369 = arith.divf %367, %368 : vector<2x32xf32>
    %370 = vector.extract_strided_slice %357 {offsets = [0, 64], sizes = [2, 32], strides = [1, 1]} : vector<2x128xf32> to vector<2x32xf32>
    %371 = math.tanh %370 : vector<2x32xf32>
    %372 = vector.extract_strided_slice %357 {offsets = [0, 96], sizes = [2, 32], strides = [1, 1]} : vector<2x128xf32> to vector<2x32xf32>
    %373 = arith.negf %372 : vector<2x32xf32>
    %374 = math.exp %373 : vector<2x32xf32>
    %cst_104 = arith.constant 1.000000e+00 : f32
    %375 = vector.broadcast %cst_104 : f32 to vector<2x32xf32>
    %376 = arith.addf %375, %374 : vector<2x32xf32>
    %377 = arith.divf %375, %376 : vector<2x32xf32>
    %378 = arith.mulf %369, %350 : vector<2x32xf32>
    %379 = arith.mulf %363, %371 : vector<2x32xf32>
    %380 = arith.addf %378, %379 : vector<2x32xf32>
    %381 = math.tanh %380 : vector<2x32xf32>
    %382 = arith.mulf %377, %381 : vector<2x32xf32>
    %c6_105 = arith.constant 6 : index
    %c0_106 = arith.constant 0 : index
    %383 = vector.load %arg21[%c6_105, %c0_106] : memref<16x32xf32, #tpu.memory_space<vmem>>, vector<2x32xf32>
    tpu.vector_store %arg21[%c6_105, %c0_106], %382 {strides = array<i32>} : memref<16x32xf32, #tpu.memory_space<vmem>>, vector<2x32xf32>,
    %384 = vector.extract_strided_slice %263 {offsets = [8, 0], sizes = [2, 128], strides = [1, 1]} : vector<16x128xf32> to vector<2x128xf32>
    %c0_107 = arith.constant 0 : index
    %c0_108 = arith.constant 0 : index
    %385 = vector.load %arg7[%c0_107, %c0_108] : memref<32x128xf32, #tpu.memory_space<vmem>>, vector<32x128xf32>
    %cst_109 = arith.constant dense<0.000000e+00> : vector<2x128xf32>
    %386 = tpu.matmul %382, %385, %cst_109 {dimension_numbers = #tpu.dot_dimension_numbers<[1], [0], [0], [1], [0, 0, 1, 1], [], []>} : vector<2x32xf32>, vector<32x128xf32>, vector<2x128xf32> -> vector<2x128xf32>
    %387 = arith.addf %384, %386 : vector<2x128xf32>
    %388 = vector.extract_strided_slice %387 {offsets = [0, 0], sizes = [2, 32], strides = [1, 1]} : vector<2x128xf32> to vector<2x32xf32>
    %389 = arith.negf %388 : vector<2x32xf32>
    %390 = math.exp %389 : vector<2x32xf32>
    %cst_110 = arith.constant 1.000000e+00 : f32
    %391 = vector.broadcast %cst_110 : f32 to vector<2x32xf32>
    %392 = arith.addf %391, %390 : vector<2x32xf32>
    %393 = arith.divf %391, %392 : vector<2x32xf32>
    %394 = vector.extract_strided_slice %387 {offsets = [0, 32], sizes = [2, 32], strides = [1, 1]} : vector<2x128xf32> to vector<2x32xf32>
    %395 = arith.negf %394 : vector<2x32xf32>
    %396 = math.exp %395 : vector<2x32xf32>
    %cst_111 = arith.constant 1.000000e+00 : f32
    %397 = vector.broadcast %cst_111 : f32 to vector<2x32xf32>
    %398 = arith.addf %397, %396 : vector<2x32xf32>
    %399 = arith.divf %397, %398 : vector<2x32xf32>
    %400 = vector.extract_strided_slice %387 {offsets = [0, 64], sizes = [2, 32], strides = [1, 1]} : vector<2x128xf32> to vector<2x32xf32>
    %401 = math.tanh %400 : vector<2x32xf32>
    %402 = vector.extract_strided_slice %387 {offsets = [0, 96], sizes = [2, 32], strides = [1, 1]} : vector<2x128xf32> to vector<2x32xf32>
    %403 = arith.negf %402 : vector<2x32xf32>
    %404 = math.exp %403 : vector<2x32xf32>
    %cst_112 = arith.constant 1.000000e+00 : f32
    %405 = vector.broadcast %cst_112 : f32 to vector<2x32xf32>
    %406 = arith.addf %405, %404 : vector<2x32xf32>
    %407 = arith.divf %405, %406 : vector<2x32xf32>
    %408 = arith.mulf %399, %380 : vector<2x32xf32>
    %409 = arith.mulf %393, %401 : vector<2x32xf32>
    %410 = arith.addf %408, %409 : vector<2x32xf32>
    %411 = math.tanh %410 : vector<2x32xf32>
    %412 = arith.mulf %407, %411 : vector<2x32xf32>
    %c8_113 = arith.constant 8 : index
    %c0_114 = arith.constant 0 : index
    %413 = vector.load %arg21[%c8_113, %c0_114] : memref<16x32xf32, #tpu.memory_space<vmem>>, vector<2x32xf32>
    tpu.vector_store %arg21[%c8_113, %c0_114], %412 {strides = array<i32>} : memref<16x32xf32, #tpu.memory_space<vmem>>, vector<2x32xf32>,
    %414 = vector.extract_strided_slice %263 {offsets = [10, 0], sizes = [2, 128], strides = [1, 1]} : vector<16x128xf32> to vector<2x128xf32>
    %c0_115 = arith.constant 0 : index
    %c0_116 = arith.constant 0 : index
    %415 = vector.load %arg7[%c0_115, %c0_116] : memref<32x128xf32, #tpu.memory_space<vmem>>, vector<32x128xf32>
    %cst_117 = arith.constant dense<0.000000e+00> : vector<2x128xf32>
    %416 = tpu.matmul %412, %415, %cst_117 {dimension_numbers = #tpu.dot_dimension_numbers<[1], [0], [0], [1], [0, 0, 1, 1], [], []>} : vector<2x32xf32>, vector<32x128xf32>, vector<2x128xf32> -> vector<2x128xf32>
    %417 = arith.addf %414, %416 : vector<2x128xf32>
    %418 = vector.extract_strided_slice %417 {offsets = [0, 0], sizes = [2, 32], strides = [1, 1]} : vector<2x128xf32> to vector<2x32xf32>
    %419 = arith.negf %418 : vector<2x32xf32>
    %420 = math.exp %419 : vector<2x32xf32>
    %cst_118 = arith.constant 1.000000e+00 : f32
    %421 = vector.broadcast %cst_118 : f32 to vector<2x32xf32>
    %422 = arith.addf %421, %420 : vector<2x32xf32>
    %423 = arith.divf %421, %422 : vector<2x32xf32>
    %424 = vector.extract_strided_slice %417 {offsets = [0, 32], sizes = [2, 32], strides = [1, 1]} : vector<2x128xf32> to vector<2x32xf32>
    %425 = arith.negf %424 : vector<2x32xf32>
    %426 = math.exp %425 : vector<2x32xf32>
    %cst_119 = arith.constant 1.000000e+00 : f32
    %427 = vector.broadcast %cst_119 : f32 to vector<2x32xf32>
    %428 = arith.addf %427, %426 : vector<2x32xf32>
    %429 = arith.divf %427, %428 : vector<2x32xf32>
    %430 = vector.extract_strided_slice %417 {offsets = [0, 64], sizes = [2, 32], strides = [1, 1]} : vector<2x128xf32> to vector<2x32xf32>
    %431 = math.tanh %430 : vector<2x32xf32>
    %432 = vector.extract_strided_slice %417 {offsets = [0, 96], sizes = [2, 32], strides = [1, 1]} : vector<2x128xf32> to vector<2x32xf32>
    %433 = arith.negf %432 : vector<2x32xf32>
    %434 = math.exp %433 : vector<2x32xf32>
    %cst_120 = arith.constant 1.000000e+00 : f32
    %435 = vector.broadcast %cst_120 : f32 to vector<2x32xf32>
    %436 = arith.addf %435, %434 : vector<2x32xf32>
    %437 = arith.divf %435, %436 : vector<2x32xf32>
    %438 = arith.mulf %429, %410 : vector<2x32xf32>
    %439 = arith.mulf %423, %431 : vector<2x32xf32>
    %440 = arith.addf %438, %439 : vector<2x32xf32>
    %441 = math.tanh %440 : vector<2x32xf32>
    %442 = arith.mulf %437, %441 : vector<2x32xf32>
    %c10_121 = arith.constant 10 : index
    %c0_122 = arith.constant 0 : index
    %443 = vector.load %arg21[%c10_121, %c0_122] : memref<16x32xf32, #tpu.memory_space<vmem>>, vector<2x32xf32>
    tpu.vector_store %arg21[%c10_121, %c0_122], %442 {strides = array<i32>} : memref<16x32xf32, #tpu.memory_space<vmem>>, vector<2x32xf32>,
    %444 = vector.extract_strided_slice %263 {offsets = [12, 0], sizes = [2, 128], strides = [1, 1]} : vector<16x128xf32> to vector<2x128xf32>
    %c0_123 = arith.constant 0 : index
    %c0_124 = arith.constant 0 : index
    %445 = vector.load %arg7[%c0_123, %c0_124] : memref<32x128xf32, #tpu.memory_space<vmem>>, vector<32x128xf32>
    %cst_125 = arith.constant dense<0.000000e+00> : vector<2x128xf32>
    %446 = tpu.matmul %442, %445, %cst_125 {dimension_numbers = #tpu.dot_dimension_numbers<[1], [0], [0], [1], [0, 0, 1, 1], [], []>} : vector<2x32xf32>, vector<32x128xf32>, vector<2x128xf32> -> vector<2x128xf32>
    %447 = arith.addf %444, %446 : vector<2x128xf32>
    %448 = vector.extract_strided_slice %447 {offsets = [0, 0], sizes = [2, 32], strides = [1, 1]} : vector<2x128xf32> to vector<2x32xf32>
    %449 = arith.negf %448 : vector<2x32xf32>
    %450 = math.exp %449 : vector<2x32xf32>
    %cst_126 = arith.constant 1.000000e+00 : f32
    %451 = vector.broadcast %cst_126 : f32 to vector<2x32xf32>
    %452 = arith.addf %451, %450 : vector<2x32xf32>
    %453 = arith.divf %451, %452 : vector<2x32xf32>
    %454 = vector.extract_strided_slice %447 {offsets = [0, 32], sizes = [2, 32], strides = [1, 1]} : vector<2x128xf32> to vector<2x32xf32>
    %455 = arith.negf %454 : vector<2x32xf32>
    %456 = math.exp %455 : vector<2x32xf32>
    %cst_127 = arith.constant 1.000000e+00 : f32
    %457 = vector.broadcast %cst_127 : f32 to vector<2x32xf32>
    %458 = arith.addf %457, %456 : vector<2x32xf32>
    %459 = arith.divf %457, %458 : vector<2x32xf32>
    %460 = vector.extract_strided_slice %447 {offsets = [0, 64], sizes = [2, 32], strides = [1, 1]} : vector<2x128xf32> to vector<2x32xf32>
    %461 = math.tanh %460 : vector<2x32xf32>
    %462 = vector.extract_strided_slice %447 {offsets = [0, 96], sizes = [2, 32], strides = [1, 1]} : vector<2x128xf32> to vector<2x32xf32>
    %463 = arith.negf %462 : vector<2x32xf32>
    %464 = math.exp %463 : vector<2x32xf32>
    %cst_128 = arith.constant 1.000000e+00 : f32
    %465 = vector.broadcast %cst_128 : f32 to vector<2x32xf32>
    %466 = arith.addf %465, %464 : vector<2x32xf32>
    %467 = arith.divf %465, %466 : vector<2x32xf32>
    %468 = arith.mulf %459, %440 : vector<2x32xf32>
    %469 = arith.mulf %453, %461 : vector<2x32xf32>
    %470 = arith.addf %468, %469 : vector<2x32xf32>
    %471 = math.tanh %470 : vector<2x32xf32>
    %472 = arith.mulf %467, %471 : vector<2x32xf32>
    %c12_129 = arith.constant 12 : index
    %c0_130 = arith.constant 0 : index
    %473 = vector.load %arg21[%c12_129, %c0_130] : memref<16x32xf32, #tpu.memory_space<vmem>>, vector<2x32xf32>
    tpu.vector_store %arg21[%c12_129, %c0_130], %472 {strides = array<i32>} : memref<16x32xf32, #tpu.memory_space<vmem>>, vector<2x32xf32>,
    %474 = vector.extract_strided_slice %263 {offsets = [14, 0], sizes = [2, 128], strides = [1, 1]} : vector<16x128xf32> to vector<2x128xf32>
    %c0_131 = arith.constant 0 : index
    %c0_132 = arith.constant 0 : index
    %475 = vector.load %arg7[%c0_131, %c0_132] : memref<32x128xf32, #tpu.memory_space<vmem>>, vector<32x128xf32>
    %cst_133 = arith.constant dense<0.000000e+00> : vector<2x128xf32>
    %476 = tpu.matmul %472, %475, %cst_133 {dimension_numbers = #tpu.dot_dimension_numbers<[1], [0], [0], [1], [0, 0, 1, 1], [], []>} : vector<2x32xf32>, vector<32x128xf32>, vector<2x128xf32> -> vector<2x128xf32>
    %477 = arith.addf %474, %476 : vector<2x128xf32>
    %478 = vector.extract_strided_slice %477 {offsets = [0, 0], sizes = [2, 32], strides = [1, 1]} : vector<2x128xf32> to vector<2x32xf32>
    %479 = arith.negf %478 : vector<2x32xf32>
    %480 = math.exp %479 : vector<2x32xf32>
    %cst_134 = arith.constant 1.000000e+00 : f32
    %481 = vector.broadcast %cst_134 : f32 to vector<2x32xf32>
    %482 = arith.addf %481, %480 : vector<2x32xf32>
    %483 = arith.divf %481, %482 : vector<2x32xf32>
    %484 = vector.extract_strided_slice %477 {offsets = [0, 32], sizes = [2, 32], strides = [1, 1]} : vector<2x128xf32> to vector<2x32xf32>
    %485 = arith.negf %484 : vector<2x32xf32>
    %486 = math.exp %485 : vector<2x32xf32>
    %cst_135 = arith.constant 1.000000e+00 : f32
    %487 = vector.broadcast %cst_135 : f32 to vector<2x32xf32>
    %488 = arith.addf %487, %486 : vector<2x32xf32>
    %489 = arith.divf %487, %488 : vector<2x32xf32>
    %490 = vector.extract_strided_slice %477 {offsets = [0, 64], sizes = [2, 32], strides = [1, 1]} : vector<2x128xf32> to vector<2x32xf32>
    %491 = math.tanh %490 : vector<2x32xf32>
    %492 = vector.extract_strided_slice %477 {offsets = [0, 96], sizes = [2, 32], strides = [1, 1]} : vector<2x128xf32> to vector<2x32xf32>
    %493 = arith.negf %492 : vector<2x32xf32>
    %494 = math.exp %493 : vector<2x32xf32>
    %cst_136 = arith.constant 1.000000e+00 : f32
    %495 = vector.broadcast %cst_136 : f32 to vector<2x32xf32>
    %496 = arith.addf %495, %494 : vector<2x32xf32>
    %497 = arith.divf %495, %496 : vector<2x32xf32>
    %498 = arith.mulf %489, %470 : vector<2x32xf32>
    %499 = arith.mulf %483, %491 : vector<2x32xf32>
    %500 = arith.addf %498, %499 : vector<2x32xf32>
    %501 = math.tanh %500 : vector<2x32xf32>
    %502 = arith.mulf %497, %501 : vector<2x32xf32>
    %c14_137 = arith.constant 14 : index
    %c0_138 = arith.constant 0 : index
    %503 = vector.load %arg21[%c14_137, %c0_138] : memref<16x32xf32, #tpu.memory_space<vmem>>, vector<2x32xf32>
    tpu.vector_store %arg21[%c14_137, %c0_138], %502 {strides = array<i32>} : memref<16x32xf32, #tpu.memory_space<vmem>>, vector<2x32xf32>,
    %c0_139 = arith.constant 0 : index
    %c0_140 = arith.constant 0 : index
    %504 = vector.load %arg21[%c0_139, %c0_140] : memref<16x32xf32, #tpu.memory_space<vmem>>, vector<16x32xf32>
    %c0_141 = arith.constant 0 : index
    %c0_142 = arith.constant 0 : index
    %505 = vector.load %arg9[%c0_141, %c0_142] : memref<32x128xf32, #tpu.memory_space<vmem>>, vector<32x128xf32>
    %cst_143 = arith.constant dense<0.000000e+00> : vector<16x128xf32>
    %506 = tpu.matmul %504, %505, %cst_143 {dimension_numbers = #tpu.dot_dimension_numbers<[1], [0], [0], [1], [0, 0, 1, 1], [], []>} : vector<16x32xf32>, vector<32x128xf32>, vector<16x128xf32> -> vector<16x128xf32>
    %c0_144 = arith.constant 0 : index
    %c0_145 = arith.constant 0 : index
    %507 = vector.load %arg11[%c0_144, %c0_145] : memref<1x128xf32, #tpu.memory_space<vmem>>, vector<1x128xf32>
    %508 = vector.broadcast %507 : vector<1x128xf32> to vector<16x128xf32>
    %509 = arith.addf %506, %508 : vector<16x128xf32>
    %510 = vector.extract_strided_slice %509 {offsets = [0, 0], sizes = [2, 128], strides = [1, 1]} : vector<16x128xf32> to vector<2x128xf32>
    %c0_146 = arith.constant 0 : index
    %c0_147 = arith.constant 0 : index
    %511 = vector.load %arg10[%c0_146, %c0_147] : memref<32x128xf32, #tpu.memory_space<vmem>>, vector<32x128xf32>
    %cst_148 = arith.constant dense<0.000000e+00> : vector<2x128xf32>
    %512 = tpu.matmul %7, %511, %cst_148 {dimension_numbers = #tpu.dot_dimension_numbers<[1], [0], [0], [1], [0, 0, 1, 1], [], []>} : vector<2x32xf32>, vector<32x128xf32>, vector<2x128xf32> -> vector<2x128xf32>
    %513 = arith.addf %510, %512 : vector<2x128xf32>
    %514 = vector.extract_strided_slice %513 {offsets = [0, 0], sizes = [2, 32], strides = [1, 1]} : vector<2x128xf32> to vector<2x32xf32>
    %515 = arith.negf %514 : vector<2x32xf32>
    %516 = math.exp %515 : vector<2x32xf32>
    %cst_149 = arith.constant 1.000000e+00 : f32
    %517 = vector.broadcast %cst_149 : f32 to vector<2x32xf32>
    %518 = arith.addf %517, %516 : vector<2x32xf32>
    %519 = arith.divf %517, %518 : vector<2x32xf32>
    %520 = vector.extract_strided_slice %513 {offsets = [0, 32], sizes = [2, 32], strides = [1, 1]} : vector<2x128xf32> to vector<2x32xf32>
    %521 = arith.negf %520 : vector<2x32xf32>
    %522 = math.exp %521 : vector<2x32xf32>
    %cst_150 = arith.constant 1.000000e+00 : f32
    %523 = vector.broadcast %cst_150 : f32 to vector<2x32xf32>
    %524 = arith.addf %523, %522 : vector<2x32xf32>
    %525 = arith.divf %523, %524 : vector<2x32xf32>
    %526 = vector.extract_strided_slice %513 {offsets = [0, 64], sizes = [2, 32], strides = [1, 1]} : vector<2x128xf32> to vector<2x32xf32>
    %527 = math.tanh %526 : vector<2x32xf32>
    %528 = vector.extract_strided_slice %513 {offsets = [0, 96], sizes = [2, 32], strides = [1, 1]} : vector<2x128xf32> to vector<2x32xf32>
    %529 = arith.negf %528 : vector<2x32xf32>
    %530 = math.exp %529 : vector<2x32xf32>
    %cst_151 = arith.constant 1.000000e+00 : f32
    %531 = vector.broadcast %cst_151 : f32 to vector<2x32xf32>
    %532 = arith.addf %531, %530 : vector<2x32xf32>
    %533 = arith.divf %531, %532 : vector<2x32xf32>
    %534 = arith.mulf %525, %10 : vector<2x32xf32>
    %535 = arith.mulf %519, %527 : vector<2x32xf32>
    %536 = arith.addf %534, %535 : vector<2x32xf32>
    %537 = math.tanh %536 : vector<2x32xf32>
    %538 = arith.mulf %533, %537 : vector<2x32xf32>
    %c0_152 = arith.constant 0 : index
    %c0_153 = arith.constant 0 : index
    %539 = vector.load %arg21[%c0_152, %c0_153] : memref<16x32xf32, #tpu.memory_space<vmem>>, vector<2x32xf32>
    tpu.vector_store %arg21[%c0_152, %c0_153], %538 {strides = array<i32>} : memref<16x32xf32, #tpu.memory_space<vmem>>, vector<2x32xf32>,
    %540 = vector.extract_strided_slice %509 {offsets = [2, 0], sizes = [2, 128], strides = [1, 1]} : vector<16x128xf32> to vector<2x128xf32>
    %c0_154 = arith.constant 0 : index
    %c0_155 = arith.constant 0 : index
    %541 = vector.load %arg10[%c0_154, %c0_155] : memref<32x128xf32, #tpu.memory_space<vmem>>, vector<32x128xf32>
    %cst_156 = arith.constant dense<0.000000e+00> : vector<2x128xf32>
    %542 = tpu.matmul %538, %541, %cst_156 {dimension_numbers = #tpu.dot_dimension_numbers<[1], [0], [0], [1], [0, 0, 1, 1], [], []>} : vector<2x32xf32>, vector<32x128xf32>, vector<2x128xf32> -> vector<2x128xf32>
    %543 = arith.addf %540, %542 : vector<2x128xf32>
    %544 = vector.extract_strided_slice %543 {offsets = [0, 0], sizes = [2, 32], strides = [1, 1]} : vector<2x128xf32> to vector<2x32xf32>
    %545 = arith.negf %544 : vector<2x32xf32>
    %546 = math.exp %545 : vector<2x32xf32>
    %cst_157 = arith.constant 1.000000e+00 : f32
    %547 = vector.broadcast %cst_157 : f32 to vector<2x32xf32>
    %548 = arith.addf %547, %546 : vector<2x32xf32>
    %549 = arith.divf %547, %548 : vector<2x32xf32>
    %550 = vector.extract_strided_slice %543 {offsets = [0, 32], sizes = [2, 32], strides = [1, 1]} : vector<2x128xf32> to vector<2x32xf32>
    %551 = arith.negf %550 : vector<2x32xf32>
    %552 = math.exp %551 : vector<2x32xf32>
    %cst_158 = arith.constant 1.000000e+00 : f32
    %553 = vector.broadcast %cst_158 : f32 to vector<2x32xf32>
    %554 = arith.addf %553, %552 : vector<2x32xf32>
    %555 = arith.divf %553, %554 : vector<2x32xf32>
    %556 = vector.extract_strided_slice %543 {offsets = [0, 64], sizes = [2, 32], strides = [1, 1]} : vector<2x128xf32> to vector<2x32xf32>
    %557 = math.tanh %556 : vector<2x32xf32>
    %558 = vector.extract_strided_slice %543 {offsets = [0, 96], sizes = [2, 32], strides = [1, 1]} : vector<2x128xf32> to vector<2x32xf32>
    %559 = arith.negf %558 : vector<2x32xf32>
    %560 = math.exp %559 : vector<2x32xf32>
    %cst_159 = arith.constant 1.000000e+00 : f32
    %561 = vector.broadcast %cst_159 : f32 to vector<2x32xf32>
    %562 = arith.addf %561, %560 : vector<2x32xf32>
    %563 = arith.divf %561, %562 : vector<2x32xf32>
    %564 = arith.mulf %555, %536 : vector<2x32xf32>
    %565 = arith.mulf %549, %557 : vector<2x32xf32>
    %566 = arith.addf %564, %565 : vector<2x32xf32>
    %567 = math.tanh %566 : vector<2x32xf32>
    %568 = arith.mulf %563, %567 : vector<2x32xf32>
    %c2_160 = arith.constant 2 : index
    %c0_161 = arith.constant 0 : index
    %569 = vector.load %arg21[%c2_160, %c0_161] : memref<16x32xf32, #tpu.memory_space<vmem>>, vector<2x32xf32>
    tpu.vector_store %arg21[%c2_160, %c0_161], %568 {strides = array<i32>} : memref<16x32xf32, #tpu.memory_space<vmem>>, vector<2x32xf32>,
    %570 = vector.extract_strided_slice %509 {offsets = [4, 0], sizes = [2, 128], strides = [1, 1]} : vector<16x128xf32> to vector<2x128xf32>
    %c0_162 = arith.constant 0 : index
    %c0_163 = arith.constant 0 : index
    %571 = vector.load %arg10[%c0_162, %c0_163] : memref<32x128xf32, #tpu.memory_space<vmem>>, vector<32x128xf32>
    %cst_164 = arith.constant dense<0.000000e+00> : vector<2x128xf32>
    %572 = tpu.matmul %568, %571, %cst_164 {dimension_numbers = #tpu.dot_dimension_numbers<[1], [0], [0], [1], [0, 0, 1, 1], [], []>} : vector<2x32xf32>, vector<32x128xf32>, vector<2x128xf32> -> vector<2x128xf32>
    %573 = arith.addf %570, %572 : vector<2x128xf32>
    %574 = vector.extract_strided_slice %573 {offsets = [0, 0], sizes = [2, 32], strides = [1, 1]} : vector<2x128xf32> to vector<2x32xf32>
    %575 = arith.negf %574 : vector<2x32xf32>
    %576 = math.exp %575 : vector<2x32xf32>
    %cst_165 = arith.constant 1.000000e+00 : f32
    %577 = vector.broadcast %cst_165 : f32 to vector<2x32xf32>
    %578 = arith.addf %577, %576 : vector<2x32xf32>
    %579 = arith.divf %577, %578 : vector<2x32xf32>
    %580 = vector.extract_strided_slice %573 {offsets = [0, 32], sizes = [2, 32], strides = [1, 1]} : vector<2x128xf32> to vector<2x32xf32>
    %581 = arith.negf %580 : vector<2x32xf32>
    %582 = math.exp %581 : vector<2x32xf32>
    %cst_166 = arith.constant 1.000000e+00 : f32
    %583 = vector.broadcast %cst_166 : f32 to vector<2x32xf32>
    %584 = arith.addf %583, %582 : vector<2x32xf32>
    %585 = arith.divf %583, %584 : vector<2x32xf32>
    %586 = vector.extract_strided_slice %573 {offsets = [0, 64], sizes = [2, 32], strides = [1, 1]} : vector<2x128xf32> to vector<2x32xf32>
    %587 = math.tanh %586 : vector<2x32xf32>
    %588 = vector.extract_strided_slice %573 {offsets = [0, 96], sizes = [2, 32], strides = [1, 1]} : vector<2x128xf32> to vector<2x32xf32>
    %589 = arith.negf %588 : vector<2x32xf32>
    %590 = math.exp %589 : vector<2x32xf32>
    %cst_167 = arith.constant 1.000000e+00 : f32
    %591 = vector.broadcast %cst_167 : f32 to vector<2x32xf32>
    %592 = arith.addf %591, %590 : vector<2x32xf32>
    %593 = arith.divf %591, %592 : vector<2x32xf32>
    %594 = arith.mulf %585, %566 : vector<2x32xf32>
    %595 = arith.mulf %579, %587 : vector<2x32xf32>
    %596 = arith.addf %594, %595 : vector<2x32xf32>
    %597 = math.tanh %596 : vector<2x32xf32>
    %598 = arith.mulf %593, %597 : vector<2x32xf32>
    %c4_168 = arith.constant 4 : index
    %c0_169 = arith.constant 0 : index
    %599 = vector.load %arg21[%c4_168, %c0_169] : memref<16x32xf32, #tpu.memory_space<vmem>>, vector<2x32xf32>
    tpu.vector_store %arg21[%c4_168, %c0_169], %598 {strides = array<i32>} : memref<16x32xf32, #tpu.memory_space<vmem>>, vector<2x32xf32>,
    %600 = vector.extract_strided_slice %509 {offsets = [6, 0], sizes = [2, 128], strides = [1, 1]} : vector<16x128xf32> to vector<2x128xf32>
    %c0_170 = arith.constant 0 : index
    %c0_171 = arith.constant 0 : index
    %601 = vector.load %arg10[%c0_170, %c0_171] : memref<32x128xf32, #tpu.memory_space<vmem>>, vector<32x128xf32>
    %cst_172 = arith.constant dense<0.000000e+00> : vector<2x128xf32>
    %602 = tpu.matmul %598, %601, %cst_172 {dimension_numbers = #tpu.dot_dimension_numbers<[1], [0], [0], [1], [0, 0, 1, 1], [], []>} : vector<2x32xf32>, vector<32x128xf32>, vector<2x128xf32> -> vector<2x128xf32>
    %603 = arith.addf %600, %602 : vector<2x128xf32>
    %604 = vector.extract_strided_slice %603 {offsets = [0, 0], sizes = [2, 32], strides = [1, 1]} : vector<2x128xf32> to vector<2x32xf32>
    %605 = arith.negf %604 : vector<2x32xf32>
    %606 = math.exp %605 : vector<2x32xf32>
    %cst_173 = arith.constant 1.000000e+00 : f32
    %607 = vector.broadcast %cst_173 : f32 to vector<2x32xf32>
    %608 = arith.addf %607, %606 : vector<2x32xf32>
    %609 = arith.divf %607, %608 : vector<2x32xf32>
    %610 = vector.extract_strided_slice %603 {offsets = [0, 32], sizes = [2, 32], strides = [1, 1]} : vector<2x128xf32> to vector<2x32xf32>
    %611 = arith.negf %610 : vector<2x32xf32>
    %612 = math.exp %611 : vector<2x32xf32>
    %cst_174 = arith.constant 1.000000e+00 : f32
    %613 = vector.broadcast %cst_174 : f32 to vector<2x32xf32>
    %614 = arith.addf %613, %612 : vector<2x32xf32>
    %615 = arith.divf %613, %614 : vector<2x32xf32>
    %616 = vector.extract_strided_slice %603 {offsets = [0, 64], sizes = [2, 32], strides = [1, 1]} : vector<2x128xf32> to vector<2x32xf32>
    %617 = math.tanh %616 : vector<2x32xf32>
    %618 = vector.extract_strided_slice %603 {offsets = [0, 96], sizes = [2, 32], strides = [1, 1]} : vector<2x128xf32> to vector<2x32xf32>
    %619 = arith.negf %618 : vector<2x32xf32>
    %620 = math.exp %619 : vector<2x32xf32>
    %cst_175 = arith.constant 1.000000e+00 : f32
    %621 = vector.broadcast %cst_175 : f32 to vector<2x32xf32>
    %622 = arith.addf %621, %620 : vector<2x32xf32>
    %623 = arith.divf %621, %622 : vector<2x32xf32>
    %624 = arith.mulf %615, %596 : vector<2x32xf32>
    %625 = arith.mulf %609, %617 : vector<2x32xf32>
    %626 = arith.addf %624, %625 : vector<2x32xf32>
    %627 = math.tanh %626 : vector<2x32xf32>
    %628 = arith.mulf %623, %627 : vector<2x32xf32>
    %c6_176 = arith.constant 6 : index
    %c0_177 = arith.constant 0 : index
    %629 = vector.load %arg21[%c6_176, %c0_177] : memref<16x32xf32, #tpu.memory_space<vmem>>, vector<2x32xf32>
    tpu.vector_store %arg21[%c6_176, %c0_177], %628 {strides = array<i32>} : memref<16x32xf32, #tpu.memory_space<vmem>>, vector<2x32xf32>,
    %630 = vector.extract_strided_slice %509 {offsets = [8, 0], sizes = [2, 128], strides = [1, 1]} : vector<16x128xf32> to vector<2x128xf32>
    %c0_178 = arith.constant 0 : index
    %c0_179 = arith.constant 0 : index
    %631 = vector.load %arg10[%c0_178, %c0_179] : memref<32x128xf32, #tpu.memory_space<vmem>>, vector<32x128xf32>
    %cst_180 = arith.constant dense<0.000000e+00> : vector<2x128xf32>
    %632 = tpu.matmul %628, %631, %cst_180 {dimension_numbers = #tpu.dot_dimension_numbers<[1], [0], [0], [1], [0, 0, 1, 1], [], []>} : vector<2x32xf32>, vector<32x128xf32>, vector<2x128xf32> -> vector<2x128xf32>
    %633 = arith.addf %630, %632 : vector<2x128xf32>
    %634 = vector.extract_strided_slice %633 {offsets = [0, 0], sizes = [2, 32], strides = [1, 1]} : vector<2x128xf32> to vector<2x32xf32>
    %635 = arith.negf %634 : vector<2x32xf32>
    %636 = math.exp %635 : vector<2x32xf32>
    %cst_181 = arith.constant 1.000000e+00 : f32
    %637 = vector.broadcast %cst_181 : f32 to vector<2x32xf32>
    %638 = arith.addf %637, %636 : vector<2x32xf32>
    %639 = arith.divf %637, %638 : vector<2x32xf32>
    %640 = vector.extract_strided_slice %633 {offsets = [0, 32], sizes = [2, 32], strides = [1, 1]} : vector<2x128xf32> to vector<2x32xf32>
    %641 = arith.negf %640 : vector<2x32xf32>
    %642 = math.exp %641 : vector<2x32xf32>
    %cst_182 = arith.constant 1.000000e+00 : f32
    %643 = vector.broadcast %cst_182 : f32 to vector<2x32xf32>
    %644 = arith.addf %643, %642 : vector<2x32xf32>
    %645 = arith.divf %643, %644 : vector<2x32xf32>
    %646 = vector.extract_strided_slice %633 {offsets = [0, 64], sizes = [2, 32], strides = [1, 1]} : vector<2x128xf32> to vector<2x32xf32>
    %647 = math.tanh %646 : vector<2x32xf32>
    %648 = vector.extract_strided_slice %633 {offsets = [0, 96], sizes = [2, 32], strides = [1, 1]} : vector<2x128xf32> to vector<2x32xf32>
    %649 = arith.negf %648 : vector<2x32xf32>
    %650 = math.exp %649 : vector<2x32xf32>
    %cst_183 = arith.constant 1.000000e+00 : f32
    %651 = vector.broadcast %cst_183 : f32 to vector<2x32xf32>
    %652 = arith.addf %651, %650 : vector<2x32xf32>
    %653 = arith.divf %651, %652 : vector<2x32xf32>
    %654 = arith.mulf %645, %626 : vector<2x32xf32>
    %655 = arith.mulf %639, %647 : vector<2x32xf32>
    %656 = arith.addf %654, %655 : vector<2x32xf32>
    %657 = math.tanh %656 : vector<2x32xf32>
    %658 = arith.mulf %653, %657 : vector<2x32xf32>
    %c8_184 = arith.constant 8 : index
    %c0_185 = arith.constant 0 : index
    %659 = vector.load %arg21[%c8_184, %c0_185] : memref<16x32xf32, #tpu.memory_space<vmem>>, vector<2x32xf32>
    tpu.vector_store %arg21[%c8_184, %c0_185], %658 {strides = array<i32>} : memref<16x32xf32, #tpu.memory_space<vmem>>, vector<2x32xf32>,
    %660 = vector.extract_strided_slice %509 {offsets = [10, 0], sizes = [2, 128], strides = [1, 1]} : vector<16x128xf32> to vector<2x128xf32>
    %c0_186 = arith.constant 0 : index
    %c0_187 = arith.constant 0 : index
    %661 = vector.load %arg10[%c0_186, %c0_187] : memref<32x128xf32, #tpu.memory_space<vmem>>, vector<32x128xf32>
    %cst_188 = arith.constant dense<0.000000e+00> : vector<2x128xf32>
    %662 = tpu.matmul %658, %661, %cst_188 {dimension_numbers = #tpu.dot_dimension_numbers<[1], [0], [0], [1], [0, 0, 1, 1], [], []>} : vector<2x32xf32>, vector<32x128xf32>, vector<2x128xf32> -> vector<2x128xf32>
    %663 = arith.addf %660, %662 : vector<2x128xf32>
    %664 = vector.extract_strided_slice %663 {offsets = [0, 0], sizes = [2, 32], strides = [1, 1]} : vector<2x128xf32> to vector<2x32xf32>
    %665 = arith.negf %664 : vector<2x32xf32>
    %666 = math.exp %665 : vector<2x32xf32>
    %cst_189 = arith.constant 1.000000e+00 : f32
    %667 = vector.broadcast %cst_189 : f32 to vector<2x32xf32>
    %668 = arith.addf %667, %666 : vector<2x32xf32>
    %669 = arith.divf %667, %668 : vector<2x32xf32>
    %670 = vector.extract_strided_slice %663 {offsets = [0, 32], sizes = [2, 32], strides = [1, 1]} : vector<2x128xf32> to vector<2x32xf32>
    %671 = arith.negf %670 : vector<2x32xf32>
    %672 = math.exp %671 : vector<2x32xf32>
    %cst_190 = arith.constant 1.000000e+00 : f32
    %673 = vector.broadcast %cst_190 : f32 to vector<2x32xf32>
    %674 = arith.addf %673, %672 : vector<2x32xf32>
    %675 = arith.divf %673, %674 : vector<2x32xf32>
    %676 = vector.extract_strided_slice %663 {offsets = [0, 64], sizes = [2, 32], strides = [1, 1]} : vector<2x128xf32> to vector<2x32xf32>
    %677 = math.tanh %676 : vector<2x32xf32>
    %678 = vector.extract_strided_slice %663 {offsets = [0, 96], sizes = [2, 32], strides = [1, 1]} : vector<2x128xf32> to vector<2x32xf32>
    %679 = arith.negf %678 : vector<2x32xf32>
    %680 = math.exp %679 : vector<2x32xf32>
    %cst_191 = arith.constant 1.000000e+00 : f32
    %681 = vector.broadcast %cst_191 : f32 to vector<2x32xf32>
    %682 = arith.addf %681, %680 : vector<2x32xf32>
    %683 = arith.divf %681, %682 : vector<2x32xf32>
    %684 = arith.mulf %675, %656 : vector<2x32xf32>
    %685 = arith.mulf %669, %677 : vector<2x32xf32>
    %686 = arith.addf %684, %685 : vector<2x32xf32>
    %687 = math.tanh %686 : vector<2x32xf32>
    %688 = arith.mulf %683, %687 : vector<2x32xf32>
    %c10_192 = arith.constant 10 : index
    %c0_193 = arith.constant 0 : index
    %689 = vector.load %arg21[%c10_192, %c0_193] : memref<16x32xf32, #tpu.memory_space<vmem>>, vector<2x32xf32>
    tpu.vector_store %arg21[%c10_192, %c0_193], %688 {strides = array<i32>} : memref<16x32xf32, #tpu.memory_space<vmem>>, vector<2x32xf32>,
    %690 = vector.extract_strided_slice %509 {offsets = [12, 0], sizes = [2, 128], strides = [1, 1]} : vector<16x128xf32> to vector<2x128xf32>
    %c0_194 = arith.constant 0 : index
    %c0_195 = arith.constant 0 : index
    %691 = vector.load %arg10[%c0_194, %c0_195] : memref<32x128xf32, #tpu.memory_space<vmem>>, vector<32x128xf32>
    %cst_196 = arith.constant dense<0.000000e+00> : vector<2x128xf32>
    %692 = tpu.matmul %688, %691, %cst_196 {dimension_numbers = #tpu.dot_dimension_numbers<[1], [0], [0], [1], [0, 0, 1, 1], [], []>} : vector<2x32xf32>, vector<32x128xf32>, vector<2x128xf32> -> vector<2x128xf32>
    %693 = arith.addf %690, %692 : vector<2x128xf32>
    %694 = vector.extract_strided_slice %693 {offsets = [0, 0], sizes = [2, 32], strides = [1, 1]} : vector<2x128xf32> to vector<2x32xf32>
    %695 = arith.negf %694 : vector<2x32xf32>
    %696 = math.exp %695 : vector<2x32xf32>
    %cst_197 = arith.constant 1.000000e+00 : f32
    %697 = vector.broadcast %cst_197 : f32 to vector<2x32xf32>
    %698 = arith.addf %697, %696 : vector<2x32xf32>
    %699 = arith.divf %697, %698 : vector<2x32xf32>
    %700 = vector.extract_strided_slice %693 {offsets = [0, 32], sizes = [2, 32], strides = [1, 1]} : vector<2x128xf32> to vector<2x32xf32>
    %701 = arith.negf %700 : vector<2x32xf32>
    %702 = math.exp %701 : vector<2x32xf32>
    %cst_198 = arith.constant 1.000000e+00 : f32
    %703 = vector.broadcast %cst_198 : f32 to vector<2x32xf32>
    %704 = arith.addf %703, %702 : vector<2x32xf32>
    %705 = arith.divf %703, %704 : vector<2x32xf32>
    %706 = vector.extract_strided_slice %693 {offsets = [0, 64], sizes = [2, 32], strides = [1, 1]} : vector<2x128xf32> to vector<2x32xf32>
    %707 = math.tanh %706 : vector<2x32xf32>
    %708 = vector.extract_strided_slice %693 {offsets = [0, 96], sizes = [2, 32], strides = [1, 1]} : vector<2x128xf32> to vector<2x32xf32>
    %709 = arith.negf %708 : vector<2x32xf32>
    %710 = math.exp %709 : vector<2x32xf32>
    %cst_199 = arith.constant 1.000000e+00 : f32
    %711 = vector.broadcast %cst_199 : f32 to vector<2x32xf32>
    %712 = arith.addf %711, %710 : vector<2x32xf32>
    %713 = arith.divf %711, %712 : vector<2x32xf32>
    %714 = arith.mulf %705, %686 : vector<2x32xf32>
    %715 = arith.mulf %699, %707 : vector<2x32xf32>
    %716 = arith.addf %714, %715 : vector<2x32xf32>
    %717 = math.tanh %716 : vector<2x32xf32>
    %718 = arith.mulf %713, %717 : vector<2x32xf32>
    %c12_200 = arith.constant 12 : index
    %c0_201 = arith.constant 0 : index
    %719 = vector.load %arg21[%c12_200, %c0_201] : memref<16x32xf32, #tpu.memory_space<vmem>>, vector<2x32xf32>
    tpu.vector_store %arg21[%c12_200, %c0_201], %718 {strides = array<i32>} : memref<16x32xf32, #tpu.memory_space<vmem>>, vector<2x32xf32>,
    %720 = vector.extract_strided_slice %509 {offsets = [14, 0], sizes = [2, 128], strides = [1, 1]} : vector<16x128xf32> to vector<2x128xf32>
    %c0_202 = arith.constant 0 : index
    %c0_203 = arith.constant 0 : index
    %721 = vector.load %arg10[%c0_202, %c0_203] : memref<32x128xf32, #tpu.memory_space<vmem>>, vector<32x128xf32>
    %cst_204 = arith.constant dense<0.000000e+00> : vector<2x128xf32>
    %722 = tpu.matmul %718, %721, %cst_204 {dimension_numbers = #tpu.dot_dimension_numbers<[1], [0], [0], [1], [0, 0, 1, 1], [], []>} : vector<2x32xf32>, vector<32x128xf32>, vector<2x128xf32> -> vector<2x128xf32>
    %723 = arith.addf %720, %722 : vector<2x128xf32>
    %724 = vector.extract_strided_slice %723 {offsets = [0, 0], sizes = [2, 32], strides = [1, 1]} : vector<2x128xf32> to vector<2x32xf32>
    %725 = arith.negf %724 : vector<2x32xf32>
    %726 = math.exp %725 : vector<2x32xf32>
    %cst_205 = arith.constant 1.000000e+00 : f32
    %727 = vector.broadcast %cst_205 : f32 to vector<2x32xf32>
    %728 = arith.addf %727, %726 : vector<2x32xf32>
    %729 = arith.divf %727, %728 : vector<2x32xf32>
    %730 = vector.extract_strided_slice %723 {offsets = [0, 32], sizes = [2, 32], strides = [1, 1]} : vector<2x128xf32> to vector<2x32xf32>
    %731 = arith.negf %730 : vector<2x32xf32>
    %732 = math.exp %731 : vector<2x32xf32>
    %cst_206 = arith.constant 1.000000e+00 : f32
    %733 = vector.broadcast %cst_206 : f32 to vector<2x32xf32>
    %734 = arith.addf %733, %732 : vector<2x32xf32>
    %735 = arith.divf %733, %734 : vector<2x32xf32>
    %736 = vector.extract_strided_slice %723 {offsets = [0, 64], sizes = [2, 32], strides = [1, 1]} : vector<2x128xf32> to vector<2x32xf32>
    %737 = math.tanh %736 : vector<2x32xf32>
    %738 = vector.extract_strided_slice %723 {offsets = [0, 96], sizes = [2, 32], strides = [1, 1]} : vector<2x128xf32> to vector<2x32xf32>
    %739 = arith.negf %738 : vector<2x32xf32>
    %740 = math.exp %739 : vector<2x32xf32>
    %cst_207 = arith.constant 1.000000e+00 : f32
    %741 = vector.broadcast %cst_207 : f32 to vector<2x32xf32>
    %742 = arith.addf %741, %740 : vector<2x32xf32>
    %743 = arith.divf %741, %742 : vector<2x32xf32>
    %744 = arith.mulf %735, %716 : vector<2x32xf32>
    %745 = arith.mulf %729, %737 : vector<2x32xf32>
    %746 = arith.addf %744, %745 : vector<2x32xf32>
    %747 = math.tanh %746 : vector<2x32xf32>
    %748 = arith.mulf %743, %747 : vector<2x32xf32>
    %c14_208 = arith.constant 14 : index
    %c0_209 = arith.constant 0 : index
    %749 = vector.load %arg21[%c14_208, %c0_209] : memref<16x32xf32, #tpu.memory_space<vmem>>, vector<2x32xf32>
    tpu.vector_store %arg21[%c14_208, %c0_209], %748 {strides = array<i32>} : memref<16x32xf32, #tpu.memory_space<vmem>>, vector<2x32xf32>,
    %c0_210 = arith.constant 0 : index
    %c0_211 = arith.constant 0 : index
    %750 = vector.load %arg21[%c0_210, %c0_211] : memref<16x32xf32, #tpu.memory_space<vmem>>, vector<16x32xf32>
    %c0_212 = arith.constant 0 : index
    %c0_213 = arith.constant 0 : index
    %751 = vector.load %arg12[%c0_212, %c0_213] : memref<32x16xf32, #tpu.memory_space<vmem>>, vector<32x16xf32>
    %cst_214 = arith.constant dense<0.000000e+00> : vector<16x16xf32>
    %752 = tpu.matmul %750, %751, %cst_214 {dimension_numbers = #tpu.dot_dimension_numbers<[1], [0], [0], [1], [0, 0, 1, 1], [], []>} : vector<16x32xf32>, vector<32x16xf32>, vector<16x16xf32> -> vector<16x16xf32>
    %c0_215 = arith.constant 0 : index
    %c0_216 = arith.constant 0 : index
    %753 = vector.load %arg13[%c0_215, %c0_216] : memref<1x16xf32, #tpu.memory_space<vmem>>, vector<1x16xf32>
    %754 = vector.broadcast %753 : vector<1x16xf32> to vector<16x16xf32>
    %755 = arith.addf %752, %754 : vector<16x16xf32>
    %756 = vector.shape_cast %755 : vector<16x16xf32> to vector<8x2x16xf32>
    %cst_217 = arith.constant dense<0xFF800000> : vector<8x16xf32>
    %757 = vector.multi_reduction <maximumf>, %756, %cst_217 [1] : vector<8x2x16xf32> to vector<8x16xf32>
    %758 = vector.shape_cast %757 : vector<8x16xf32> to vector<8x1x16xf32>
    %759 = vector.broadcast %758 : vector<8x1x16xf32> to vector<8x2x16xf32>
    %760 = arith.subf %756, %759 : vector<8x2x16xf32>
    %761 = math.exp %760 : vector<8x2x16xf32>
    %cst_218 = arith.constant dense<0.000000e+00> : vector<8x16xf32>
    %762 = vector.multi_reduction <add>, %761, %cst_218 [1] : vector<8x2x16xf32> to vector<8x16xf32>
    %763 = vector.shape_cast %762 : vector<8x16xf32> to vector<8x1x16xf32>
    %764 = tpu.reciprocal %763 : vector<8x1x16xf32> -> vector<8x1x16xf32>
    %765 = vector.broadcast %764 : vector<8x1x16xf32> to vector<8x2x16xf32>
    %766 = arith.mulf %761, %765 : vector<8x2x16xf32>
    %c0_219 = arith.constant 0 : index
    %c0_220 = arith.constant 0 : index
    %c0_221 = arith.constant 0 : index
    %767 = vector.load %arg16[%c0_219, %c0_220, %c0_221] : memref<8x2x16xf32, #tpu.memory_space<vmem>>, vector<8x2x16xf32>
    tpu.vector_store %arg16[%c0_219, %c0_220, %c0_221], %766 {strides = array<i32>} : memref<8x2x16xf32, #tpu.memory_space<vmem>>, vector<8x2x16xf32>,
    %c0_222 = arith.constant 0 : index
    %c0_223 = arith.constant 0 : index
    %768 = vector.load %arg19[%c0_222, %c0_223] : memref<2x96xf32, #tpu.memory_space<vmem>>, vector<2x32xf32>
    tpu.vector_store %arg19[%c0_222, %c0_223], %256 {strides = array<i32>} : memref<2x96xf32, #tpu.memory_space<vmem>>, vector<2x32xf32>,
    %c0_224 = arith.constant 0 : index
    %c32 = arith.constant 32 : index
    %769 = vector.load %arg19[%c0_224, %c32] : memref<2x96xf32, #tpu.memory_space<vmem>>, vector<2x32xf32>
    tpu.vector_store %arg19[%c0_224, %c32], %502 {strides = array<i32>} : memref<2x96xf32, #tpu.memory_space<vmem>>, vector<2x32xf32>,
    %c0_225 = arith.constant 0 : index
    %c64 = arith.constant 64 : index
    %770 = vector.load %arg19[%c0_225, %c64] : memref<2x96xf32, #tpu.memory_space<vmem>>, vector<2x32xf32>
    tpu.vector_store %arg19[%c0_225, %c64], %748 {strides = array<i32>} : memref<2x96xf32, #tpu.memory_space<vmem>>, vector<2x32xf32>,
    %c0_226 = arith.constant 0 : index
    %c0_227 = arith.constant 0 : index
    %771 = vector.load %arg20[%c0_226, %c0_227] : memref<2x96xf32, #tpu.memory_space<vmem>>, vector<2x32xf32>
    tpu.vector_store %arg20[%c0_226, %c0_227], %254 {strides = array<i32>} : memref<2x96xf32, #tpu.memory_space<vmem>>, vector<2x32xf32>,
    %c0_228 = arith.constant 0 : index
    %c32_229 = arith.constant 32 : index
    %772 = vector.load %arg20[%c0_228, %c32_229] : memref<2x96xf32, #tpu.memory_space<vmem>>, vector<2x32xf32>
    tpu.vector_store %arg20[%c0_228, %c32_229], %500 {strides = array<i32>} : memref<2x96xf32, #tpu.memory_space<vmem>>, vector<2x32xf32>,
    %c0_230 = arith.constant 0 : index
    %c64_231 = arith.constant 64 : index
    %773 = vector.load %arg20[%c0_230, %c64_231] : memref<2x96xf32, #tpu.memory_space<vmem>>, vector<2x32xf32>
    tpu.vector_store %arg20[%c0_230, %c64_231], %746 {strides = array<i32>} : memref<2x96xf32, #tpu.memory_space<vmem>>, vector<2x32xf32>,
    %c1_i32 = arith.constant 1 : i32
    %774 = arith.cmpi eq, %arg1, %c1_i32 : i32
    %775 = arith.extui %774 : i1 to i32
    %c0_i32_232 = arith.constant 0 : i32
    %776 = arith.cmpi ne, %775, %c0_i32_232 : i32
    scf.if %776 {
      %c0_233 = arith.constant 0 : index
      %c0_234 = arith.constant 0 : index
      %777 = vector.load %arg19[%c0_233, %c0_234] : memref<2x96xf32, #tpu.memory_space<vmem>>, vector<2x96xf32>
      %c0_235 = arith.constant 0 : index
      %c0_236 = arith.constant 0 : index
      %778 = vector.load %arg17[%c0_235, %c0_236] : memref<2x96xf32, #tpu.memory_space<vmem>>, vector<2x96xf32>
      tpu.vector_store %arg17[%c0_235, %c0_236], %777 {strides = array<i32>} : memref<2x96xf32, #tpu.memory_space<vmem>>, vector<2x96xf32>,
      %c0_237 = arith.constant 0 : index
      %c0_238 = arith.constant 0 : index
      %779 = vector.load %arg20[%c0_237, %c0_238] : memref<2x96xf32, #tpu.memory_space<vmem>>, vector<2x96xf32>
      %c0_239 = arith.constant 0 : index
      %c0_240 = arith.constant 0 : index
      %780 = vector.load %arg18[%c0_239, %c0_240] : memref<2x96xf32, #tpu.memory_space<vmem>>, vector<2x96xf32>
      tpu.vector_store %arg18[%c0_239, %c0_240], %779 {strides = array<i32>} : memref<2x96xf32, #tpu.memory_space<vmem>>, vector<2x96xf32>,
    } else {
    }
    return
  }
  func.func @transform_0(%arg0: i32, %arg1: i32) -> (i32, i32, i32) {
    %c0_i32 = arith.constant 0 : i32
    %c0_i32_0 = arith.constant 0 : i32
    return %arg1, %arg0, %c0_i32 : i32, i32, i32
  }
  func.func @transform_1(%arg0: i32, %arg1: i32) -> (i32, i32) {
    %c0_i32 = arith.constant 0 : i32
    %c0_i32_0 = arith.constant 0 : i32
    %c0_i32_1 = arith.constant 0 : i32
    return %c0_i32, %c0_i32_0 : i32, i32
  }
  func.func @transform_2(%arg0: i32, %arg1: i32) -> (i32, i32) {
    %c0_i32 = arith.constant 0 : i32
    %c0_i32_0 = arith.constant 0 : i32
    %c0_i32_1 = arith.constant 0 : i32
    return %c0_i32, %c0_i32_0 : i32, i32
  }
  func.func @transform_3(%arg0: i32, %arg1: i32) -> (i32, i32) {
    %c0_i32 = arith.constant 0 : i32
    %c0_i32_0 = arith.constant 0 : i32
    %c0_i32_1 = arith.constant 0 : i32
    return %c0_i32, %c0_i32_0 : i32, i32
  }
  func.func @transform_4(%arg0: i32, %arg1: i32) -> (i32, i32) {
    %c0_i32 = arith.constant 0 : i32
    %c0_i32_0 = arith.constant 0 : i32
    %c0_i32_1 = arith.constant 0 : i32
    return %c0_i32, %c0_i32_0 : i32, i32
  }
  func.func @transform_5(%arg0: i32, %arg1: i32) -> (i32, i32) {
    %c0_i32 = arith.constant 0 : i32
    %c0_i32_0 = arith.constant 0 : i32
    %c0_i32_1 = arith.constant 0 : i32
    return %c0_i32, %c0_i32_0 : i32, i32
  }
  func.func @transform_6(%arg0: i32, %arg1: i32) -> (i32, i32) {
    %c0_i32 = arith.constant 0 : i32
    %c0_i32_0 = arith.constant 0 : i32
    %c0_i32_1 = arith.constant 0 : i32
    return %c0_i32, %c0_i32_0 : i32, i32
  }
  func.func @transform_7(%arg0: i32, %arg1: i32) -> (i32, i32) {
    %c0_i32 = arith.constant 0 : i32
    %c0_i32_0 = arith.constant 0 : i32
    %c0_i32_1 = arith.constant 0 : i32
    return %c0_i32, %c0_i32_0 : i32, i32
  }
  func.func @transform_8(%arg0: i32, %arg1: i32) -> (i32, i32) {
    %c0_i32 = arith.constant 0 : i32
    %c0_i32_0 = arith.constant 0 : i32
    %c0_i32_1 = arith.constant 0 : i32
    return %c0_i32, %c0_i32_0 : i32, i32
  }
  func.func @transform_9(%arg0: i32, %arg1: i32) -> (i32, i32) {
    %c0_i32 = arith.constant 0 : i32
    %c0_i32_0 = arith.constant 0 : i32
    %c0_i32_1 = arith.constant 0 : i32
    return %c0_i32, %c0_i32_0 : i32, i32
  }
  func.func @transform_10(%arg0: i32, %arg1: i32) -> (i32, i32) {
    %c0_i32 = arith.constant 0 : i32
    %c0_i32_0 = arith.constant 0 : i32
    %c0_i32_1 = arith.constant 0 : i32
    return %c0_i32, %c0_i32_0 : i32, i32
  }
  func.func @transform_11(%arg0: i32, %arg1: i32) -> (i32, i32) {
    %c0_i32 = arith.constant 0 : i32
    %c0_i32_0 = arith.constant 0 : i32
    %c0_i32_1 = arith.constant 0 : i32
    return %c0_i32, %c0_i32_0 : i32, i32
  }
  func.func @transform_12(%arg0: i32, %arg1: i32) -> (i32, i32) {
    %c0_i32 = arith.constant 0 : i32
    %c0_i32_0 = arith.constant 0 : i32
    return %arg0, %c0_i32 : i32, i32
  }
  func.func @transform_13(%arg0: i32, %arg1: i32) -> (i32, i32) {
    %c0_i32 = arith.constant 0 : i32
    %c0_i32_0 = arith.constant 0 : i32
    return %arg0, %c0_i32 : i32, i32
  }
  func.func @transform_14(%arg0: i32, %arg1: i32) -> (i32, i32, i32) {
    %c0_i32 = arith.constant 0 : i32
    %c0_i32_0 = arith.constant 0 : i32
    return %arg1, %arg0, %c0_i32 : i32, i32, i32
  }
  func.func @transform_15(%arg0: i32, %arg1: i32) -> (i32, i32) {
    %c0_i32 = arith.constant 0 : i32
    %c0_i32_0 = arith.constant 0 : i32
    return %arg0, %c0_i32 : i32, i32
  }
  func.func @transform_16(%arg0: i32, %arg1: i32) -> (i32, i32) {
    %c0_i32 = arith.constant 0 : i32
    %c0_i32_0 = arith.constant 0 : i32
    return %arg0, %c0_i32 : i32, i32
  }
}

</mosaic_0001>

<bundles_post_ra>
// kernel: lstm_model_forward.1
= control target key start
LH: loop header
LB: loop body
LE: loop exit
PB: predicated region body
PF: predicated region fallthrough
CT: control target
= control target key end

     0   :  { %s6742_s0 = inlined_call_operand.vmem [shape: f32[16,2,16], index: 0, kind: input, shape index: {}]   ;;  %s6743_s1 = inlined_call_operand.hbm [shape: f32[16,128], index: 1, kind: input, shape index: {}]   ;;  %s6744_s2 = inlined_call_operand.vmem [shape: f32[32,128], index: 2, kind: input, shape index: {}]   ;;  %s6745_s3 = inlined_call_operand.hbm [shape: f32[1,128], index: 3, kind: input, shape index: {}]   ;;  %s6746_s4 = inlined_call_operand.vmem [shape: f32[32,128], index: 4, kind: input, shape index: {}]   ;;  %s6747_s5 = inlined_call_operand.hbm [shape: f32[32,128], index: 5, kind: input, shape index: {}]   ;;  %s6748_s6 = inlined_call_operand.hbm [shape: f32[1,128], index: 6, kind: input, shape index: {}]   ;;  %s6749_s7 = inlined_call_operand.hbm [shape: f32[32,128], index: 7, kind: input, shape index: {}]   ;;  %s6750_s8 = inlined_call_operand.hbm [shape: f32[32,128], index: 8, kind: input, shape index: {}]   ;;  %s6751_s9 = inlined_call_operand.hbm [shape: f32[1,128], index: 9, kind: input, shape index: {}]   ;;  %s6752_s10 = inlined_call_operand.vmem [shape: f32[32,16], index: 10, kind: input, shape index: {}]   ;;  %s6753_s11 = inlined_call_operand.vmem [shape: f32[1,16], index: 11, kind: input, shape index: {}]   ;;  %s6754_s12 = inlined_call_operand.vmem [shape: f32[2,96], index: 12, kind: input, shape index: {}]   ;;  %s6755_s13 = inlined_call_operand.vmem [shape: f32[2,96], index: 13, kind: input, shape index: {}]   ;;  %s6756_s14 = inlined_call_operand.hbm [shape: f32[16,2,16], index: 14, kind: output, shape index: {0}]   ;;  %s6757_s15 = inlined_call_operand.vmem [shape: f32[2,96], index: 15, kind: output, shape index: {1}]   ;;  %s6758_s16 = inlined_call_operand.vmem [shape: f32[2,96], index: 16, kind: output, shape index: {2}]  }
   0x1   :  { %6773 = sst [smem:[#allocation31_spill]] %s6742_s0 }
   0x2   :  { %6774 = sst [smem:[#allocation32_spill]] %s6745_s3 }
   0x3   :  { %6775 = sst [smem:[#allocation33_spill]] %s6748_s6 }
   0x4   :  { %6776 = sst [smem:[#allocation34_spill]] %s6756_s14 }
   0x5   :  { %6777 = sst [smem:[#allocation35_spill]] %s6757_s15 }
   0x6   :  { %6778 = sst [smem:[#allocation36_spill]] %s6758_s16 }
   0x7   :  { %22 = vsyncpa [#allocation6], 0 }
   0x8   :  { %23 = vsyncpa [#allocation9], 0 }
   0x9   :  { %24 = vsyncpa [#allocation12], 0 }
   0xa   :  { %25 = vsyncpa [#allocation15], 0 }
   0xb   :  { %26 = vsyncpa [#allocation7], 0 }
   0xc   :  { %28 = vsyncpa [#allocation7 + $0x1], 0  ;;  %s5803_s21 = smov 0   ;;  %s5805_s22 = smov 0  }
   0xd   :  { %s5807_s23 = smov 0   ;;  %s5809_s24 = smov 0  }
   0xe   :  { %s5811_s25 = smov 0   ;;  %s5813_s26 = smov 0  }
   0xf LB: > { %6779 = sst [smem:[#allocation23_spill]] %s5678_s21  ;;  %s4335_s27 = sadd.s32 4294967295, %s5698_s26   ;;  %s5698_s26 = sphi %s5813_s26, %s34_s26   ;;  %s5694_s25 = sphi %s5811_s25, %s6811_s25   ;;  %s5690_s24 = sphi %s5809_s24, %s6810_s24   ;;  %s5686_s23 = sphi %s5807_s23, %s6809_s23   ;;  %s5682_s22 = sphi %s5805_s22, %s6813_s22   ;;  %s5678_s21 = sphi %s5803_s21, %s6812_s21  }
  0x10   : > { %6780 = sst [smem:[#allocation24_spill]] %s5686_s23  ;;  %s4336_s28 = sadd.s32 4294967294, %s5698_s26  }
  0x11   : > { %6781 = sst [smem:[#allocation25_spill]] %s5694_s25  ;;  %s43_s29 = sadd.s32 1, %s5694_s25 }
  0x12   : > { %6782 = sst [smem:[#allocation26_spill]] %s5698_s26  ;;  %s366_s30 = sadd.s32 1, %s5686_s23 }
  0x13   : > { %p44_p0 = scmp.ge.s32.totalorder %s43_s29, 2  ;;  %p376_p1 = scmp.ne.s32.totalorder %s5686_s23, %s5682_s22 }
  0x14   : > { %p377_p2 = scmp.eq.s32.totalorder %s4335_s27, 1  ;;  %p382_p3 = scmp.ne.s32.totalorder %s5682_s22, %s5678_s21 }
  0x15   : > { %s6815_s29 = smov (%p44_p0, %s43_s29), 0  ;;  %p383_p5 = scmp.eq.s32.totalorder %s4336_s28, 1 }
  0x16   : > { %6783 = sst [smem:[#allocation27_spill]] %s6815_s29  ;;  %p5843_p4 = por %p377_p2, %p376_p1 }
  0x17   : > { %s361_s17 = ssub.s32 %s5694_s25, %s6815_s29  ;;  %p4337_p6 = scmp.ge.s32.totalorder %s5698_s26, 1 }
  0x18   : > { %s6784_s0 = scalar_select %p5843_p4, 1, 0 }
  0x19   : > { %p364_p7 = scmp.eq.s32.totalorder %s361_s17, 0  ;;  %p5850_p8 = por %p383_p5, %p382_p3 }
  0x1a   : > { %6785 = sst [smem:[#allocation28_spill]] %s6784_s0  ;;  %p442_p9 = scmp.lt.s32.totalorder %s5698_s26, 3 }
  0x1b   : > { %s6786_s18 = scalar_select %p5850_p8, 1, 0 }
  0x1c   : > { %s5856_s19 = scalar_select %p364_p7, %s5686_s23, %s366_s30  }
  0x1d   : > { %6787 = sst [smem:[#allocation29_spill]] %s6786_s18  ;;  %p5858_p10 = pnand %p4337_p6, %p442_p9 }
  0x1e   : > { %6788 = sst [smem:[#allocation30_spill]] %s5856_s19  ;;  %p5862_p11 = scmp.eq.s32.totalorder %s4335_s27, 0 }
  0x1f   : > { %s6789_s20 = scalar_select %p5858_p10, 1, 0 }
  0x20   : > { %s6790_s21 = scalar_select %p5862_p11, 1, 0 }
  0x21   : > { %p5077_p12 = pneg %p5858_p10  ;;  %s5700_s28 = smov [#allocation8]  }
  0x22   : > { %s471_s17 = sshll.u32 %s5700_s28, 4  ;;  %s5701_s29 = smov [#allocation11]   ;;  %s472_s17 = int_to_ptr.vmem [resolvable:$true] %s471_s17 }
  0x23   : > { %s498_s25 = sshll.u32 %s5701_s29, 4  ;;  %p5870_p13 = pnand %p5862_p11, %p5077_p12  ;;  %s5874_s25 = int_to_ptr.vmem [resolvable:$true] %s498_s25 }
  0x24   : > { %s6792_s3 = sld [smem:[#allocation32_spill]] }
  0x25   : > { %p5884_p1 = pneg %p5870_p13 }
  0x2a   : > { %s5408_s23 = scalar_lea.hbm %s6792_s3, 16 }
  0x2b   : > { %p5409_p0 = scmp.ne.s32.totalorder %s6792_s3, %s5408_s23  ;;  %p5415_p5 = scmp.lt.u32.totalorder %s5408_s23, %s6792_s3 }
  0x2d   : > { %p5411_p2 = pnand %p5884_p1, %p5409_p0 }
  0x2f   : > { %p5412_p3 = pneg %p5411_p2 }
  0x31   : > { %p5417_p6 = pnand %p5415_p5, %p5412_p3 }
  0x33   : > { %5420 = shalt.err (!%p5417_p6)
}
  0x34   : > { %s5421_s19 = scalar_lea.vmem %s472_s17, 16  ;;  %s5428_s26 = scalar_lea.vmem %s472_s17, 32 }
  0x35   : > { %p5422_p7 = scmp.ne.s32.totalorder %s472_s17, %s5421_s19  ;;  %p5429_p8 = scmp.lt.s32.totalorder %s472_s17, %s472_s17 }
  0x36   : > { %p5430_p4 = scmp.lt.s32.totalorder %s5428_s26, %s5421_s19 }
  0x37   : > { %p5424_p9 = pnand %p5422_p7, %p5884_p1 }
  0x38   : > { %p5431_p11 = por %p5430_p4, %p5429_p8 }
  0x39   : > { %p5425_p12 = pneg %p5424_p9 }
  0x3b   : > { %p5432_p10 = pnand %p5431_p11, %p5425_p12 }
  0x3d   : > { %5435 = shalt.err (!%p5432_p10)
}
  0x3e   : > { %5083 = dma.hbm_to_vmem [thread:$0]  (!%p5870_p13), %s6792_s3, 16, %s472_s17, [#allocation9]  }
  0x3f   : > { %s6794_s6 = sld [smem:[#allocation33_spill]] }
  0x45   : > { %s5436_s29 = scalar_lea.hbm %s6794_s6, 16 }
  0x46   : > { %p5437_p0 = scmp.ne.s32.totalorder %s6794_s6, %s5436_s29  ;;  %p5443_p8 = scmp.lt.u32.totalorder %s5436_s29, %s6794_s6 }
  0x48   : > { %p5439_p2 = pnand %p5437_p0, %p5884_p1 }
  0x4a   : > { %p5440_p4 = pneg %p5439_p2 }
  0x4c   : > { %p5445_p10 = pnand %p5443_p8, %p5440_p4 }
  0x4e   : > { %5448 = shalt.err (!%p5445_p10)
}
  0x4f   : > { %s5449_s17 = scalar_lea.vmem %s5874_s25, 16  ;;  %s5456_s16 = scalar_lea.vmem %s5874_s25, 32 }
  0x50   : > { %p5450_p11 = scmp.ne.s32.totalorder %s5874_s25, %s5449_s17  ;;  %p5457_p6 = scmp.lt.s32.totalorder %s5874_s25, %s5874_s25 }
  0x51   : > { %p5458_p7 = scmp.lt.s32.totalorder %s5456_s16, %s5449_s17 }
  0x52   : > { %p5452_p3 = pnand %p5450_p11, %p5884_p1 }
  0x53   : > { %p5459_p9 = por %p5458_p7, %p5457_p6 }
  0x54   : > { %p5453_p5 = pneg %p5452_p3 }
  0x56   : > { %p5460_p12 = pnand %p5459_p9, %p5453_p5 }
  0x58   : > { %5463 = shalt.err (!%p5460_p12)
}
  0x59   : > { %5089 = dma.hbm_to_vmem [thread:$0]  (!%p5870_p13), %s6794_s6, 16, %s5874_s25, [#allocation12]  }
  0x5a   : > { %s5702_s27 = smov [#allocation14]   ;;  %s5464_s19 = scalar_lea.hbm %s6750_s8, 512 }
  0x5b   : > { %s521_s14 = sshll.u32 %s5702_s27, 4  ;;  %p5465_p0 = scmp.ne.s32.totalorder %s6750_s8, %s5464_s19  ;;  %s522_s14 = int_to_ptr.vmem [resolvable:$true] %s521_s14 }
  0x5c   : > { %p5471_p8 = scmp.lt.u32.totalorder %s5464_s19, %s6750_s8 }
  0x5d   : > { %p5467_p2 = pnand %p5465_p0, %p5884_p1 }
  0x5f   : > { %p5468_p4 = pneg %p5467_p2 }
  0x61   : > { %p5473_p10 = pnand %p5471_p8, %p5468_p4 }
  0x63   : > { %5476 = shalt.err (!%p5473_p10)
}
  0x64   : > { %s5477_s25 = scalar_lea.vmem %s522_s14, 512  ;;  %p5485_p6 = scmp.lt.s32.totalorder %s522_s14, %s522_s14 }
  0x65   : > { %p5478_p11 = scmp.ne.s32.totalorder %s522_s14, %s5477_s25  ;;  %p5486_p7 = scmp.lt.s32.totalorder %s5477_s25, %s5477_s25 }
  0x67   : > { %p5480_p3 = pnand %p5478_p11, %p5884_p1  ;;  %p5487_p9 = por %p5486_p7, %p5485_p6 }
  0x69   : > { %p5481_p5 = pneg %p5480_p3 }
  0x6b   : > { %p5488_p12 = pnand %p5487_p9, %p5481_p5 }
  0x6d   : > { %5491 = shalt.err (!%p5488_p12)
}
  0x6e   : > { %s5703_s0 = smov 128   ;;  %s5704_s18 = smov 8  }
  0x6f   : > { %5095 = dma.hbm_to_vmem [thread:$0]  (!%p5870_p13), %s6750_s8, 512, %s522_s14, [#allocation15], %s5703_s0, %s5703_s0, %s5704_s18  }
  0x70   : > { %s5705_s23 = smov [#allocation5]   ;;  %s5706_s19 = smov [#allocation10]  }
  0x71   : > { %s454_s29 = sshll.u32 %s5705_s23, 4  ;;  %s484_s26 = sshll.u32 %s5706_s19, 4  ;;  %s455_s29 = int_to_ptr.vmem [resolvable:$true] %s454_s29  ;;  %s5945_s26 = int_to_ptr.vmem [resolvable:$true] %s484_s26 }
  0x72   : > { %s5492_s25 = scalar_lea.hbm %s6743_s1, 256 }
  0x73   : > { %p5493_p0 = scmp.ne.s32.totalorder %s6743_s1, %s5492_s25  ;;  %p5499_p8 = scmp.lt.u32.totalorder %s5492_s25, %s6743_s1 }
  0x75   : > { %p5495_p2 = pnand %p5493_p0, %p5884_p1 }
  0x77   : > { %p5496_p4 = pneg %p5495_p2 }
  0x79   : > { %p5501_p10 = pnand %p5499_p8, %p5496_p4 }
  0x7b   : > { %5504 = shalt.err (!%p5501_p10)
}
  0x7c   : > { %s5505_s27 = scalar_lea.vmem %s455_s29, 256  ;;  %p5513_p6 = scmp.lt.s32.totalorder %s455_s29, %s455_s29 }
  0x7d   : > { %p5506_p11 = scmp.ne.s32.totalorder %s455_s29, %s5505_s27  ;;  %p5514_p7 = scmp.lt.s32.totalorder %s5505_s27, %s5505_s27 }
  0x7f   : > { %p5508_p3 = pnand %p5506_p11, %p5884_p1  ;;  %p5515_p9 = por %p5514_p7, %p5513_p6 }
  0x81   : > { %p5509_p5 = pneg %p5508_p3 }
  0x83   : > { %p5516_p12 = pnand %p5515_p9, %p5509_p5 }
  0x85   : > { %5519 = shalt.err (!%p5516_p12)
}
  0x86   : > { %5080 = dma.hbm_to_vmem [thread:$0]  (!%p5870_p13), %s6743_s1, 256, %s455_s29, [#allocation6], %s5703_s0, %s5703_s0, %s5704_s18  }
  0x87   : > { %s5520_s17 = scalar_lea.hbm %s6747_s5, 512 }
  0x88   : > { %p5521_p0 = scmp.ne.s32.totalorder %s6747_s5, %s5520_s17  ;;  %p5527_p8 = scmp.lt.u32.totalorder %s5520_s17, %s6747_s5 }
  0x8a   : > { %p5523_p2 = pnand %p5521_p0, %p5884_p1 }
  0x8c   : > { %p5524_p4 = pneg %p5523_p2 }
  0x8e   : > { %p5529_p10 = pnand %p5527_p8, %p5524_p4 }
  0x90   : > { %5532 = shalt.err (!%p5529_p10)
}
  0x91   : > { %s5533_s29 = scalar_lea.vmem %s5945_s26, 512  ;;  %p5541_p6 = scmp.lt.s32.totalorder %s5945_s26, %s5945_s26 }
  0x92   : > { %p5534_p11 = scmp.ne.s32.totalorder %s5945_s26, %s5533_s29  ;;  %p5542_p7 = scmp.lt.s32.totalorder %s5533_s29, %s5533_s29 }
  0x94   : > { %p5536_p3 = pnand %p5534_p11, %p5884_p1  ;;  %p5543_p9 = por %p5542_p7, %p5541_p6 }
  0x96   : > { %p5537_p5 = pneg %p5536_p3 }
  0x98   : > { %p5544_p12 = pnand %p5543_p9, %p5537_p5 }
  0x9a   : > { %5547 = shalt.err (!%p5544_p12)
}
  0x9b   : > { %5086 = dma.hbm_to_vmem [thread:$0]  (!%p5870_p13), %s6747_s5, 512, %s5945_s26, [#allocation9], %s5703_s0, %s5703_s0, %s5704_s18  }
  0x9c   : > { %s5707_s15 = smov [#allocation13]   ;;  %s5708_s19 = smov [#allocation16]  }
  0x9d   : > { %s508_s23 = sshll.u32 %s5707_s15, 4  ;;  %s535_s17 = sshll.u32 %s5708_s19, 4  ;;  %s509_s23 = int_to_ptr.vmem [resolvable:$true] %s508_s23  ;;  %s5994_s17 = int_to_ptr.vmem [resolvable:$true] %s535_s17 }
  0x9e   : > { %s5548_s3 = scalar_lea.hbm %s6749_s7, 512 }
  0x9f   : > { %p5549_p0 = scmp.ne.s32.totalorder %s6749_s7, %s5548_s3  ;;  %p5555_p8 = scmp.lt.u32.totalorder %s5548_s3, %s6749_s7 }
  0xa1   : > { %p5551_p2 = pnand %p5549_p0, %p5884_p1 }
  0xa3   : > { %p5552_p4 = pneg %p5551_p2 }
  0xa5   : > { %p5557_p10 = pnand %p5555_p8, %p5552_p4 }
  0xa7   : > { %5560 = shalt.err (!%p5557_p10)
}
  0xa8   : > { %s5561_s6 = scalar_lea.vmem %s509_s23, 512  ;;  %p5569_p6 = scmp.lt.s32.totalorder %s509_s23, %s509_s23 }
  0xa9   : > { %p5562_p11 = scmp.ne.s32.totalorder %s509_s23, %s5561_s6  ;;  %p5570_p7 = scmp.lt.s32.totalorder %s5561_s6, %s5561_s6 }
  0xab   : > { %p5564_p3 = pnand %p5562_p11, %p5884_p1  ;;  %p5571_p9 = por %p5570_p7, %p5569_p6 }
  0xad   : > { %p5565_p5 = pneg %p5564_p3 }
  0xaf   : > { %p5572_p12 = pnand %p5571_p9, %p5565_p5 }
  0xb1   : > { %5575 = shalt.err (!%p5572_p12)
}
  0xb2   : > { %5092 = dma.hbm_to_vmem [thread:$0]  (!%p5870_p13), %s6749_s7, 512, %s509_s23, [#allocation12], %s5703_s0, %s5703_s0, %s5704_s18  }
  0xb3   : > { %s5576_s3 = scalar_lea.hbm %s6751_s9, 16 }
  0xb4   : > { %p5577_p0 = scmp.ne.s32.totalorder %s6751_s9, %s5576_s3  ;;  %p5583_p8 = scmp.lt.u32.totalorder %s5576_s3, %s6751_s9 }
  0xb6   : > { %p5579_p2 = pnand %p5577_p0, %p5884_p1 }
  0xb8   : > { %p5580_p4 = pneg %p5579_p2 }
  0xba   : > { %p5585_p10 = pnand %p5583_p8, %p5580_p4 }
  0xbc   : > { %5588 = shalt.err (!%p5585_p10)
}
  0xbd   : > { %s5589_s0 = scalar_lea.vmem %s5994_s17, 16  ;;  %s5596_s18 = scalar_lea.vmem %s5994_s17, 32 }
  0xbe   : > { %p5590_p11 = scmp.ne.s32.totalorder %s5994_s17, %s5589_s0  ;;  %p5597_p6 = scmp.lt.s32.totalorder %s5994_s17, %s5994_s17 }
  0xbf   : > { %p5598_p7 = scmp.lt.s32.totalorder %s5596_s18, %s5589_s0 }
  0xc0   : > { %p5592_p3 = pnand %p5590_p11, %p5884_p1 }
  0xc1   : > { %p5599_p9 = por %p5598_p7, %p5597_p6 }
  0xc2   : > { %p5593_p5 = pneg %p5592_p3 }
  0xc4   : > { %p5600_p12 = pnand %p5599_p9, %p5593_p5 }
  0xc6   : > { %5603 = shalt.err (!%p5600_p12)
}
  0xc7   : > { %5098 = dma.hbm_to_vmem [thread:$0]  (!%p5870_p13), %s6751_s9, 16, %s5994_s17, [#allocation15]  }
  0xc8   : > { %p6795_p0 = scmp.ne.s32.totalorder %s6789_s20, 0 }
  0xc9   : > { %p6796_p1 = scmp.ne.s32.totalorder (!%p6795_p0), %s6790_s21, 0 }
  0xca   : > { %580 = sbr.rel (%p6795_p0) target bundleno = 17495 (0x4457), region = 76 }
  0xd1   : > { %5657 = dma.done.wait (%p6796_p1), [#allocation6], 256  }
  0xd2   : > { %5659 = vsyncadd (%p6796_p1), [#allocation6], 4294967040 }
  0xd3   : > { %5661 = dma.done.wait (%p6796_p1), [#allocation9], 528  }
  0xd4   : > { %5663 = vsyncadd (%p6796_p1), [#allocation9], 4294966768 }
  0xd5   : > { %5665 = dma.done.wait (%p6796_p1), [#allocation12], 528  }
  0xd6   : > { %5667 = vsyncadd (%p6796_p1), [#allocation12], 4294966768 }
  0xd7   : > { %5669 = dma.done.wait (%p6796_p1), [#allocation15], 528  }
  0xd8   : > { %5671 = vsyncadd (%p6796_p1), [#allocation15], 4294966768  ;;  %s658_s20 = sand.u32 1, %s5682_s22   ;;  %s4357_s30 = sshll.u32 %s5690_s24, 3 }
  0xd9   : > { %s4356_s28 = sshll.u32 %s658_s20, 4  ;;  %p674_p13 = scmp.lt.s32.totalorder %s4357_s30, 15 }
  0xda   : > { %s6797_s16 = sld [smem:[#allocation31_spill]]  ;;  %s6068_s3 = scalar_lea.vmem [#allocation17], %s4356_s28 }
  0xdb   : > { %s6817_s30 = smov (!%p674_p13, %s4357_s30), 15  ;;  %p4359_p2 = scmp.ne.s32.totalorder %s5690_s24, 0 }
  0xdc   : > { %s4358_s17 = sshll.u32 %s6817_s30, 1  ;;  %v703_v0 = vld [vmem:[%s6754_s12] sm:$0x3] (!%p4359_p2)  ;;  %vm704_vm0 = vcmask (!%p4359_p2), 779264  }
  0xdd   : > { %702 = sbr.rel (%p4359_p2) target bundleno = 228 (0xe4), region = 108  ;;  %v706_v1 = vld [vmem:[%s6755_s13] sm:$0x3] (!%p4359_p2)  ;;  %705 = vst.msk [vmem:[#allocation2] sm:$0x3] (!%p4359_p2), %vm704_vm0, %v703_v0 }
  0xde   : > { %707 = vst.msk [vmem:[#allocation3] sm:$0x3] (!%p4359_p2), %vm704_vm0, %v706_v1 }
  0xe0   : > { %s6066_s25 = scalar_lea.vmem %s6797_s16, %s4358_s17 }
  0xe4 PF: > { %v849_v2 = vld [vmem:[%s6744_s2] sm:$0xff]  ;;  %v850_v3 = vld [vmem:[%s6744_s2 + $0x8] sm:$0xff]  ;;  %v718_v4 = vld [vmem:[#allocation5] sm:$0xff]  ;;  %v740_v5 = vlaneseq  ;;  %v5709_v6 = vmov 0.0|0.0   ;;  %v5710_v11 = vmov 1983009808  }
  0xe5   : > { %4879 = vmatprep.subr.bf16.mxu1 %v5709_v6  ;;  %v6084_v7 = vpack.c.bf16 %v850_v3, %v849_v2  ;;  %v719_v8 = vld [vmem:[#allocation5 + $0x8] sm:$0xff]  ;;  %v738_v12 = vunpack.c.l.s4 %v5710_v11  ;;  %v712_v14 = vld [vmem:[%s6066_s25 + $0x4] sm:$0x3]  ;;  %v713_v15 = vld [vmem:[%s6066_s25 + $0x6] sm:$0x3]  ;;  %vm5711_vm1 = vmmov 0  }
  0xe6   : > { %v710_v9 = vld [vmem:[%s6066_s25] sm:$0x3]  ;;  %v711_v10 = vld [vmem:[%s6066_s25 + $0x2] sm:$0x3]  ;;  %v4875_v13 = vpack.c.bf16 %v719_v8, %v718_v4  ;;  %v741_v16 = vshrl.u32 %v740_v5, 7  ;;  %v851_v17 = vld [vmem:[%s6744_s2 + $0x10] sm:$0xff]  ;;  %v736_v19 = vcombine.low %v712_v14, %v713_v15 }
  0xe7   : > { %4881 = vmatpush3.bf16.msra.mxu1 %v6084_v7  ;;  %v735_v18 = vcombine.low %v710_v9, %v711_v10  ;;  %v739_v20 = vunpack.c.0.s8 %v738_v12  ;;  %v852_v21 = vld [vmem:[%s6744_s2 + $0x18] sm:$0xff]  ;;  %v714_v22 = vld [vmem:[%s6066_s25 + $0x8] sm:$0x3]  ;;  %v715_v23 = vld [vmem:[%s6066_s25 + $0xa] sm:$0x3]  ;;  %v5712_v30 = vmov 0.0  }
  0xe8   : > { %4876 = vmatprep.subr.bf16.mxu0 %v4875_v13  ;;  %4882 = vmatprep.subr.bf16.mxu1 %v5709_v6  ;;  %v6100_v24 = vpack.c.bf16 %v852_v21, %v851_v17  ;;  %v716_v25 = vld [vmem:[%s6066_s25 + $0xc] sm:$0x3]  ;;  %v717_v26 = vld [vmem:[%s6066_s25 + $0xe] sm:$0x3]  ;;  %v752_v27 = vcombine.low %v714_v22, %v715_v23  ;;  %vm853_vm2 = vcmask 261120   ;;  %vm769_vm3 = vcmask 130048  }
  0xe9   : > { %4878 = vmatpush3.bf16.msra.mxu0 %v4875_v13  ;;  %v6104_v28 = vsub.s32 %v739_v20, %v741_v16  ;;  %v753_v29 = vcombine.low %v716_v25, %v717_v26  ;;  %4586 = vmatprep.mubr.msk.f32.mxu1 %vm5711_vm1, %v5712_v30  ;;  %v6114_v35 = vld [vmem:[#allocation2] sm:$0x3]  ;;  %v4360_v38 = vld [vmem:[#allocation8] ss:$0 sm:$0xff]  ;;  %s5713_s15 = smov 64   ;;  %s5714_s19 = smov 32  }
  0xea   : > { %4885 = vmatprep.subr.bf16.mxu0 %v5709_v6  ;;  %v6137_v47 = vld [vmem:[#allocation3] sm:$0x3]  ;;  %vm960_vm4 = vcmask 254976   ;;  %vm1073_vm5 = vcmask 257026   ;;  %vm1305_vm6 = vcmask 261126   ;;  %vm1189_vm7 = vcmask 259076  }
  0xeb   : > { %v743_v31 = vrot.slane %v735_v18, %v6104_v28  ;;  %v750_v32 = vrot.slane %v736_v19, %v6104_v28  ;;  %4884 = vmatpush3.bf16.msra.mxu1 %v6100_v24  ;;  %v760_v33 = vrot.slane %v752_v27, %v6104_v28  ;;  %v767_v34 = vrot.slane %v753_v29, %v6104_v28  ;;  %s5715_s16 = smov 96   ;;  %p4420_p4 = scmp.ne.s32.totalorder %s5690_s24, 1 }
  0xec   : > { %4891 = vmatprep.subr.bf16.mxu1 %v5709_v6  ;;  %vm4063_vm8 = vcmask 523526   ;;  %vm4068_vm9 = vcmask 785926   ;;  %vm3898_vm10 = vcmask 123904   ;;  %vm4086_vm11 = vcmask (!%p4420_p4), 779264   ;;  %s6798_s26 = sld [smem:[#allocation35_spill]] (!%p4420_p4)  ;;  %s6799_s23 = sld [smem:[#allocation36_spill]] (!%p4420_p4) }
  0xed   : > { %v751_v36 = vcombine.low %v743_v31, %v750_v32  ;;  %v768_v37 = vcombine.low %v760_v33, %v767_v34 }
  0xee   : > { %4587 = vmatmul.mubr.msk.f32.vlgmr.msra.gmra.mrb[0].mxu1 %vm853_vm2, %v6114_v35 }
  0xef   : > { %4575 = vmatprep.mubr.msk.f32.mxu0 %vm769_vm3, %v751_v36  ;;  %4893 = vmatpush3.bf16.msra.mxu1 %v6084_v7 }
  0xf0   : > { %4576 = vmatmul.mubr.msk.f32.vlgmr.msra.gmra.mrb[0].mxu0 %vm769_vm3, %v768_v37  ;;  %4894 = vmatprep.subr.bf16.mxu1 %v5709_v6 }
  0xf1   : > { %4887 = vmatpush3.bf16.msra.mxu0 %v6084_v7  ;;  %4597 = vmatprep.mubr.msk.f32.mxu0 %vm5711_vm1, %v5712_v30 }
  0xf2   : > { %4888 = vmatprep.subr.bf16.mxu0 %v5709_v6  ;;  %4608 = vmatprep.mubr.msk.f32.mxu1 %vm5711_vm1, %v5712_v30 }
  0xf3   : > { %4896 = vmatpush3.bf16.msra.mxu1 %v6100_v24 }
  0xf4   : > { %4903 = vmatprep.subr.bf16.mxu1 %v5709_v6 }
  0xf5   : > { %4890 = vmatpush3.bf16.msra.mxu0 %v6100_v24 }
  0xf6   : > { %4897 = vmatprep.subr.bf16.mxu0 %v5709_v6 }
 0x1c1   : > { %v923_v39 = vpop.f32.mrb[0].mxu1 }
 0x1c2   : > { %v4588_v40 = vpop.f32.mrb[1].mxu1 }
 0x1c3   : > { %v4577_v41 = vpop.f32.mrb[0].mxu0 }
 0x1c4   : > { %v6131_v42 = vadd.f32 %v4577_v41, %v4360_v38  ;;  %v840_v43 = vpop.f32.mrb[1].mxu0 }
 0x1c5   : > { %v6133_v44 = vadd.f32 %v4360_v38, %v840_v43 }
 0x1c7   : > { %v927_v45 = vadd.f32 %v923_v39, %v6133_v44 }
 0x1c9   : > { %5183 = vtanh.f32 %v927_v45  ;;  %v4364_v48 = vmul.f32 -1.442695, %v927_v45 }
 0x1cb   : > { %5185 = vpow2.f32 %v4364_v48 }
 0x1d3   : > { %v5184_v46 = vpop.eup %5183 }
 0x1d4   : > { %941 = vrot.lane.b32.xlu0 %v5184_v46, %s5713_s15 }
 0x1d5   : > { %v5186_v49 = vpop.eup %5185 }
 0x1d6   : > { %v931_v50 = vadd.f32 1.0, %v5186_v49 }
 0x1d8   : > { %936 = vrot.lane.b32.xlu0 %v6137_v47, %s5714_s19  ;;  %5187 = vrcp.f32 %v931_v50 }
 0x1e2   : > { %v5188_v51 = vpop.eup %5187 }
 0x246   : > { %v942_v52 = vpop.permute.xlu0 %941 }
 0x247   : > { %v944_v53 = vmul.f32 %v5188_v51, %v942_v52 }
 0x249   : > { %946 = vrot.lane.b32.xlu1 %v944_v53, %s5714_s19 }
 0x24a   : > { %v937_v54 = vpop.permute.xlu0 %936 }
 0x24b   : > { %v939_v55 = vmul.f32 %v5188_v51, %v937_v54 }
 0x2bb   : > { %v947_v56 = vpop.permute.xlu1 %946 }
 0x2bc   : > { %v949_v57 = vadd.f32 %v947_v56, %v939_v55 }
 0x2be   : > { %5189 = vtanh.f32 %v949_v57  ;;  %v1050_v11 = vrot.slane %v949_v57, 6 }
 0x2c8   : > { %v5190_v58 = vpop.eup %5189 }
 0x2c9   : > { %952 = vrot.lane.b32.xlu1 %v5190_v58, %s5713_s15 }
 0x33b   : > { %v953_v59 = vpop.permute.xlu1 %952 }
 0x33c   : > { %v955_v60 = vmul.f32 %v5188_v51, %v953_v59 }
 0x33e   : > { %957 = vrot.lane.b32.xlu0 %v955_v60, %s5714_s19 }
 0x3b0   : > { %v958_v61 = vpop.permute.xlu0 %957 }
 0x3b1   : > { %961 = vst.msk [vmem:[#allocation4] sm:$0x3] %vm960_vm4, %v958_v61  ;;  %4598 = vmatmul.mubr.msk.f32.vlgmr.msra.gmra.mrb[2].mxu0 %vm853_vm2, %v958_v61 }
 0x3b2   : > { %4899 = vmatpush3.bf16.msra.mxu0 %v6084_v7  ;;  %4619 = vmatprep.mubr.msk.f32.mxu0 %vm5711_vm1, %v5712_v30 }
 0x3b3   : > { %4900 = vmatprep.subr.bf16.mxu0 %v5709_v6 }
 0x3b6   : > { %4902 = vmatpush3.bf16.msra.mxu0 %v6100_v24 }
 0x3b7   : > { %4909 = vmatprep.subr.bf16.mxu0 %v5709_v6 }
 0x484   : > { %v1034_v62 = vpop.f32.mrb[2].mxu0 }
 0x485   : > { %v1039_v63 = vrot.slane %v1034_v62, 6  ;;  %v4599_v0 = vpop.f32.mrb[3].mxu0 }
 0x487   : > { %v1041_v1 = vadd.f32 %v1039_v63, %v6133_v44 }
 0x489   : > { %5191 = vtanh.f32 %v1041_v1  ;;  %v4366_v3 = vmul.f32 -1.442695, %v1041_v1 }
 0x48b   : > { %5193 = vpow2.f32 %v4366_v3 }
 0x493   : > { %v5192_v2 = vpop.eup %5191 }
 0x494   : > { %1054 = vrot.lane.b32.xlu1 %v5192_v2, %s5713_s15 }
 0x495   : > { %v5194_v4 = vpop.eup %5193 }
 0x496   : > { %v1045_v5 = vadd.f32 1.0, %v5194_v4 }
 0x498   : > { %5195 = vrcp.f32 %v1045_v5 }
 0x4a2   : > { %v5196_v8 = vpop.eup %5195 }
 0x4a3   : > { %v1052_v12 = vmul.f32 %v5196_v8, %v1050_v11 }
 0x506   : > { %v1055_v9 = vpop.permute.xlu1 %1054 }
 0x507   : > { %v1057_v10 = vmul.f32 %v5196_v8, %v1055_v9 }
 0x509   : > { %1059 = vrot.lane.b32.xlu0 %v1057_v10, %s5714_s19 }
 0x57b   : > { %v1060_v13 = vpop.permute.xlu0 %1059 }
 0x57c   : > { %v1062_v14 = vadd.f32 %v1060_v13, %v1052_v12 }
 0x57e   : > { %5197 = vtanh.f32 %v1062_v14  ;;  %v1166_v34 = vrot.slane %v1062_v14, 6 }
 0x588   : > { %v5198_v15 = vpop.eup %5197 }
 0x589   : > { %1065 = vrot.lane.b32.xlu1 %v5198_v15, %s5713_s15 }
 0x5fb   : > { %v1066_v16 = vpop.permute.xlu1 %1065 }
 0x5fc   : > { %v6156_v17 = vmul.f32 %v5196_v8, %v1066_v16 }
 0x5fe   : > { %v1079_v18 = vrot.slane %v6156_v17, 2 }
 0x600   : > { %1080 = vrot.lane.b32.xlu0 %v1079_v18, %s5714_s19 }
 0x672   : > { %v1081_v19 = vpop.permute.xlu0 %1080 }
 0x673   : > { %4609 = vmatmul.mubr.msk.f32.vlgmr.msra.gmra.mrb[2].mxu1 %vm853_vm2, %v1081_v19 }
 0x674   : > { %4905 = vmatpush3.bf16.msra.mxu1 %v6084_v7  ;;  %4630 = vmatprep.mubr.msk.f32.mxu1 %vm5711_vm1, %v5712_v30 }
 0x675   : > { %4906 = vmatprep.subr.bf16.mxu1 %v5709_v6 }
 0x678   : > { %4908 = vmatpush3.bf16.msra.mxu1 %v6100_v24 }
 0x679   : > { %4915 = vmatprep.subr.bf16.mxu1 %v5709_v6 }
 0x746   : > { %v1150_v20 = vpop.f32.mrb[2].mxu1 }
 0x747   : > { %v1155_v21 = vrot.slane %v1150_v20, 4  ;;  %v4610_v22 = vpop.f32.mrb[3].mxu1 }
 0x749   : > { %v1157_v23 = vadd.f32 %v1155_v21, %v6133_v44 }
 0x74b   : > { %5199 = vtanh.f32 %v1157_v23  ;;  %v4368_v26 = vmul.f32 -1.442695, %v1157_v23 }
 0x74d   : > { %5201 = vpow2.f32 %v4368_v26 }
 0x755   : > { %v5200_v25 = vpop.eup %5199 }
 0x756   : > { %1170 = vrot.lane.b32.xlu1 %v5200_v25, %s5713_s15 }
 0x757   : > { %v5202_v27 = vpop.eup %5201 }
 0x758   : > { %v1161_v29 = vadd.f32 1.0, %v5202_v27 }
 0x75a   : > { %5203 = vrcp.f32 %v1161_v29 }
 0x764   : > { %v5204_v31 = vpop.eup %5203 }
 0x765   : > { %v1168_v36 = vmul.f32 %v5204_v31, %v1166_v34 }
 0x7c8   : > { %v1171_v32 = vpop.permute.xlu1 %1170 }
 0x7c9   : > { %v1173_v33 = vmul.f32 %v5204_v31, %v1171_v32 }
 0x7cb   : > { %1175 = vrot.lane.b32.xlu0 %v1173_v33, %s5714_s19 }
 0x83d   : > { %v1176_v37 = vpop.permute.xlu0 %1175 }
 0x83e   : > { %v1178_v38 = vadd.f32 %v1176_v37, %v1168_v36 }
 0x840   : > { %5205 = vtanh.f32 %v1178_v38  ;;  %v1282_v58 = vrot.slane %v1178_v38, 6 }
 0x84a   : > { %v5206_v39 = vpop.eup %5205 }
 0x84b   : > { %1181 = vrot.lane.b32.xlu1 %v5206_v39, %s5713_s15 }
 0x8bd   : > { %v1182_v40 = vpop.permute.xlu1 %1181 }
 0x8be   : > { %v6171_v41 = vmul.f32 %v5204_v31, %v1182_v40 }
 0x8c0   : > { %v1195_v43 = vrot.slane %v6171_v41, 4 }
 0x8c2   : > { %1196 = vrot.lane.b32.xlu0 %v1195_v43, %s5714_s19 }
 0x934   : > { %v1197_v45 = vpop.permute.xlu0 %1196 }
 0x935   : > { %4620 = vmatmul.mubr.msk.f32.vlgmr.msra.gmra.mrb[4].mxu0 %vm853_vm2, %v1197_v45 }
 0x936   : > { %4911 = vmatpush3.bf16.msra.mxu0 %v6084_v7  ;;  %4641 = vmatprep.mubr.msk.f32.mxu0 %vm5711_vm1, %v5712_v30 }
 0x937   : > { %4912 = vmatprep.subr.bf16.mxu0 %v5709_v6 }
 0x93a   : > { %4914 = vmatpush3.bf16.msra.mxu0 %v6100_v24 }
 0x93b   : > { %4921 = vmatprep.subr.bf16.mxu0 %v5709_v6 }
 0xa08   : > { %v1266_v46 = vpop.f32.mrb[4].mxu0 }
 0xa09   : > { %v1271_v48 = vrot.slane %v1266_v46, 2  ;;  %v4621_v49 = vpop.f32.mrb[5].mxu0 }
 0xa0b   : > { %v1273_v50 = vadd.f32 %v1271_v48, %v6133_v44 }
 0xa0d   : > { %5207 = vtanh.f32 %v1273_v50  ;;  %v4370_v52 = vmul.f32 -1.442695, %v1273_v50 }
 0xa0f   : > { %5209 = vpow2.f32 %v4370_v52 }
 0xa17   : > { %v5208_v51 = vpop.eup %5207 }
 0xa18   : > { %1286 = vrot.lane.b32.xlu1 %v5208_v51, %s5713_s15 }
 0xa19   : > { %v5210_v53 = vpop.eup %5209 }
 0xa1a   : > { %v1277_v54 = vadd.f32 1.0, %v5210_v53 }
 0xa1c   : > { %5211 = vrcp.f32 %v1277_v54 }
 0xa26   : > { %v5212_v55 = vpop.eup %5211 }
 0xa27   : > { %v1284_v59 = vmul.f32 %v5212_v55, %v1282_v58 }
 0xa8a   : > { %v1287_v56 = vpop.permute.xlu1 %1286 }
 0xa8b   : > { %v1289_v57 = vmul.f32 %v5212_v55, %v1287_v56 }
 0xa8d   : > { %1291 = vrot.lane.b32.xlu0 %v1289_v57, %s5714_s19 }
 0xaff   : > { %v1292_v60 = vpop.permute.xlu0 %1291 }
 0xb00   : > { %v1294_v61 = vadd.f32 %v1292_v60, %v1284_v59 }
 0xb02   : > { %5213 = vtanh.f32 %v1294_v61  ;;  %v1395_v14 = vrot.slane %v1294_v61, 6 }
 0xb0c   : > { %v5214_v44 = vpop.eup %5213 }
 0xb0d   : > { %1297 = vrot.lane.b32.xlu1 %v5214_v44, %s5713_s15 }
 0xb7f   : > { %v1298_v62 = vpop.permute.xlu1 %1297 }
 0xb80   : > { %v6186_v63 = vmul.f32 %v5212_v55, %v1298_v62 }
 0xb82   : > { %v1311_v0 = vrot.slane %v6186_v63, 6 }
 0xb84   : > { %1312 = vrot.lane.b32.xlu0 %v1311_v0, %s5714_s19 }
 0xbf6   : > { %v1313_v1 = vpop.permute.xlu0 %1312 }
 0xbf7   : > { %4631 = vmatmul.mubr.msk.f32.vlgmr.msra.gmra.mrb[4].mxu1 %vm853_vm2, %v1313_v1 }
 0xbf8   : > { %4917 = vmatpush3.bf16.msra.mxu1 %v6084_v7  ;;  %4652 = vmatprep.mubr.msk.f32.mxu1 %vm5711_vm1, %v5712_v30 }
 0xbf9   : > { %4918 = vmatprep.subr.bf16.mxu1 %v5709_v6 }
 0xbfc   : > { %4920 = vmatpush3.bf16.msra.mxu1 %v6100_v24 }
 0xcca   : > { %v1382_v2 = vpop.f32.mrb[4].mxu1 }
 0xccb   : > { %v1386_v3 = vadd.f32 %v1382_v2, %v6131_v42  ;;  %v4632_v4 = vpop.f32.mrb[5].mxu1 }
 0xccd   : > { %5215 = vtanh.f32 %v1386_v3  ;;  %v4372_v8 = vmul.f32 -1.442695, %v1386_v3 }
 0xccf   : > { %5217 = vpow2.f32 %v4372_v8 }
 0xcd7   : > { %v5216_v5 = vpop.eup %5215 }
 0xcd8   : > { %1399 = vrot.lane.b32.xlu1 %v5216_v5, %s5713_s15 }
 0xcd9   : > { %v5218_v9 = vpop.eup %5217 }
 0xcda   : > { %v1390_v10 = vadd.f32 1.0, %v5218_v9 }
 0xcdc   : > { %5219 = vrcp.f32 %v1390_v10 }
 0xce6   : > { %v5220_v11 = vpop.eup %5219 }
 0xce7   : > { %v1397_v15 = vmul.f32 %v5220_v11, %v1395_v14 }
 0xd4a   : > { %v1400_v12 = vpop.permute.xlu1 %1399 }
 0xd4b   : > { %v1402_v13 = vmul.f32 %v5220_v11, %v1400_v12 }
 0xd4d   : > { %1404 = vrot.lane.b32.xlu0 %v1402_v13, %s5714_s19 }
 0xdbf   : > { %v1405_v16 = vpop.permute.xlu0 %1404 }
 0xdc0   : > { %v1407_v18 = vadd.f32 %v1405_v16, %v1397_v15 }
 0xdc2   : > { %5221 = vtanh.f32 %v1407_v18 }
 0xdcc   : > { %v5222_v19 = vpop.eup %5221 }
 0xdcd   : > { %1410 = vrot.lane.b32.xlu1 %v5222_v19, %s5713_s15 }
 0xe3f   : > { %v1411_v20 = vpop.permute.xlu1 %1410 }
 0xe40   : > { %v1413_v21 = vmul.f32 %v5220_v11, %v1411_v20 }
 0xe42   : > { %1415 = vrot.lane.b32.xlu0 %v1413_v21, %s5714_s19 }
 0xeb4   : > { %v1416_v22 = vpop.permute.xlu0 %1415 }
 0xeb5   : > { %1418 = vst.msk [vmem:[#allocation4 + $0x8] sm:$0x3] %vm960_vm4, %v1416_v22  ;;  %4642 = vmatmul.mubr.msk.f32.vlgmr.msra.gmra.mrb[6].mxu0 %vm853_vm2, %v1416_v22 }
 0xeb6   : > { %4923 = vmatpush3.bf16.msra.mxu0 %v6084_v7  ;;  %4663 = vmatprep.mubr.msk.f32.mxu0 %vm5711_vm1, %v5712_v30 }
 0xeb7   : > { %4924 = vmatprep.subr.bf16.mxu0 %v5709_v6 }
 0xeba   : > { %4926 = vmatpush3.bf16.msra.mxu0 %v6100_v24  ;;  %v1507_v24 = vrot.slane %v1407_v18, 6 }
 0xebb   : > { %4935 = vmatprep.subr.bf16.mxu0 %v5709_v6 }
 0xf88   : > { %v1491_v23 = vpop.f32.mrb[6].mxu0 }
 0xf89   : > { %v1496_v25 = vrot.slane %v1491_v23, 6  ;;  %v4643_v26 = vpop.f32.mrb[7].mxu0 }
 0xf8a   : > { %v1764_v26 = vld [vmem:[%s6746_s4 + $0x8] sm:$0xff] }
 0xf8b   : > { %v1498_v27 = vadd.f32 %v1496_v25, %v6131_v42  ;;  %v1763_v25 = vld [vmem:[%s6746_s4] sm:$0xff] }
 0xf8d   : > { %5223 = vtanh.f32 %v1498_v27  ;;  %v4374_v31 = vmul.f32 -1.442695, %v1498_v27  ;;  %v4927_v27 = vpack.c.bf16 %v1764_v26, %v1763_v25 }
 0xf8f   : > { %5225 = vpow2.f32 %v4374_v31  ;;  %4928 = vmatprep.subr.bf16.mxu1 %v4927_v27  ;;  %v1856_v31 = vld [vmem:[#allocation10 + $0x8] sm:$0xff] }
 0xf97   : > { %v5224_v29 = vpop.eup %5223 }
 0xf98   : > { %1511 = vrot.lane.b32.xlu1 %v5224_v29, %s5713_s15  ;;  %v1855_v29 = vld [vmem:[#allocation10] sm:$0xff] }
 0xf99   : > { %v5226_v7 = vpop.eup %5225 }
 0xf9a   : > { %v1502_v32 = vadd.f32 1.0, %v5226_v7  ;;  %v1765_v7 = vld [vmem:[%s6746_s4 + $0x10] sm:$0xff] }
 0xf9c   : > { %5227 = vrcp.f32 %v1502_v32  ;;  %v1766_v32 = vld [vmem:[%s6746_s4 + $0x18] sm:$0xff] }
 0xfa6   : > { %v5228_v33 = vpop.eup %5227 }
 0xfa7   : > { %v1509_v37 = vmul.f32 %v5228_v33, %v1507_v24 }
0x100a   : > { %v1512_v34 = vpop.permute.xlu1 %1511 }
0x100b   : > { %v1514_v36 = vmul.f32 %v5228_v33, %v1512_v34  ;;  %v1858_v34 = vld [vmem:[#allocation10 + $0x18] sm:$0xff] }
0x100d   : > { %1516 = vrot.lane.b32.xlu0 %v1514_v36, %s5714_s19  ;;  %v4931_v36 = vpack.c.bf16 %v1766_v32, %v1765_v7 }
0x107f   : > { %v1517_v38 = vpop.permute.xlu0 %1516 }
0x1080   : > { %v1519_v39 = vadd.f32 %v1517_v38, %v1509_v37 }
0x1082   : > { %5229 = vtanh.f32 %v1519_v39  ;;  %v1622_v60 = vrot.slane %v1519_v39, 6 }
0x108c   : > { %v5230_v40 = vpop.eup %5229 }
0x108d   : > { %1522 = vrot.lane.b32.xlu1 %v5230_v40, %s5713_s15 }
0x10ff   : > { %v1523_v43 = vpop.permute.xlu1 %1522 }
0x1100   : > { %v6213_v45 = vmul.f32 %v5228_v33, %v1523_v43  ;;  %v1857_v33 = vld [vmem:[#allocation10 + $0x10] sm:$0xff] }
0x1101   : > { %v6262_v24 = vpack.c.bf16 %v1858_v34, %v1857_v33 }
0x1102   : > { %v1535_v46 = vrot.slane %v6213_v45, 2 }
0x1104   : > { %1536 = vrot.lane.b32.xlu0 %v1535_v46, %s5714_s19 }
0x1176   : > { %v1537_v48 = vpop.permute.xlu0 %1536 }
0x1177   : > { %4653 = vmatmul.mubr.msk.f32.vlgmr.msra.gmra.mrb[6].mxu1 %vm853_vm2, %v1537_v48 }
0x1178   : > { %4930 = vmatpush3.bf16.msra.mxu1 %v4927_v27 }
0x1179   : > { %4932 = vmatprep.subr.bf16.mxu1 %v4931_v36 }
0x117c   : > { %4934 = vmatpush3.bf16.msra.mxu1 %v4931_v36 }
0x117d   : > { %4941 = vmatprep.subr.bf16.mxu1 %v5709_v6 }
0x124a   : > { %v1606_v49 = vpop.f32.mrb[6].mxu1 }
0x124b   : > { %v1611_v50 = vrot.slane %v1606_v49, 4  ;;  %v4654_v51 = vpop.f32.mrb[7].mxu1 }
0x124c   : > { %v4379_v51 = vld [vmem:[#allocation11] ss:$0 sm:$0xff] }
0x124d   : > { %v1613_v52 = vadd.f32 %v1611_v50, %v6131_v42 }
0x124f   : > { %5231 = vtanh.f32 %v1613_v52  ;;  %v4376_v54 = vmul.f32 -1.442695, %v1613_v52 }
0x1251   : > { %5233 = vpow2.f32 %v4376_v54 }
0x1259   : > { %v5232_v53 = vpop.eup %5231 }
0x125a   : > { %1626 = vrot.lane.b32.xlu1 %v5232_v53, %s5713_s15 }
0x125b   : > { %v5234_v55 = vpop.eup %5233 }
0x125c   : > { %v1617_v56 = vadd.f32 1.0, %v5234_v55 }
0x125e   : > { %5235 = vrcp.f32 %v1617_v56 }
0x1268   : > { %v5236_v57 = vpop.eup %5235 }
0x1269   : > { %v1624_v61 = vmul.f32 %v5236_v57, %v1622_v60 }
0x12cc   : > { %v1627_v58 = vpop.permute.xlu1 %1626 }
0x12cd   : > { %v1629_v59 = vmul.f32 %v5236_v57, %v1627_v58 }
0x12cf   : > { %1631 = vrot.lane.b32.xlu0 %v1629_v59, %s5714_s19 }
0x1341   : > { %v1632_v44 = vpop.permute.xlu0 %1631 }
0x1342   : > { %v1634_v62 = vadd.f32 %v1632_v44, %v1624_v61 }
0x1344   : > { %5237 = vtanh.f32 %v1634_v62 }
0x134e   : > { %v5238_v0 = vpop.eup %5237 }
0x134f   : > { %1637 = vrot.lane.b32.xlu1 %v5238_v0, %s5713_s15 }
0x13c1   : > { %v1638_v1 = vpop.permute.xlu1 %1637 }
0x13c2   : > { %v1640_v2 = vmul.f32 %v5236_v57, %v1638_v1 }
0x13c4   : > { %v1650_v3 = vrot.slane %v1640_v2, 4 }
0x13c6   : > { %1651 = vrot.lane.b32.xlu0 %v1650_v3, %s5714_s19 }
0x1438   : > { %v1652_v4 = vpop.permute.xlu0 %1651 }
0x1439   : > { %4664 = vmatmul.mubr.msk.f32.vlgmr.msra.gmra.mrb[8].mxu0 %vm853_vm2, %v1652_v4 }
0x143a   : > { %4685 = vmatprep.mubr.msk.f32.mxu0 %vm5711_vm1, %v5712_v30 }
0x150c   : > { %v1721_v5 = vpop.f32.mrb[8].mxu0 }
0x150d   : > { %v1726_v8 = vrot.slane %v1721_v5, 2  ;;  %v4665_v9 = vpop.f32.mrb[9].mxu0 }
0x150f   : > { %v1728_v10 = vadd.f32 %v1726_v8, %v6131_v42  ;;  %v1737_v42 = vrot.slane %v1634_v62, 6 }
0x1511   : > { %5239 = vtanh.f32 %v1728_v10  ;;  %v4378_v12 = vmul.f32 -1.442695, %v1728_v10 }
0x1513   : > { %5241 = vpow2.f32 %v4378_v12 }
0x151b   : > { %v5240_v11 = vpop.eup %5239 }
0x151c   : > { %1741 = vrot.lane.b32.xlu1 %v5240_v11, %s5713_s15 }
0x151d   : > { %v5242_v13 = vpop.eup %5241 }
0x151e   : > { %v1732_v14 = vadd.f32 1.0, %v5242_v13 }
0x1520   : > { %5243 = vrcp.f32 %v1732_v14 }
0x152a   : > { %v5244_v15 = vpop.eup %5243 }
0x152b   : > { %v1739_v19 = vmul.f32 %v5244_v15, %v1737_v42 }
0x158e   : > { %v1742_v16 = vpop.permute.xlu1 %1741 }
0x158f   : > { %v1744_v18 = vmul.f32 %v5244_v15, %v1742_v16 }
0x1591   : > { %1746 = vrot.lane.b32.xlu0 %v1744_v18, %s5714_s19 }
0x1595   : > { %1070 = vrot.lane.b32.xlu0 %v6156_v17, %s5714_s19 }
0x1599   : > { %1302 = vrot.lane.b32.xlu0 %v6186_v63, %s5714_s19 }
0x159d   : > { %1642 = vrot.lane.b32.xlu0 %v1640_v2, %s5714_s19 }
0x15a1   : > { %1859 = vrot.lane.b32.xlu0 %v6114_v35, %s5715_s16 }
0x1603   : > { %v1747_v20 = vpop.permute.xlu0 %1746 }
0x1604   : > { %v6234_v21 = vadd.f32 %v1747_v20, %v1739_v19 }
0x1606   : > { %5245 = vtanh.f32 %v6234_v21 }
0x1607   : > { %v1071_v22 = vpop.permute.xlu0 %1070 }
0x1608   : > { %1074 = vst.msk [vmem:[#allocation4] sm:$0xc] %vm1073_vm5, %v1071_v22 }
0x160b   : > { %v1303_v23 = vpop.permute.xlu0 %1302 }
0x160c   : > { %1306 = vst.msk [vmem:[#allocation4] sm:$0xc0] %vm1305_vm6, %v1303_v23 }
0x160f   : > { %v1643_v17 = vpop.permute.xlu0 %1642 }
0x1610   : > { %v5246_v63 = vpop.eup %5245  ;;  %1645 = vst.msk [vmem:[#allocation4 + $0x8] sm:$0x30] %vm1189_vm7, %v1643_v17 }
0x1611   : > { %1752 = vrot.lane.b32.xlu1 %v5246_v63, %s5713_s15 }
0x1613   : > { %v1860_v37 = vpop.permute.xlu0 %1859 }
0x1615   : > { %1186 = vrot.lane.b32.xlu1 %v6171_v41, %s5714_s19  ;;  %v6256_v41 = vpack.c.bf16 %v1856_v31, %v1855_v29 }
0x1617   : > { %4937 = vmatpush3.bf16.msra.mxu0 %v6256_v41 }
0x1618   : > { %4938 = vmatprep.subr.bf16.mxu0 %v5709_v6 }
0x1619   : > { %1527 = vrot.lane.b32.xlu1 %v6213_v45, %s5714_s19 }
0x161b   : > { %4940 = vmatpush3.bf16.msra.mxu0 %v6262_v24 }
0x161c   : > { %4947 = vmatprep.subr.bf16.mxu0 %v5709_v6 }
0x161e   : > { %4686 = vmatmul.mubr.msk.f32.vlgmr.msra.gmra.mrb[10].mxu0 %vm853_vm2, %v1860_v37 }
0x161f   : > { %4949 = vmatpush3.bf16.msra.mxu0 %v6256_v41  ;;  %4707 = vmatprep.mubr.msk.f32.mxu0 %vm5711_vm1, %v5712_v30 }
0x1620   : > { %4950 = vmatprep.subr.bf16.mxu0 %v5709_v6 }
0x1623   : > { %4952 = vmatpush3.bf16.msra.mxu0 %v6262_v24 }
0x1624   : > { %4959 = vmatprep.subr.bf16.mxu0 %v5709_v6 }
0x1683   : > { %v1753_v38 = vpop.permute.xlu1 %1752 }
0x1684   : > { %v1755_v39 = vmul.f32 %v5244_v15, %v1753_v38 }
0x1686   : > { %1757 = vrot.lane.b32.xlu1 %v1755_v39, %s5714_s19 }
0x1687   : > { %v1187_v40 = vpop.permute.xlu1 %1186 }
0x1688   : > { %1190 = vst.msk [vmem:[#allocation4] sm:$0x30] %vm1189_vm7, %v1187_v40 }
0x168b   : > { %v1528_v43 = vpop.permute.xlu1 %1527 }
0x168c   : > { %1530 = vst.msk [vmem:[#allocation4 + $0x8] sm:$0xc] %vm1073_vm5, %v1528_v43 }
0x168f   : > { %v1761_v45 = vld [vmem:[#allocation4] sm:$0xff] }
0x1690   : > { %4674 = vmatprep.mubr.msk.f32.mxu1 %vm853_vm2, %v1761_v45 }
0x16f1   : > { %v1929_v49 = vpop.f32.mrb[10].mxu0 }
0x16f2   : > { %v4687_v50 = vpop.f32.mrb[11].mxu0 }
0x16f8   : > { %v1758_v46 = vpop.permute.xlu1 %1757 }
0x16f9   : > { %1760 = vst.msk [vmem:[#allocation4 + $0x8] sm:$0xc0] %vm1305_vm6, %v1758_v46  ;;  %4059 = vst.msk [vmem:[#allocation2 - $0x6] sm:$0xc0] %vm1305_vm6, %v1758_v46 }
0x1700   : > { %v1762_v48 = vld [vmem:[#allocation4 + $0x8] sm:$0xff] }
0x1701   : > { %4675 = vmatmul.mubr.msk.f32.vlgmr.msra.gmra.mrb[8].mxu1 %vm853_vm2, %v1762_v48 }
0x1702   : > { %4943 = vmatpush3.bf16.msra.mxu1 %v6256_v41  ;;  %4696 = vmatprep.mubr.msk.f32.mxu1 %vm5711_vm1, %v5712_v30 }
0x1703   : > { %4944 = vmatprep.subr.bf16.mxu1 %v5709_v6 }
0x1706   : > { %4946 = vmatpush3.bf16.msra.mxu1 %v6262_v24 }
0x1707   : > { %4953 = vmatprep.subr.bf16.mxu1 %v5709_v6 }
0x17d4   : > { %v4676_v52 = vpop.f32.mrb[8].mxu1 }
0x17d5   : > { %v6288_v53 = vadd.f32 %v4676_v52, %v4379_v51  ;;  %v1846_v54 = vpop.f32.mrb[9].mxu1 }
0x17d6   : > { %v6290_v55 = vadd.f32 %v4379_v51, %v1846_v54 }
0x17d8   : > { %v1933_v56 = vadd.f32 %v1929_v49, %v6290_v55 }
0x17da   : > { %5247 = vtanh.f32 %v1933_v56  ;;  %v4383_v58 = vmul.f32 -1.442695, %v1933_v56 }
0x17dc   : > { %5249 = vpow2.f32 %v4383_v58 }
0x17e4   : > { %v5248_v57 = vpop.eup %5247 }
0x17e5   : > { %1943 = vrot.lane.b32.xlu1 %v5248_v57, %s5713_s15 }
0x17e6   : > { %v5250_v59 = vpop.eup %5249 }
0x17e7   : > { %v1937_v60 = vadd.f32 1.0, %v5250_v59 }
0x17e9   : > { %5251 = vrcp.f32 %v1937_v60 }
0x17f3   : > { %v5252_v61 = vpop.eup %5251 }
0x17f4   : > { %v1941_v0 = vmul.f32 %v5252_v61, %v6137_v47 }
0x1857   : > { %v1944_v44 = vpop.permute.xlu1 %1943 }
0x1858   : > { %v1946_v62 = vmul.f32 %v5252_v61, %v1944_v44 }
0x185a   : > { %1948 = vrot.lane.b32.xlu0 %v1946_v62, %s5714_s19 }
0x18cc   : > { %v1949_v1 = vpop.permute.xlu0 %1948 }
0x18cd   : > { %v1951_v2 = vadd.f32 %v1949_v1, %v1941_v0 }
0x18cf   : > { %5253 = vtanh.f32 %v1951_v2  ;;  %v2051_v19 = vrot.slane %v1951_v2, 6 }
0x18d9   : > { %v5254_v3 = vpop.eup %5253 }
0x18da   : > { %1954 = vrot.lane.b32.xlu1 %v5254_v3, %s5713_s15 }
0x194c   : > { %v1955_v4 = vpop.permute.xlu1 %1954 }
0x194d   : > { %v1957_v5 = vmul.f32 %v5252_v61, %v1955_v4 }
0x194f   : > { %1959 = vrot.lane.b32.xlu0 %v1957_v5, %s5714_s19 }
0x19c1   : > { %v1960_v8 = vpop.permute.xlu0 %1959 }
0x19c2   : > { %1962 = vst.msk [vmem:[#allocation4] sm:$0x3] %vm960_vm4, %v1960_v8  ;;  %4697 = vmatmul.mubr.msk.f32.vlgmr.msra.gmra.mrb[10].mxu1 %vm853_vm2, %v1960_v8 }
0x19c3   : > { %4955 = vmatpush3.bf16.msra.mxu1 %v6256_v41  ;;  %4718 = vmatprep.mubr.msk.f32.mxu1 %vm5711_vm1, %v5712_v30 }
0x19c4   : > { %4956 = vmatprep.subr.bf16.mxu1 %v5709_v6 }
0x19c7   : > { %4958 = vmatpush3.bf16.msra.mxu1 %v6262_v24 }
0x19c8   : > { %4965 = vmatprep.subr.bf16.mxu1 %v5709_v6 }
0x1a95   : > { %v2035_v47 = vpop.f32.mrb[10].mxu1 }
0x1a96   : > { %v2040_v9 = vrot.slane %v2035_v47, 6  ;;  %v4698_v10 = vpop.f32.mrb[11].mxu1 }
0x1a98   : > { %v2042_v11 = vadd.f32 %v2040_v9, %v6290_v55 }
0x1a9a   : > { %5255 = vtanh.f32 %v2042_v11  ;;  %v4385_v13 = vmul.f32 -1.442695, %v2042_v11 }
0x1a9c   : > { %5257 = vpow2.f32 %v4385_v13 }
0x1aa4   : > { %v5256_v12 = vpop.eup %5255 }
0x1aa5   : > { %2055 = vrot.lane.b32.xlu1 %v5256_v12, %s5713_s15 }
0x1aa6   : > { %v5258_v14 = vpop.eup %5257 }
0x1aa7   : > { %v2046_v15 = vadd.f32 1.0, %v5258_v14 }
0x1aa9   : > { %5259 = vrcp.f32 %v2046_v15 }
0x1ab3   : > { %v5260_v16 = vpop.eup %5259 }
0x1ab4   : > { %v2053_v20 = vmul.f32 %v5260_v16, %v2051_v19 }
0x1b17   : > { %v2056_v18 = vpop.permute.xlu1 %2055 }
0x1b18   : > { %v2058_v42 = vmul.f32 %v5260_v16, %v2056_v18 }
0x1b1a   : > { %2060 = vrot.lane.b32.xlu0 %v2058_v42, %s5714_s19 }
0x1b8c   : > { %v2061_v22 = vpop.permute.xlu0 %2060 }
0x1b8d   : > { %v2063_v23 = vadd.f32 %v2061_v22, %v2053_v20 }
0x1b8f   : > { %5261 = vtanh.f32 %v2063_v23  ;;  %v2166_v43 = vrot.slane %v2063_v23, 6 }
0x1b99   : > { %v5262_v17 = vpop.eup %5261 }
0x1b9a   : > { %2066 = vrot.lane.b32.xlu1 %v5262_v17, %s5713_s15 }
0x1c0c   : > { %v2067_v63 = vpop.permute.xlu1 %2066 }
0x1c0d   : > { %v6310_v25 = vmul.f32 %v5260_v16, %v2067_v63 }
0x1c0f   : > { %v2079_v26 = vrot.slane %v6310_v25, 2 }
0x1c11   : > { %2080 = vrot.lane.b32.xlu0 %v2079_v26, %s5714_s19 }
0x1c83   : > { %v2081_v27 = vpop.permute.xlu0 %2080 }
0x1c84   : > { %4708 = vmatmul.mubr.msk.f32.vlgmr.msra.gmra.mrb[12].mxu0 %vm853_vm2, %v2081_v27 }
0x1c85   : > { %4961 = vmatpush3.bf16.msra.mxu0 %v6256_v41  ;;  %4729 = vmatprep.mubr.msk.f32.mxu0 %vm5711_vm1, %v5712_v30 }
0x1c86   : > { %4962 = vmatprep.subr.bf16.mxu0 %v5709_v6 }
0x1c89   : > { %4964 = vmatpush3.bf16.msra.mxu0 %v6262_v24 }
0x1c8a   : > { %4971 = vmatprep.subr.bf16.mxu0 %v5709_v6 }
0x1d57   : > { %v2150_v29 = vpop.f32.mrb[12].mxu0 }
0x1d58   : > { %v2155_v31 = vrot.slane %v2150_v29, 4  ;;  %v4709_v7 = vpop.f32.mrb[13].mxu0 }
0x1d5a   : > { %v2157_v32 = vadd.f32 %v2155_v31, %v6290_v55 }
0x1d5c   : > { %5263 = vtanh.f32 %v2157_v32  ;;  %v4387_v34 = vmul.f32 -1.442695, %v2157_v32 }
0x1d5e   : > { %5265 = vpow2.f32 %v4387_v34 }
0x1d66   : > { %v5264_v33 = vpop.eup %5263 }
0x1d67   : > { %2170 = vrot.lane.b32.xlu1 %v5264_v33, %s5713_s15 }
0x1d68   : > { %v5266_v36 = vpop.eup %5265 }
0x1d69   : > { %v2161_v37 = vadd.f32 1.0, %v5266_v36 }
0x1d6b   : > { %5267 = vrcp.f32 %v2161_v37 }
0x1d75   : > { %v5268_v38 = vpop.eup %5267 }
0x1d76   : > { %v2168_v45 = vmul.f32 %v5268_v38, %v2166_v43 }
0x1dd9   : > { %v2171_v39 = vpop.permute.xlu1 %2170 }
0x1dda   : > { %v2173_v40 = vmul.f32 %v5268_v38, %v2171_v39 }
0x1ddc   : > { %2175 = vrot.lane.b32.xlu0 %v2173_v40, %s5714_s19 }
0x1e4e   : > { %v2176_v46 = vpop.permute.xlu0 %2175 }
0x1e4f   : > { %v2178_v48 = vadd.f32 %v2176_v46, %v2168_v45 }
0x1e51   : > { %5269 = vtanh.f32 %v2178_v48  ;;  %v2281_v3 = vrot.slane %v2178_v48, 6 }
0x1e5b   : > { %v5270_v49 = vpop.eup %5269 }
0x1e5c   : > { %2181 = vrot.lane.b32.xlu1 %v5270_v49, %s5713_s15 }
0x1ece   : > { %v2182_v50 = vpop.permute.xlu1 %2181 }
0x1ecf   : > { %v6325_v51 = vmul.f32 %v5268_v38, %v2182_v50 }
0x1ed1   : > { %v2194_v52 = vrot.slane %v6325_v51, 4 }
0x1ed3   : > { %2195 = vrot.lane.b32.xlu0 %v2194_v52, %s5714_s19 }
0x1f45   : > { %v2196_v54 = vpop.permute.xlu0 %2195 }
0x1f46   : > { %4719 = vmatmul.mubr.msk.f32.vlgmr.msra.gmra.mrb[12].mxu1 %vm853_vm2, %v2196_v54 }
0x1f47   : > { %4967 = vmatpush3.bf16.msra.mxu1 %v6256_v41  ;;  %4740 = vmatprep.mubr.msk.f32.mxu1 %vm5711_vm1, %v5712_v30 }
0x1f48   : > { %4968 = vmatprep.subr.bf16.mxu1 %v5709_v6 }
0x1f4b   : > { %4970 = vmatpush3.bf16.msra.mxu1 %v6262_v24 }
0x1f4c   : > { %4977 = vmatprep.subr.bf16.mxu1 %v5709_v6 }
0x2019   : > { %v2265_v56 = vpop.f32.mrb[12].mxu1 }
0x201a   : > { %v2270_v57 = vrot.slane %v2265_v56, 2  ;;  %v4720_v58 = vpop.f32.mrb[13].mxu1 }
0x201c   : > { %v2272_v59 = vadd.f32 %v2270_v57, %v6290_v55 }
0x201e   : > { %5271 = vtanh.f32 %v2272_v59  ;;  %v4389_v61 = vmul.f32 -1.442695, %v2272_v59 }
0x2020   : > { %5273 = vpow2.f32 %v4389_v61 }
0x2028   : > { %v5272_v60 = vpop.eup %5271 }
0x2029   : > { %2285 = vrot.lane.b32.xlu1 %v5272_v60, %s5713_s15 }
0x202a   : > { %v5274_v44 = vpop.eup %5273 }
0x202b   : > { %v2276_v62 = vadd.f32 1.0, %v5274_v44 }
0x202d   : > { %5275 = vrcp.f32 %v2276_v62 }
0x2037   : > { %v5276_v0 = vpop.eup %5275 }
0x2038   : > { %v2283_v4 = vmul.f32 %v5276_v0, %v2281_v3 }
0x209b   : > { %v2286_v1 = vpop.permute.xlu1 %2285 }
0x209c   : > { %v2288_v2 = vmul.f32 %v5276_v0, %v2286_v1 }
0x209e   : > { %2290 = vrot.lane.b32.xlu0 %v2288_v2, %s5714_s19 }
0x2110   : > { %v2291_v5 = vpop.permute.xlu0 %2290 }
0x2111   : > { %v2293_v8 = vadd.f32 %v2291_v5, %v2283_v4 }
0x2113   : > { %5277 = vtanh.f32 %v2293_v8  ;;  %v2393_v23 = vrot.slane %v2293_v8, 6 }
0x211d   : > { %v5278_v55 = vpop.eup %5277 }
0x211e   : > { %2296 = vrot.lane.b32.xlu1 %v5278_v55, %s5713_s15 }
0x2190   : > { %v2297_v47 = vpop.permute.xlu1 %2296 }
0x2191   : > { %v6340_v9 = vmul.f32 %v5276_v0, %v2297_v47 }
0x2193   : > { %v2309_v10 = vrot.slane %v6340_v9, 6 }
0x2195   : > { %2310 = vrot.lane.b32.xlu0 %v2309_v10, %s5714_s19 }
0x2207   : > { %v2311_v11 = vpop.permute.xlu0 %2310 }
0x2208   : > { %4730 = vmatmul.mubr.msk.f32.vlgmr.msra.gmra.mrb[14].mxu0 %vm853_vm2, %v2311_v11 }
0x2209   : > { %4973 = vmatpush3.bf16.msra.mxu0 %v6256_v41  ;;  %4751 = vmatprep.mubr.msk.f32.mxu0 %vm5711_vm1, %v5712_v30 }
0x220a   : > { %4974 = vmatprep.subr.bf16.mxu0 %v5709_v6 }
0x220d   : > { %4976 = vmatpush3.bf16.msra.mxu0 %v6262_v24 }
0x22db   : > { %v2380_v12 = vpop.f32.mrb[14].mxu0 }
0x22dc   : > { %v2384_v13 = vadd.f32 %v2380_v12, %v6288_v53  ;;  %v4731_v14 = vpop.f32.mrb[15].mxu0 }
0x22de   : > { %5279 = vtanh.f32 %v2384_v13  ;;  %v4391_v16 = vmul.f32 -1.442695, %v2384_v13 }
0x22e0   : > { %5281 = vpow2.f32 %v4391_v16 }
0x22e8   : > { %v5280_v15 = vpop.eup %5279 }
0x22e9   : > { %2397 = vrot.lane.b32.xlu1 %v5280_v15, %s5713_s15 }
0x22ea   : > { %v5282_v18 = vpop.eup %5281 }
0x22eb   : > { %v2388_v42 = vadd.f32 1.0, %v5282_v18 }
0x22ed   : > { %5283 = vrcp.f32 %v2388_v42 }
0x22f7   : > { %v5284_v19 = vpop.eup %5283 }
0x22f8   : > { %v2395_v17 = vmul.f32 %v5284_v19, %v2393_v23 }
0x235b   : > { %v2398_v20 = vpop.permute.xlu1 %2397 }
0x235c   : > { %v2400_v22 = vmul.f32 %v5284_v19, %v2398_v20 }
0x235e   : > { %2402 = vrot.lane.b32.xlu0 %v2400_v22, %s5714_s19 }
0x23d0   : > { %v2403_v63 = vpop.permute.xlu0 %2402 }
0x23d1   : > { %v2405_v26 = vadd.f32 %v2403_v63, %v2395_v17 }
0x23d3   : > { %5285 = vtanh.f32 %v2405_v26 }
0x23dd   : > { %v5286_v27 = vpop.eup %5285 }
0x23de   : > { %2408 = vrot.lane.b32.xlu1 %v5286_v27, %s5713_s15 }
0x2450   : > { %v2409_v29 = vpop.permute.xlu1 %2408 }
0x2451   : > { %v2411_v31 = vmul.f32 %v5284_v19, %v2409_v29 }
0x2453   : > { %2413 = vrot.lane.b32.xlu0 %v2411_v31, %s5714_s19 }
0x24c5   : > { %v2414_v7 = vpop.permute.xlu0 %2413 }
0x24c6   : > { %2416 = vst.msk [vmem:[#allocation4 + $0x8] sm:$0x3] %vm960_vm4, %v2414_v7  ;;  %4741 = vmatmul.mubr.msk.f32.vlgmr.msra.gmra.mrb[14].mxu1 %vm853_vm2, %v2414_v7 }
0x24c7   : > { %4979 = vmatpush3.bf16.msra.mxu1 %v6256_v41  ;;  %4762 = vmatprep.mubr.msk.f32.mxu1 %vm5711_vm1, %v5712_v30 }
0x24c8   : > { %4980 = vmatprep.subr.bf16.mxu1 %v5709_v6 }
0x24cb   : > { %4982 = vmatpush3.bf16.msra.mxu1 %v6262_v24  ;;  %v2505_v24 = vrot.slane %v2405_v26, 6 }
0x24cc   : > { %4991 = vmatprep.subr.bf16.mxu1 %v5709_v6 }
0x2599   : > { %v2489_v32 = vpop.f32.mrb[14].mxu1 }
0x259a   : > { %v2494_v33 = vrot.slane %v2489_v32, 6  ;;  %v4742_v34 = vpop.f32.mrb[15].mxu1 }
0x259b   : > { %v2762_v34 = vld [vmem:[#allocation13 + $0x8] sm:$0xff] }
0x259c   : > { %v2496_v36 = vadd.f32 %v2494_v33, %v6288_v53 }
0x259e   : > { %5287 = vtanh.f32 %v2496_v36  ;;  %v4393_v38 = vmul.f32 -1.442695, %v2496_v36 }
0x25a0   : > { %5289 = vpow2.f32 %v4393_v38  ;;  %v2854_v38 = vld [vmem:[#allocation14 + $0x8] sm:$0xff] }
0x25a8   : > { %v5288_v37 = vpop.eup %5287 }
0x25a9   : > { %2509 = vrot.lane.b32.xlu1 %v5288_v37, %s5713_s15  ;;  %v2853_v37 = vld [vmem:[#allocation14] sm:$0xff] }
0x25aa   : > { %v5290_v41 = vpop.eup %5289 }
0x25ab   : > { %v2500_v39 = vadd.f32 1.0, %v5290_v41  ;;  %v2763_v41 = vld [vmem:[#allocation13 + $0x10] sm:$0xff] }
0x25ad   : > { %5291 = vrcp.f32 %v2500_v39  ;;  %v6402_v39 = vpack.c.bf16 %v2854_v38, %v2853_v37 }
0x25b7   : > { %v5292_v40 = vpop.eup %5291 }
0x25b8   : > { %v2507_v46 = vmul.f32 %v5292_v40, %v2505_v24 }
0x261b   : > { %v2510_v43 = vpop.permute.xlu1 %2509 }
0x261c   : > { %v2512_v45 = vmul.f32 %v5292_v40, %v2510_v43  ;;  %v2855_v43 = vld [vmem:[#allocation14 + $0x10] sm:$0xff] }
0x261e   : > { %2514 = vrot.lane.b32.xlu0 %v2512_v45, %s5714_s19  ;;  %v2856_v45 = vld [vmem:[#allocation14 + $0x18] sm:$0xff] }
0x2690   : > { %v2515_v48 = vpop.permute.xlu0 %2514 }
0x2691   : > { %v2517_v49 = vadd.f32 %v2515_v48, %v2507_v46 }
0x2693   : > { %5293 = vtanh.f32 %v2517_v49  ;;  %v2620_v5 = vrot.slane %v2517_v49, 6 }
0x269d   : > { %v5294_v50 = vpop.eup %5293 }
0x269e   : > { %2520 = vrot.lane.b32.xlu1 %v5294_v50, %s5713_s15 }
0x2710   : > { %v2521_v52 = vpop.permute.xlu1 %2520 }
0x2711   : > { %v6367_v54 = vmul.f32 %v5292_v40, %v2521_v52  ;;  %v2764_v40 = vld [vmem:[#allocation13 + $0x18] sm:$0xff] }
0x2712   : > { %v4987_v24 = vpack.c.bf16 %v2764_v40, %v2763_v41 }
0x2713   : > { %v2533_v56 = vrot.slane %v6367_v54, 2 }
0x2715   : > { %2534 = vrot.lane.b32.xlu0 %v2533_v56, %s5714_s19 }
0x2787   : > { %v2535_v57 = vpop.permute.xlu0 %2534 }
0x2788   : > { %4752 = vmatmul.mubr.msk.f32.vlgmr.msra.gmra.mrb[16].mxu0 %vm853_vm2, %v2535_v57 }
0x285b   : > { %v2604_v58 = vpop.f32.mrb[16].mxu0 }
0x285c   : > { %v2609_v59 = vrot.slane %v2604_v58, 4  ;;  %v4753_v60 = vpop.f32.mrb[17].mxu0 }
0x285d   : > { %v4398_v60 = vld [vmem:[#allocation16] ss:$0 sm:$0xff] }
0x285e   : > { %v2611_v61 = vadd.f32 %v2609_v59, %v6288_v53 }
0x2860   : > { %5295 = vtanh.f32 %v2611_v61  ;;  %v4395_v62 = vmul.f32 -1.442695, %v2611_v61 }
0x2862   : > { %5297 = vpow2.f32 %v4395_v62 }
0x286a   : > { %v5296_v44 = vpop.eup %5295 }
0x286b   : > { %2624 = vrot.lane.b32.xlu1 %v5296_v44, %s5713_s15 }
0x286c   : > { %v5298_v0 = vpop.eup %5297 }
0x286d   : > { %v2615_v1 = vadd.f32 1.0, %v5298_v0 }
0x286f   : > { %5299 = vrcp.f32 %v2615_v1 }
0x2879   : > { %v5300_v2 = vpop.eup %5299 }
0x287a   : > { %v2622_v8 = vmul.f32 %v5300_v2, %v2620_v5 }
0x28dd   : > { %v2625_v3 = vpop.permute.xlu1 %2624 }
0x28de   : > { %v2627_v4 = vmul.f32 %v5300_v2, %v2625_v3 }
0x28e0   : > { %2629 = vrot.lane.b32.xlu0 %v2627_v4, %s5714_s19 }
0x2952   : > { %v2630_v55 = vpop.permute.xlu0 %2629 }
0x2953   : > { %v2632_v47 = vadd.f32 %v2630_v55, %v2622_v8 }
0x2955   : > { %5301 = vtanh.f32 %v2632_v47  ;;  %v2735_v27 = vrot.slane %v2632_v47, 6 }
0x295f   : > { %v5302_v10 = vpop.eup %5301 }
0x2960   : > { %2635 = vrot.lane.b32.xlu1 %v5302_v10, %s5713_s15 }
0x29d2   : > { %v2636_v11 = vpop.permute.xlu1 %2635 }
0x29d3   : > { %v2638_v12 = vmul.f32 %v5300_v2, %v2636_v11 }
0x29d5   : > { %v2648_v13 = vrot.slane %v2638_v12, 4 }
0x29d7   : > { %2649 = vrot.lane.b32.xlu0 %v2648_v13, %s5714_s19 }
0x2a49   : > { %v2650_v14 = vpop.permute.xlu0 %2649 }
0x2a4a   : > { %4763 = vmatmul.mubr.msk.f32.vlgmr.msra.gmra.mrb[16].mxu1 %vm853_vm2, %v2650_v14 }
0x2a4b   : > { %4784 = vmatprep.mubr.msk.f32.mxu1 %vm5711_vm1, %v5712_v30  ;;  %4993 = vmatpush3.bf16.msra.mxu1 %v6402_v39 }
0x2a4c   : > { %4994 = vmatprep.subr.bf16.mxu1 %v5709_v6 }
0x2b1d   : > { %v2719_v15 = vpop.f32.mrb[16].mxu1 }
0x2b1e   : > { %v2724_v16 = vrot.slane %v2719_v15, 2  ;;  %v4764_v18 = vpop.f32.mrb[17].mxu1 }
0x2b20   : > { %v2726_v42 = vadd.f32 %v2724_v16, %v6288_v53  ;;  %v5407_v53 = vld [vmem:[#allocation3] sm:$0x3] }
0x2b22   : > { %5303 = vtanh.f32 %v2726_v42  ;;  %v4397_v20 = vmul.f32 -1.442695, %v2726_v42 }
0x2b24   : > { %5305 = vpow2.f32 %v4397_v20 }
0x2b2c   : > { %v5304_v19 = vpop.eup %5303 }
0x2b2d   : > { %2739 = vrot.lane.b32.xlu1 %v5304_v19, %s5713_s15 }
0x2b2e   : > { %v5306_v22 = vpop.eup %5305 }
0x2b2f   : > { %v2730_v23 = vadd.f32 1.0, %v5306_v22 }
0x2b31   : > { %5307 = vrcp.f32 %v2730_v23 }
0x2b3b   : > { %v5308_v17 = vpop.eup %5307 }
0x2b3c   : > { %v2737_v29 = vmul.f32 %v5308_v17, %v2735_v27 }
0x2b9f   : > { %v2740_v63 = vpop.permute.xlu1 %2739 }
0x2ba0   : > { %v2742_v26 = vmul.f32 %v5308_v17, %v2740_v63 }
0x2ba2   : > { %2744 = vrot.lane.b32.xlu0 %v2742_v26, %s5714_s19 }
0x2ba6   : > { %2071 = vrot.lane.b32.xlu0 %v6310_v25, %s5714_s19 }
0x2baa   : > { %2301 = vrot.lane.b32.xlu0 %v6340_v9, %s5714_s19 }
0x2bae   : > { %2640 = vrot.lane.b32.xlu0 %v2638_v12, %s5714_s19 }
0x2bb2   : > { %2857 = vrot.lane.b32.xlu0 %v6114_v35, %s5713_s15  ;;  %v2761_v35 = vld [vmem:[#allocation13] sm:$0xff] }
0x2bb3   : > { %v4983_v36 = vpack.c.bf16 %v2762_v34, %v2761_v35 }
0x2bb5   : > { %4984 = vmatprep.subr.bf16.mxu0 %v4983_v36 }
0x2bb6   : > { %2939 = vrot.lane.b32.xlu0 %v5407_v53, %s5715_s16  ;;  %4986 = vmatpush3.bf16.msra.mxu0 %v4983_v36 }
0x2bb7   : > { %4988 = vmatprep.subr.bf16.mxu0 %v4987_v24 }
0x2bba   : > { %4990 = vmatpush3.bf16.msra.mxu0 %v4987_v24 }
0x2bbb   : > { %4997 = vmatprep.subr.bf16.mxu0 %v5709_v6 }
0x2c14   : > { %v2745_v31 = vpop.permute.xlu0 %2744 }
0x2c15   : > { %v6391_v7 = vadd.f32 %v2745_v31, %v2737_v29 }
0x2c17   : > { %5309 = vtanh.f32 %v6391_v7 }
0x2c18   : > { %v2072_v32 = vpop.permute.xlu0 %2071 }
0x2c19   : > { %2074 = vst.msk [vmem:[#allocation4] sm:$0xc] %vm1073_vm5, %v2072_v32 }
0x2c1c   : > { %v2302_v25 = vpop.permute.xlu0 %2301 }
0x2c1d   : > { %2304 = vst.msk [vmem:[#allocation4] sm:$0xc0] %vm1305_vm6, %v2302_v25 }
0x2c20   : > { %v2641_v9 = vpop.permute.xlu0 %2640 }
0x2c21   : > { %v5310_v33 = vpop.eup %5309  ;;  %2643 = vst.msk [vmem:[#allocation4 + $0x8] sm:$0x30] %vm1189_vm7, %v2641_v9 }
0x2c22   : > { %2750 = vrot.lane.b32.xlu1 %v5310_v33, %s5713_s15 }
0x2c24   : > { %v2858_v46 = vpop.permute.xlu0 %2857 }
0x2c26   : > { %2186 = vrot.lane.b32.xlu1 %v6325_v51, %s5714_s19  ;;  %v6405_v51 = vpack.c.bf16 %v2856_v45, %v2855_v43 }
0x2c28   : > { %4996 = vmatpush3.bf16.msra.mxu1 %v6405_v51  ;;  %v2940_v10 = vpop.permute.xlu0 %2939 }
0x2c29   : > { %5003 = vmatprep.subr.bf16.mxu1 %v5709_v6 }
0x2c2a   : > { %2525 = vrot.lane.b32.xlu1 %v6367_v54, %s5714_s19 }
0x2c2b   : > { %4785 = vmatmul.mubr.msk.f32.vlgmr.msra.gmra.mrb[18].mxu1 %vm853_vm2, %v2858_v46 }
0x2c2c   : > { %5005 = vmatpush3.bf16.msra.mxu1 %v6402_v39  ;;  %4806 = vmatprep.mubr.msk.f32.mxu1 %vm5711_vm1, %v5712_v30 }
0x2c2d   : > { %5006 = vmatprep.subr.bf16.mxu1 %v5709_v6 }
0x2c30   : > { %5008 = vmatpush3.bf16.msra.mxu1 %v6405_v51 }
0x2c31   : > { %5015 = vmatprep.subr.bf16.mxu1 %v5709_v6 }
0x2c94   : > { %v2751_v48 = vpop.permute.xlu1 %2750 }
0x2c95   : > { %v6412_v49 = vmul.f32 %v5308_v17, %v2751_v48 }
0x2c97   : > { %2755 = vrot.lane.b32.xlu1 %v6412_v49, %s5714_s19 }
0x2c98   : > { %v2187_v50 = vpop.permute.xlu1 %2186 }
0x2c99   : > { %2189 = vst.msk [vmem:[#allocation4] sm:$0x30] %vm1189_vm7, %v2187_v50 }
0x2c9c   : > { %v2526_v52 = vpop.permute.xlu1 %2525 }
0x2c9d   : > { %2528 = vst.msk [vmem:[#allocation4 + $0x8] sm:$0xc] %vm1073_vm5, %v2526_v52 }
0x2ca0   : > { %v2759_v54 = vld [vmem:[#allocation4] sm:$0xff] }
0x2ca1   : > { %4773 = vmatprep.mubr.msk.f32.mxu0 %vm853_vm2, %v2759_v54 }
0x2cfe   : > { %v2927_v58 = vpop.f32.mrb[18].mxu1 }
0x2cff   : > { %v4786_v59 = vpop.f32.mrb[19].mxu1 }
0x2d09   : > { %v2756_v56 = vpop.permute.xlu1 %2755 }
0x2d0a   : > { %2758 = vst.msk [vmem:[#allocation4 + $0x8] sm:$0xc0] %vm1305_vm6, %v2756_v56 }
0x2d11   : > { %v2760_v57 = vld [vmem:[#allocation4 + $0x8] sm:$0xff] }
0x2d12   : > { %4774 = vmatmul.mubr.msk.f32.vlgmr.msra.gmra.mrb[18].mxu0 %vm853_vm2, %v2760_v57 }
0x2d13   : > { %4999 = vmatpush3.bf16.msra.mxu0 %v6402_v39  ;;  %4795 = vmatprep.mubr.msk.f32.mxu0 %vm5711_vm1, %v5712_v30 }
0x2d14   : > { %5000 = vmatprep.subr.bf16.mxu0 %v5709_v6 }
0x2d17   : > { %5002 = vmatpush3.bf16.msra.mxu0 %v6405_v51 }
0x2d18   : > { %5009 = vmatprep.subr.bf16.mxu0 %v5709_v6 }
0x2de5   : > { %v4775_v61 = vpop.f32.mrb[18].mxu0 }
0x2de6   : > { %v6433_v44 = vadd.f32 %v4775_v61, %v4398_v60  ;;  %v2844_v62 = vpop.f32.mrb[19].mxu0 }
0x2de7   : > { %v6435_v0 = vadd.f32 %v4398_v60, %v2844_v62 }
0x2de9   : > { %v2931_v1 = vadd.f32 %v2927_v58, %v6435_v0 }
0x2deb   : > { %5311 = vtanh.f32 %v2931_v1  ;;  %v4402_v3 = vmul.f32 -1.442695, %v2931_v1 }
0x2ded   : > { %5313 = vpow2.f32 %v4402_v3 }
0x2df5   : > { %v5312_v2 = vpop.eup %5311 }
0x2df6   : > { %2944 = vrot.lane.b32.xlu1 %v5312_v2, %s5713_s15 }
0x2df7   : > { %v5314_v4 = vpop.eup %5313 }
0x2df8   : > { %v2935_v5 = vadd.f32 1.0, %v5314_v4 }
0x2dfa   : > { %5315 = vrcp.f32 %v2935_v5 }
0x2e04   : > { %v5316_v8 = vpop.eup %5315 }
0x2e05   : > { %v2942_v11 = vmul.f32 %v5316_v8, %v2940_v10 }
0x2e68   : > { %v2945_v55 = vpop.permute.xlu1 %2944 }
0x2e69   : > { %v2947_v47 = vmul.f32 %v5316_v8, %v2945_v55 }
0x2e6b   : > { %2949 = vrot.lane.b32.xlu1 %v2947_v47, %s5714_s19 }
0x2edd   : > { %v2950_v12 = vpop.permute.xlu1 %2949 }
0x2ede   : > { %v2952_v13 = vadd.f32 %v2950_v12, %v2942_v11 }
0x2ee0   : > { %5317 = vtanh.f32 %v2952_v13  ;;  %v3052_v31 = vrot.slane %v2952_v13, 6 }
0x2eea   : > { %v5318_v14 = vpop.eup %5317 }
0x2eeb   : > { %2955 = vrot.lane.b32.xlu0 %v5318_v14, %s5713_s15 }
0x2f5d   : > { %v2956_v15 = vpop.permute.xlu0 %2955 }
0x2f5e   : > { %v2958_v16 = vmul.f32 %v5316_v8, %v2956_v15 }
0x2f60   : > { %2960 = vrot.lane.b32.xlu1 %v2958_v16, %s5714_s19 }
0x2fd2   : > { %v2961_v18 = vpop.permute.xlu1 %2960 }
0x2fd3   : > { %2963 = vst.msk [vmem:[#allocation4] sm:$0x3] %vm960_vm4, %v2961_v18  ;;  %4796 = vmatmul.mubr.msk.f32.vlgmr.msra.gmra.mrb[20].mxu0 %vm853_vm2, %v2961_v18 }
0x2fd4   : > { %5011 = vmatpush3.bf16.msra.mxu0 %v6402_v39  ;;  %4817 = vmatprep.mubr.msk.f32.mxu0 %vm5711_vm1, %v5712_v30 }
0x2fd5   : > { %5012 = vmatprep.subr.bf16.mxu0 %v5709_v6 }
0x2fd8   : > { %5014 = vmatpush3.bf16.msra.mxu0 %v6405_v51 }
0x2fd9   : > { %5021 = vmatprep.subr.bf16.mxu0 %v5709_v6 }
0x30a6   : > { %v3036_v42 = vpop.f32.mrb[20].mxu0 }
0x30a7   : > { %v3041_v19 = vrot.slane %v3036_v42, 6  ;;  %v4797_v20 = vpop.f32.mrb[21].mxu0 }
0x30a9   : > { %v3043_v22 = vadd.f32 %v3041_v19, %v6435_v0 }
0x30ab   : > { %5319 = vtanh.f32 %v3043_v22  ;;  %v4404_v17 = vmul.f32 -1.442695, %v3043_v22 }
0x30ad   : > { %5321 = vpow2.f32 %v4404_v17 }
0x30b5   : > { %v5320_v23 = vpop.eup %5319 }
0x30b6   : > { %3056 = vrot.lane.b32.xlu0 %v5320_v23, %s5713_s15 }
0x30b7   : > { %v5322_v63 = vpop.eup %5321 }
0x30b8   : > { %v3047_v26 = vadd.f32 1.0, %v5322_v63 }
0x30ba   : > { %5323 = vrcp.f32 %v3047_v26 }
0x30c4   : > { %v5324_v53 = vpop.eup %5323 }
0x30c5   : > { %v3054_v32 = vmul.f32 %v5324_v53, %v3052_v31 }
0x3128   : > { %v3057_v27 = vpop.permute.xlu0 %3056 }
0x3129   : > { %v3059_v29 = vmul.f32 %v5324_v53, %v3057_v27 }
0x312b   : > { %3061 = vrot.lane.b32.xlu1 %v3059_v29, %s5714_s19 }
0x319d   : > { %v3062_v25 = vpop.permute.xlu1 %3061 }
0x319e   : > { %v3064_v9 = vadd.f32 %v3062_v25, %v3054_v32 }
0x31a0   : > { %5325 = vtanh.f32 %v3064_v9  ;;  %v3167_v56 = vrot.slane %v3064_v9, 6 }
0x31aa   : > { %v5326_v33 = vpop.eup %5325 }
0x31ab   : > { %3067 = vrot.lane.b32.xlu0 %v5326_v33, %s5713_s15 }
0x321d   : > { %v3068_v35 = vpop.permute.xlu0 %3067 }
0x321e   : > { %v6454_v34 = vmul.f32 %v5324_v53, %v3068_v35 }
0x3220   : > { %v3080_v36 = vrot.slane %v6454_v34, 2 }
0x3222   : > { %3081 = vrot.lane.b32.xlu1 %v3080_v36, %s5714_s19 }
0x3294   : > { %v3082_v37 = vpop.permute.xlu1 %3081 }
0x3295   : > { %4807 = vmatmul.mubr.msk.f32.vlgmr.msra.gmra.mrb[20].mxu1 %vm853_vm2, %v3082_v37 }
0x3296   : > { %5017 = vmatpush3.bf16.msra.mxu1 %v6402_v39  ;;  %4828 = vmatprep.mubr.msk.f32.mxu1 %vm5711_vm1, %v5712_v30 }
0x3297   : > { %5018 = vmatprep.subr.bf16.mxu1 %v5709_v6 }
0x329a   : > { %5020 = vmatpush3.bf16.msra.mxu1 %v6405_v51 }
0x329b   : > { %5027 = vmatprep.subr.bf16.mxu1 %v5709_v6 }
0x3368   : > { %v3151_v38 = vpop.f32.mrb[20].mxu1 }
0x3369   : > { %v3156_v41 = vrot.slane %v3151_v38, 4  ;;  %v4808_v40 = vpop.f32.mrb[21].mxu1 }
0x336b   : > { %v3158_v43 = vadd.f32 %v3156_v41, %v6435_v0 }
0x336d   : > { %5327 = vtanh.f32 %v3158_v43  ;;  %v4406_v24 = vmul.f32 -1.442695, %v3158_v43 }
0x336f   : > { %5329 = vpow2.f32 %v4406_v24 }
0x3377   : > { %v5328_v45 = vpop.eup %5327 }
0x3378   : > { %3171 = vrot.lane.b32.xlu0 %v5328_v45, %s5713_s15 }
0x3379   : > { %v5330_v46 = vpop.eup %5329 }
0x337a   : > { %v3162_v48 = vadd.f32 1.0, %v5330_v46 }
0x337c   : > { %5331 = vrcp.f32 %v3162_v48 }
0x3386   : > { %v5332_v50 = vpop.eup %5331 }
0x3387   : > { %v3169_v57 = vmul.f32 %v5332_v50, %v3167_v56 }
0x33ea   : > { %v3172_v52 = vpop.permute.xlu0 %3171 }
0x33eb   : > { %v3174_v54 = vmul.f32 %v5332_v50, %v3172_v52 }
0x33ed   : > { %3176 = vrot.lane.b32.xlu1 %v3174_v54, %s5714_s19 }
0x345f   : > { %v3177_v58 = vpop.permute.xlu1 %3176 }
0x3460   : > { %v3179_v59 = vadd.f32 %v3177_v58, %v3169_v57 }
0x3462   : > { %5333 = vtanh.f32 %v3179_v59  ;;  %v3282_v15 = vrot.slane %v3179_v59, 6 }
0x346c   : > { %v5334_v60 = vpop.eup %5333 }
0x346d   : > { %3182 = vrot.lane.b32.xlu0 %v5334_v60, %s5713_s15 }
0x34df   : > { %v3183_v61 = vpop.permute.xlu0 %3182 }
0x34e0   : > { %v6469_v62 = vmul.f32 %v5332_v50, %v3183_v61 }
0x34e2   : > { %v3195_v1 = vrot.slane %v6469_v62, 4 }
0x34e4   : > { %3196 = vrot.lane.b32.xlu1 %v3195_v1, %s5714_s19 }
0x3556   : > { %v3197_v2 = vpop.permute.xlu1 %3196 }
0x3557   : > { %4818 = vmatmul.mubr.msk.f32.vlgmr.msra.gmra.mrb[22].mxu0 %vm853_vm2, %v3197_v2 }
0x3558   : > { %5023 = vmatpush3.bf16.msra.mxu0 %v6402_v39  ;;  %4839 = vmatprep.mubr.msk.f32.mxu0 %vm5711_vm1, %v5712_v30 }
0x3559   : > { %5024 = vmatprep.subr.bf16.mxu0 %v5709_v6 }
0x355c   : > { %5026 = vmatpush3.bf16.msra.mxu0 %v6405_v51 }
0x355d   : > { %5033 = vmatprep.subr.bf16.mxu0 %v5709_v6 }
0x362a   : > { %v3266_v3 = vpop.f32.mrb[22].mxu0 }
0x362b   : > { %v3271_v4 = vrot.slane %v3266_v3, 2  ;;  %v4819_v5 = vpop.f32.mrb[23].mxu0 }
0x362d   : > { %v3273_v8 = vadd.f32 %v3271_v4, %v6435_v0 }
0x362f   : > { %5335 = vtanh.f32 %v3273_v8  ;;  %v4408_v47 = vmul.f32 -1.442695, %v3273_v8 }
0x3631   : > { %5337 = vpow2.f32 %v4408_v47 }
0x3639   : > { %v5336_v55 = vpop.eup %5335 }
0x363a   : > { %3286 = vrot.lane.b32.xlu0 %v5336_v55, %s5713_s15 }
0x363b   : > { %v5338_v10 = vpop.eup %5337 }
0x363c   : > { %v3277_v11 = vadd.f32 1.0, %v5338_v10 }
0x363e   : > { %5339 = vrcp.f32 %v3277_v11 }
0x3648   : > { %v5340_v12 = vpop.eup %5339 }
0x3649   : > { %v3284_v16 = vmul.f32 %v5340_v12, %v3282_v15 }
0x36ac   : > { %v3287_v13 = vpop.permute.xlu0 %3286 }
0x36ad   : > { %v3289_v14 = vmul.f32 %v5340_v12, %v3287_v13 }
0x36af   : > { %3291 = vrot.lane.b32.xlu1 %v3289_v14, %s5714_s19 }
0x3721   : > { %v3292_v18 = vpop.permute.xlu1 %3291 }
0x3722   : > { %v3294_v42 = vadd.f32 %v3292_v18, %v3284_v16 }
0x3724   : > { %5341 = vtanh.f32 %v3294_v42  ;;  %v3394_v33 = vrot.slane %v3294_v42, 6 }
0x372e   : > { %v5342_v0 = vpop.eup %5341 }
0x372f   : > { %3297 = vrot.lane.b32.xlu0 %v5342_v0, %s5713_s15 }
0x37a1   : > { %v3298_v19 = vpop.permute.xlu0 %3297 }
0x37a2   : > { %v6484_v20 = vmul.f32 %v5340_v12, %v3298_v19 }
0x37a4   : > { %v3310_v22 = vrot.slane %v6484_v20, 6 }
0x37a6   : > { %3311 = vrot.lane.b32.xlu1 %v3310_v22, %s5714_s19 }
0x3818   : > { %v3312_v23 = vpop.permute.xlu1 %3311 }
0x3819   : > { %4829 = vmatmul.mubr.msk.f32.vlgmr.msra.gmra.mrb[22].mxu1 %vm853_vm2, %v3312_v23 }
0x381a   : > { %5029 = vmatpush3.bf16.msra.mxu1 %v6402_v39  ;;  %4850 = vmatprep.mubr.msk.f32.mxu1 %vm5711_vm1, %v5712_v30 }
0x381b   : > { %5030 = vmatprep.subr.bf16.mxu1 %v5709_v6 }
0x381e   : > { %5032 = vmatpush3.bf16.msra.mxu1 %v6405_v51 }
0x38ec   : > { %v3381_v17 = vpop.f32.mrb[22].mxu1 }
0x38ed   : > { %v3385_v63 = vadd.f32 %v3381_v17, %v6433_v44  ;;  %v4830_v26 = vpop.f32.mrb[23].mxu1 }
0x38ef   : > { %5343 = vtanh.f32 %v3385_v63  ;;  %v4410_v27 = vmul.f32 -1.442695, %v3385_v63 }
0x38f1   : > { %5345 = vpow2.f32 %v4410_v27 }
0x38f9   : > { %v5344_v53 = vpop.eup %5343 }
0x38fa   : > { %3398 = vrot.lane.b32.xlu0 %v5344_v53, %s5713_s15 }
0x38fb   : > { %v5346_v29 = vpop.eup %5345 }
0x38fc   : > { %v3389_v31 = vadd.f32 1.0, %v5346_v29 }
0x38fe   : > { %5347 = vrcp.f32 %v3389_v31 }
0x3908   : > { %v5348_v32 = vpop.eup %5347 }
0x3909   : > { %v3396_v35 = vmul.f32 %v5348_v32, %v3394_v33 }
0x396c   : > { %v3399_v25 = vpop.permute.xlu0 %3398 }
0x396d   : > { %v3401_v9 = vmul.f32 %v5348_v32, %v3399_v25 }
0x396f   : > { %3403 = vrot.lane.b32.xlu1 %v3401_v9, %s5714_s19 }
0x39e1   : > { %v3404_v36 = vpop.permute.xlu1 %3403 }
0x39e2   : > { %v3406_v37 = vadd.f32 %v3404_v36, %v3396_v35 }
0x39e4   : > { %5349 = vtanh.f32 %v3406_v37 }
0x39ee   : > { %v5350_v38 = vpop.eup %5349 }
0x39ef   : > { %3409 = vrot.lane.b32.xlu0 %v5350_v38, %s5713_s15 }
0x3a61   : > { %v3410_v41 = vpop.permute.xlu0 %3409 }
0x3a62   : > { %v3412_v40 = vmul.f32 %v5348_v32, %v3410_v41 }
0x3a64   : > { %3414 = vrot.lane.b32.xlu1 %v3412_v40, %s5714_s19 }
0x3ad6   : > { %v3415_v43 = vpop.permute.xlu1 %3414 }
0x3ad7   : > { %3417 = vst.msk [vmem:[#allocation4 + $0x8] sm:$0x3] %vm960_vm4, %v3415_v43  ;;  %4840 = vmatmul.mubr.msk.f32.vlgmr.msra.gmra.mrb[24].mxu0 %vm853_vm2, %v3415_v43 }
0x3ad8   : > { %5035 = vmatpush3.bf16.msra.mxu0 %v6402_v39  ;;  %4861 = vmatprep.mubr.msk.f32.mxu0 %vm5711_vm1, %v5712_v30 }
0x3ad9   : > { %5036 = vmatprep.subr.bf16.mxu0 %v5709_v6  ;;  %v3506_v6 = vrot.slane %v3406_v37, 6 }
0x3adc   : > { %5038 = vmatpush3.bf16.msra.mxu0 %v6405_v51 }
0x3baa   : > { %v3490_v45 = vpop.f32.mrb[24].mxu0 }
0x3bab   : > { %v3495_v24 = vrot.slane %v3490_v45, 6  ;;  %v4841_v46 = vpop.f32.mrb[25].mxu0 }
0x3bad   : > { %v3497_v48 = vadd.f32 %v3495_v24, %v6433_v44  ;;  %v3763_v24 = vld [vmem:[%s6752_s10 + $0x8] sm:$0xff] }
0x3baf   : > { %5351 = vtanh.f32 %v3497_v48  ;;  %v4412_v52 = vmul.f32 -1.442695, %v3497_v48 }
0x3bb1   : > { %5353 = vpow2.f32 %v4412_v52 }
0x3bb9   : > { %v5352_v50 = vpop.eup %5351 }
0x3bba   : > { %3510 = vrot.lane.b32.xlu0 %v5352_v50, %s5713_s15 }
0x3bbb   : > { %v5354_v54 = vpop.eup %5353 }
0x3bbc   : > { %v3501_v39 = vadd.f32 1.0, %v5354_v54 }
0x3bbe   : > { %5355 = vrcp.f32 %v3501_v39 }
0x3bc8   : > { %v5356_v56 = vpop.eup %5355 }
0x3bc9   : > { %v3508_v51 = vmul.f32 %v5356_v56, %v3506_v6 }
0x3c2c   : > { %v3511_v30 = vpop.permute.xlu0 %3510 }
0x3c2d   : > { %v3513_v57 = vmul.f32 %v5356_v56, %v3511_v30 }
0x3c2f   : > { %3515 = vrot.lane.b32.xlu1 %v3513_v57, %s5714_s19 }
0x3ca1   : > { %v3516_v58 = vpop.permute.xlu1 %3515 }
0x3ca2   : > { %v3518_v59 = vadd.f32 %v3516_v58, %v3508_v51 }
0x3ca4   : > { %5357 = vtanh.f32 %v3518_v59  ;;  %v3621_v16 = vrot.slane %v3518_v59, 6 }
0x3cae   : > { %v5358_v60 = vpop.eup %5357 }
0x3caf   : > { %3521 = vrot.lane.b32.xlu0 %v5358_v60, %s5713_s15 }
0x3d21   : > { %v3522_v61 = vpop.permute.xlu0 %3521 }
0x3d22   : > { %v6510_v1 = vmul.f32 %v5356_v56, %v3522_v61 }
0x3d24   : > { %v3534_v2 = vrot.slane %v6510_v1, 2 }
0x3d26   : > { %3535 = vrot.lane.b32.xlu1 %v3534_v2, %s5714_s19 }
0x3d98   : > { %v3536_v3 = vpop.permute.xlu1 %3535 }
0x3d99   : > { %4851 = vmatmul.mubr.msk.f32.vlgmr.msra.gmra.mrb[24].mxu1 %vm853_vm2, %v3536_v3 }
0x3e6c   : > { %v3605_v4 = vpop.f32.mrb[24].mxu1 }
0x3e6d   : > { %v3610_v5 = vrot.slane %v3605_v4, 4  ;;  %v4852_v8 = vpop.f32.mrb[25].mxu1 }
0x3e6f   : > { %v3612_v55 = vadd.f32 %v3610_v5, %v6433_v44 }
0x3e71   : > { %5359 = vtanh.f32 %v3612_v55  ;;  %v4414_v10 = vmul.f32 -1.442695, %v3612_v55 }
0x3e73   : > { %5361 = vpow2.f32 %v4414_v10 }
0x3e7b   : > { %v5360_v47 = vpop.eup %5359 }
0x3e7c   : > { %3625 = vrot.lane.b32.xlu0 %v5360_v47, %s5713_s15 }
0x3e7d   : > { %v5362_v11 = vpop.eup %5361 }
0x3e7e   : > { %v3616_v12 = vadd.f32 1.0, %v5362_v11 }
0x3e80   : > { %5363 = vrcp.f32 %v3616_v12 }
0x3e8a   : > { %v5364_v13 = vpop.eup %5363 }
0x3e8b   : > { %v3623_v18 = vmul.f32 %v5364_v13, %v3621_v16 }
0x3eee   : > { %v3626_v14 = vpop.permute.xlu0 %3625 }
0x3eef   : > { %v3628_v15 = vmul.f32 %v5364_v13, %v3626_v14 }
0x3ef1   : > { %3630 = vrot.lane.b32.xlu1 %v3628_v15, %s5714_s19 }
0x3f63   : > { %v3631_v42 = vpop.permute.xlu1 %3630 }
0x3f64   : > { %v3633_v0 = vadd.f32 %v3631_v42, %v3623_v18 }
0x3f66   : > { %5365 = vtanh.f32 %v3633_v0 }
0x3f70   : > { %v5366_v19 = vpop.eup %5365 }
0x3f71   : > { %3636 = vrot.lane.b32.xlu0 %v5366_v19, %s5713_s15 }
0x3fe3   : > { %v3637_v22 = vpop.permute.xlu0 %3636 }
0x3fe4   : > { %v3639_v23 = vmul.f32 %v5364_v13, %v3637_v22 }
0x3fe6   : > { %v3649_v17 = vrot.slane %v3639_v23, 4 }
0x3fe8   : > { %3650 = vrot.lane.b32.xlu1 %v3649_v17, %s5714_s19 }
0x405a   : > { %v3651_v63 = vpop.permute.xlu1 %3650 }
0x405b   : > { %4862 = vmatmul.mubr.msk.f32.vlgmr.msra.gmra.mrb[26].mxu0 %vm853_vm2, %v3651_v63 }
0x412e   : > { %v3720_v26 = vpop.f32.mrb[26].mxu0 }
0x412f   : > { %v3725_v53 = vrot.slane %v3720_v26, 2  ;;  %v4863_v27 = vpop.f32.mrb[27].mxu0 }
0x4131   : > { %v3727_v29 = vadd.f32 %v3725_v53, %v6433_v44  ;;  %v3736_v44 = vrot.slane %v3633_v0, 6 }
0x4133   : > { %5367 = vtanh.f32 %v3727_v29  ;;  %v4416_v32 = vmul.f32 -1.442695, %v3727_v29 }
0x4135   : > { %5369 = vpow2.f32 %v4416_v32 }
0x413d   : > { %v5368_v31 = vpop.eup %5367 }
0x413e   : > { %3740 = vrot.lane.b32.xlu0 %v5368_v31, %s5713_s15 }
0x413f   : > { %v5370_v25 = vpop.eup %5369 }
0x4140   : > { %v3731_v9 = vadd.f32 1.0, %v5370_v25 }
0x4142   : > { %5371 = vrcp.f32 %v3731_v9 }
0x414c   : > { %v5372_v33 = vpop.eup %5371 }
0x414d   : > { %v3738_v37 = vmul.f32 %v5372_v33, %v3736_v44 }
0x41b0   : > { %v3741_v35 = vpop.permute.xlu0 %3740 }
0x41b1   : > { %v3743_v36 = vmul.f32 %v5372_v33, %v3741_v35 }
0x41b3   : > { %3745 = vrot.lane.b32.xlu1 %v3743_v36, %s5714_s19 }
0x41b7   : > { %3072 = vrot.lane.b32.xlu1 %v6454_v34, %s5714_s19 }
0x41bb   : > { %3302 = vrot.lane.b32.xlu1 %v6484_v20, %s5714_s19 }
0x41bf   : > { %3641 = vrot.lane.b32.xlu1 %v3639_v23, %s5714_s19 }
0x41c3   : > { %4071 = vrot.lane.b32.xlu1 %v6234_v21, %s5715_s16  ;;  %v3762_v21 = vld [vmem:[%s6752_s10] sm:$0xff] }
0x41c4   : > { %v5039_v46 = vpack.c.bf16 %v3763_v24, %v3762_v21 }
0x41c6   : > { %5040 = vmatprep.subr.bf16.mxu1 %v5039_v46 }
0x41c7   : > { %5042 = vmatpush3.bf16.msra.mxu1 %v5039_v46 }
0x4225   : > { %v3746_v38 = vpop.permute.xlu1 %3745 }
0x4226   : > { %v3748_v41 = vadd.f32 %v3746_v38, %v3738_v37 }
0x4228   : > { %5373 = vtanh.f32 %v3748_v41 }
0x4229   : > { %v3073_v40 = vpop.permute.xlu1 %3072 }
0x422a   : > { %3075 = vst.msk [vmem:[#allocation4] sm:$0xc] %vm1073_vm5, %v3073_v40 }
0x422d   : > { %v3303_v43 = vpop.permute.xlu1 %3302 }
0x422e   : > { %3305 = vst.msk [vmem:[#allocation4] sm:$0xc0] %vm1305_vm6, %v3303_v43 }
0x4231   : > { %v3642_v34 = vpop.permute.xlu1 %3641 }
0x4232   : > { %v5374_v45 = vpop.eup %5373  ;;  %3644 = vst.msk [vmem:[#allocation4 + $0x8] sm:$0x30] %vm1189_vm7, %v3642_v34 }
0x4233   : > { %3751 = vrot.lane.b32.xlu0 %v5374_v45, %s5713_s15 }
0x4235   : > { %v4072_v20 = vpop.permute.xlu1 %4071 }
0x4236   : > { %4074 = vst.msk [vmem:[#allocation3 - $0x6] sm:$0xc0] %vm1305_vm6, %v4072_v20 }
0x4237   : > { %4075 = vst.msk [vmem:[#allocation3 - $0x6] sm:$0xc0] %vm4063_vm8, %v6391_v7  ;;  %3187 = vrot.lane.b32.xlu0 %v6469_v62, %s5714_s19  ;;  %v3764_v7 = vld [vmem:[%s6752_s10 + $0x10] sm:$0xff]  ;;  %v3765_v62 = vld [vmem:[%s6752_s10 + $0x18] sm:$0xff] }
0x4238   : > { %v5043_v48 = vpack.c.bf16 %v3765_v62, %v3764_v7 }
0x423a   : > { %5044 = vmatprep.subr.bf16.mxu1 %v5043_v48 }
0x423b   : > { %3526 = vrot.lane.b32.xlu0 %v6510_v1, %s5714_s19  ;;  %5046 = vmatpush3.bf16.msra.mxu1 %v5043_v48 }
0x42a5   : > { %v3752_v50 = vpop.permute.xlu0 %3751 }
0x42a6   : > { %v3754_v52 = vmul.f32 %v5372_v33, %v3752_v50 }
0x42a8   : > { %4065 = vrot.lane.b32.xlu1 %v3754_v52, %s5715_s16  ;;  %3756 = vrot.lane.b32.xlu0 %v3754_v52, %s5714_s19 }
0x42a9   : > { %v3188_v54 = vpop.permute.xlu0 %3187 }
0x42aa   : > { %3190 = vst.msk [vmem:[#allocation4] sm:$0x30] %vm1189_vm7, %v3188_v54 }
0x42ac   : > { %4060 = vrot.lane.b32.xlu0 %v6412_v49, %s5713_s15  ;;  %v4417_v49 = vld [vmem:[%s6753_s11] ss:$0 sm:$0xff] }
0x42ad   : > { %v3527_v39 = vpop.permute.xlu0 %3526 }
0x42ae   : > { %3529 = vst.msk [vmem:[#allocation4 + $0x8] sm:$0xc] %vm1073_vm5, %v3527_v39 }
0x42b0   : > { %4077 = vrot.lane.b32.xlu0 %v3748_v41, %s5714_s19 }
0x42b1   : > { %v3760_v56 = vld [vmem:[#allocation4] sm:$0xff] }
0x42b2   : > { %4872 = vmatprep.mubr.msk.f32.mxu1 %vm853_vm2, %v3760_v56 }
0x431a   : > { %v3757_v30 = vpop.permute.xlu0 %3756  ;;  %v4066_v6 = vpop.permute.xlu1 %4065 }
0x431b   : > { %3759 = vst.msk [vmem:[#allocation4 + $0x8] sm:$0xc0] %vm1305_vm6, %v3757_v30 }
0x431e   : > { %v4061_v57 = vpop.permute.xlu0 %4060 }
0x431f   : > { %4064 = vst.msk [vmem:[#allocation2 - $0x6] sm:$0xc0] %vm4063_vm8, %v4061_v57 }
0x4320   : > { %4069 = vst.msk [vmem:[#allocation2 - $0x6] sm:$0xc0] %vm4068_vm9, %v4066_v6 }
0x4322   : > { %v4078_v51 = vpop.permute.xlu0 %4077  ;;  %v3761_v58 = vld [vmem:[#allocation4 + $0x8] sm:$0xff] }
0x4323   : > { %4080 = vst.msk [vmem:[#allocation3 - $0x6] sm:$0xc0] %vm4068_vm9, %v4078_v51  ;;  %4873 = vmatmul.mubr.msk.f32.vlgmr.msra.gmra.mrb[26].mxu1 %vm853_vm2, %v3761_v58 }
0x43f6   : > { %v4874_v59 = vpop.f32.mrb[26].mxu1 }
0x43f7   : > { %v3851_v60 = vadd.f32 %v4874_v59, %v4417_v49  ;;  %v3845_v61 = vpop.f32.mrb[27].mxu1 }
0x43f8   : > { %v3846_v1 = vadd.f32 %v4417_v49, %v3845_v61 }
0x43f9   : > { %v3873_v2 = vcombine.high %v3851_v60, %v3851_v60  ;;  %v6569_v3 = vrot.slane %v3851_v60, %v6104_v28 }
0x43fa   : > { %v3856_v4 = vcombine.high %v3846_v1, %v3846_v1  ;;  %v6572_v5 = vrot.slane %v3846_v1, %v6104_v28 }
0x43fb   : > { %v6575_v8 = vrot.slane %v3873_v2, %v6104_v28  ;;  %v6579_v55 = vcombine.high %v6569_v3, %v6569_v3  ;;  %v3927_v47 = vsel %vm3898_vm10, %v6569_v3, -inf }
0x43fc   : > { %v3928_v10 = vrot.slane %v3927_v47, 4  ;;  %v6584_v11 = vrot.slane %v3856_v4, %v6104_v28  ;;  %v6588_v12 = vcombine.high %v6572_v5, %v6572_v5  ;;  %v3899_v13 = vsel %vm3898_vm10, %v6572_v5, -inf }
0x43fd   : > { %v6594_v14 = vcombine.high %v6575_v8, %v6575_v8  ;;  %v3934_v15 = vsel %vm3898_vm10, %v6579_v55, -inf  ;;  %v3941_v16 = vsel %vm3898_vm10, %v6575_v8, -inf  ;;  %v3900_v18 = vrot.slane %v3899_v13, 4 }
0x43fe   : > { %v3929_v28 = vmax.f32 %v3927_v47, %v3928_v10  ;;  %v3935_v42 = vrot.slane %v3934_v15, 4  ;;  %v3942_v0 = vrot.slane %v3941_v16, 4  ;;  %v6602_v19 = vcombine.high %v6584_v11, %v6584_v11 }
0x43ff   : > { %v3948_v22 = vsel %vm3898_vm10, %v6594_v14, -inf  ;;  %v3901_v23 = vmax.f32 %v3899_v13, %v3900_v18  ;;  %v3906_v17 = vsel %vm3898_vm10, %v6588_v12, -inf  ;;  %v3913_v63 = vsel %vm3898_vm10, %v6584_v11, -inf }
0x4400   : > { %v3930_v26 = vrot.slane %v3929_v28, 2  ;;  %v3936_v53 = vmax.f32 %v3934_v15, %v3935_v42  ;;  %v3943_v27 = vmax.f32 %v3941_v16, %v3942_v0  ;;  %v3949_v29 = vrot.slane %v3948_v22, 4 }
0x4401   : > { %v3902_v31 = vrot.slane %v3901_v23, 2  ;;  %v3907_v32 = vrot.slane %v3906_v17, 4  ;;  %v3914_v25 = vrot.slane %v3913_v63, 4  ;;  %v3920_v9 = vsel %vm3898_vm10, %v6602_v19, -inf }
0x4402   : > { %v3931_v33 = vmax.f32 %v3929_v28, %v3930_v26  ;;  %v3937_v35 = vrot.slane %v3936_v53, 2  ;;  %v3944_v36 = vrot.slane %v3943_v27, 2  ;;  %v3950_v44 = vmax.f32 %v3948_v22, %v3949_v29 }
0x4403   : > { %v3903_v37 = vmax.f32 %v3901_v23, %v3902_v31  ;;  %v3908_v38 = vmax.f32 %v3906_v17, %v3907_v32  ;;  %v3915_v41 = vmax.f32 %v3913_v63, %v3914_v25  ;;  %v3921_v40 = vrot.slane %v3920_v9, 4 }
0x4404   : > { %v3932_v43 = vrot.slane %v3931_v33, 1  ;;  %v3938_v34 = vmax.f32 %v3936_v53, %v3937_v35  ;;  %v3945_v45 = vmax.f32 %v3943_v27, %v3944_v36  ;;  %v3951_v20 = vrot.slane %v3950_v44, 2 }
0x4405   : > { %v3904_v21 = vrot.slane %v3903_v37, 1  ;;  %v3909_v24 = vrot.slane %v3908_v38, 2  ;;  %v3916_v46 = vrot.slane %v3915_v41, 2  ;;  %v3922_v7 = vmax.f32 %v3920_v9, %v3921_v40 }
0x4406   : > { %v3933_v62 = vmax.f32 %v3931_v33, %v3932_v43  ;;  %v3939_v48 = vrot.slane %v3938_v34, 1  ;;  %v3946_v50 = vrot.slane %v3945_v45, 1  ;;  %v3952_v52 = vmax.f32 %v3950_v44, %v3951_v20 }
0x4407   : > { %v3905_v54 = vmax.f32 %v3903_v37, %v3904_v21  ;;  %v3910_v39 = vmax.f32 %v3908_v38, %v3909_v24  ;;  %v3917_v56 = vmax.f32 %v3915_v41, %v3916_v46  ;;  %v3923_v30 = vrot.slane %v3922_v7, 2 }
0x4408   : > { %v3940_v57 = vmax.f32 %v3938_v34, %v3939_v48  ;;  %v3947_v6 = vmax.f32 %v3945_v45, %v3946_v50  ;;  %v3953_v51 = vrot.slane %v3952_v52, 1  ;;  %v3959_v58 = vsub.f32 %v6569_v3, %v3933_v62 }
0x4409   : > { %v3911_v49 = vrot.slane %v3910_v39, 1  ;;  %v3918_v59 = vrot.slane %v3917_v56, 1  ;;  %v3924_v60 = vmax.f32 %v3922_v7, %v3923_v30  ;;  %v3955_v61 = vsub.f32 %v6572_v5, %v3905_v54 }
0x440a   : > { %v3954_v1 = vmax.f32 %v3952_v52, %v3953_v51  ;;  %v3960_v2 = vsub.f32 %v6579_v55, %v3940_v57  ;;  %v3961_v4 = vsub.f32 %v6575_v8, %v3947_v6  ;;  %v3971_v47 = vmul.f32 1.442695, %v3959_v58 }
0x440b   : > { %v3912_v10 = vmax.f32 %v3910_v39, %v3911_v49  ;;  %v3919_v13 = vmax.f32 %v3917_v56, %v3918_v59  ;;  %v3925_v15 = vrot.slane %v3924_v60, 1  ;;  %v3963_v16 = vmul.f32 1.442695, %v3955_v61 }
0x440c   : > { %v3962_v18 = vsub.f32 %v6594_v14, %v3954_v1  ;;  %5375 = vpow2.f32 %v3971_v47  ;;  %v3973_v28 = vmul.f32 1.442695, %v3960_v2  ;;  %v3975_v3 = vmul.f32 1.442695, %v3961_v4 }
0x440d   : > { %v3926_v42 = vmax.f32 %v3924_v60, %v3925_v15  ;;  %v3956_v0 = vsub.f32 %v6588_v12, %v3912_v10  ;;  %v3957_v5 = vsub.f32 %v6584_v11, %v3919_v13  ;;  %5377 = vpow2.f32 %v3963_v16 }
0x440e   : > { %5379 = vpow2.f32 %v3973_v28  ;;  %v3977_v55 = vmul.f32 1.442695, %v3962_v18 }
0x440f   : > { %5381 = vpow2.f32 %v3975_v3  ;;  %v3958_v8 = vsub.f32 %v6602_v19, %v3926_v42  ;;  %v3965_v22 = vmul.f32 1.442695, %v3956_v0  ;;  %v3967_v23 = vmul.f32 1.442695, %v3957_v5 }
0x4410   : > { %5383 = vpow2.f32 %v3977_v55 }
0x4411   : > { %5385 = vpow2.f32 %v3965_v22  ;;  %v3969_v17 = vmul.f32 1.442695, %v3958_v8 }
0x4412   : > { %5387 = vpow2.f32 %v3967_v23 }
0x4413   : > { %5389 = vpow2.f32 %v3969_v17 }
0x4416   : > { %v6620_v14 = vpop.eup %5375 }
0x4417   : > { %v6622_v63 = vpop.eup %5377  ;;  %v4007_v11 = vsel %vm3898_vm10, %v6620_v14, 0.0 }
0x4418   : > { %v6626_v12 = vpop.eup %5379  ;;  %v4008_v26 = vrot.slane %v4007_v11, 4  ;;  %v3979_v19 = vsel %vm3898_vm10, %v6622_v63, 0.0 }
0x4419   : > { %v6630_v53 = vpop.eup %5381  ;;  %v4014_v27 = vsel %vm3898_vm10, %v6626_v12, 0.0  ;;  %v3980_v29 = vrot.slane %v3979_v19, 4 }
0x441a   : > { %v6634_v31 = vpop.eup %5383  ;;  %v4009_v32 = vadd.f32 %v4008_v26, %v4007_v11  ;;  %v4015_v25 = vrot.slane %v4014_v27, 4  ;;  %v4021_v9 = vsel %vm3898_vm10, %v6630_v53, 0.0 }
0x441b   : > { %v6638_v33 = vpop.eup %5385  ;;  %v4022_v35 = vrot.slane %v4021_v9, 4  ;;  %v4028_v36 = vsel %vm3898_vm10, %v6634_v31, 0.0  ;;  %v3981_v44 = vadd.f32 %v3980_v29, %v3979_v19 }
0x441c   : > { %v6642_v37 = vpop.eup %5387  ;;  %v4010_v38 = vrot.slane %v4009_v32, 2  ;;  %v4016_v41 = vadd.f32 %v4015_v25, %v4014_v27  ;;  %v4029_v40 = vrot.slane %v4028_v36, 4  ;;  %v3986_v43 = vsel %vm3898_vm10, %v6638_v33, 0.0 }
0x441d   : > { %v6646_v34 = vpop.eup %5389  ;;  %v4023_v45 = vadd.f32 %v4022_v35, %v4021_v9  ;;  %v3982_v20 = vrot.slane %v3981_v44, 2  ;;  %v3987_v21 = vrot.slane %v3986_v43, 4  ;;  %v3993_v24 = vsel %vm3898_vm10, %v6642_v37, 0.0 }
0x441e   : > { %v4011_v46 = vadd.f32 %v4010_v38, %v4009_v32  ;;  %v4017_v7 = vrot.slane %v4016_v41, 2  ;;  %v4030_v62 = vadd.f32 %v4029_v40, %v4028_v36  ;;  %v3994_v48 = vrot.slane %v3993_v24, 4 }
0x441f   : > { %v4024_v50 = vrot.slane %v4023_v45, 2  ;;  %v3983_v52 = vadd.f32 %v3982_v20, %v3981_v44  ;;  %v3988_v54 = vadd.f32 %v3987_v21, %v3986_v43  ;;  %v4000_v39 = vsel %vm3898_vm10, %v6646_v34, 0.0 }
0x4420   : > { %v4012_v56 = vrot.slane %v4011_v46, 1  ;;  %v4018_v30 = vadd.f32 %v4017_v7, %v4016_v41  ;;  %v4031_v57 = vrot.slane %v4030_v62, 2  ;;  %v3995_v6 = vadd.f32 %v3994_v48, %v3993_v24  ;;  %v4088_v41 = vld [vmem:[#allocation3] sm:$0x3] (!%p4420_p4) }
0x4421   : > { %v4025_v51 = vadd.f32 %v4024_v50, %v4023_v45  ;;  %v3984_v58 = vrot.slane %v3983_v52, 1  ;;  %v3989_v49 = vrot.slane %v3988_v54, 2  ;;  %v4001_v59 = vrot.slane %v4000_v39, 4  ;;  %4089 = vst.msk [vmem:[%s6799_s23] sm:$0x3] (!%p4420_p4), %vm4086_vm11, %v4088_v41 }
0x4422   : > { %v4013_v60 = vadd.f32 %v4012_v56, %v4011_v46  ;;  %v4019_v61 = vrot.slane %v4018_v30, 1  ;;  %v4032_v1 = vadd.f32 %v4031_v57, %v4030_v62  ;;  %v3996_v2 = vrot.slane %v3995_v6, 2 }
0x4423   : > { %v4026_v4 = vrot.slane %v4025_v51, 1  ;;  %v3985_v47 = vadd.f32 %v3984_v58, %v3983_v52  ;;  %v3990_v10 = vadd.f32 %v3989_v49, %v3988_v54  ;;  %v4002_v13 = vadd.f32 %v4001_v59, %v4000_v39 }
0x4424   : > { %v4020_v15 = vadd.f32 %v4019_v61, %v4018_v30  ;;  %v4033_v16 = vrot.slane %v4032_v1, 1  ;;  %5391 = vrcp.f32 %v4013_v60  ;;  %v3997_v18 = vadd.f32 %v3996_v2, %v3995_v6 }
0x4425   : > { %v4027_v28 = vadd.f32 %v4026_v4, %v4025_v51  ;;  %v3991_v3 = vrot.slane %v3990_v10, 1  ;;  %v4003_v42 = vrot.slane %v4002_v13, 2  ;;  %5393 = vrcp.f32 %v3985_v47 }
0x4426   : > { %v4034_v0 = vadd.f32 %v4033_v16, %v4032_v1  ;;  %5395 = vrcp.f32 %v4020_v15  ;;  %v3998_v5 = vrot.slane %v3997_v18, 1 }
0x4427   : > { %5397 = vrcp.f32 %v4027_v28  ;;  %v3992_v55 = vadd.f32 %v3991_v3, %v3990_v10  ;;  %v4004_v8 = vadd.f32 %v4003_v42, %v4002_v13 }
0x4428   : > { %5399 = vrcp.f32 %v4034_v0  ;;  %v3999_v22 = vadd.f32 %v3998_v5, %v3997_v18 }
0x4429   : > { %v4005_v23 = vrot.slane %v4004_v8, 1  ;;  %5401 = vrcp.f32 %v3992_v55 }
0x442a   : > { %5403 = vrcp.f32 %v3999_v22 }
0x442b   : > { %v4006_v17 = vadd.f32 %v4005_v23, %v4004_v8 }
0x442d   : > { %5405 = vrcp.f32 %v4006_v17 }
0x442e   : > { %v5392_v11 = vpop.eup %5391 }
0x442f   : > { %v5394_v26 = vpop.eup %5393  ;;  %v4047_v19 = vmul.f32 %v5392_v11, %v6620_v14 }
0x4430   : > { %v5396_v27 = vpop.eup %5395  ;;  %v4043_v29 = vmul.f32 %v5394_v26, %v6622_v63 }
0x4431   : > { %v5398_v32 = vpop.eup %5397  ;;  %v4048_v25 = vmul.f32 %v5396_v27, %v6626_v12  ;;  %4055 = vst.msk [vmem:[%s6068_s3 + $0x8] sm:$0x3] %vm3898_vm10, %v4047_v19 }
0x4432   : > { %v5400_v9 = vpop.eup %5399  ;;  %v4049_v35 = vmul.f32 %v5398_v32, %v6630_v53  ;;  %4051 = vst.msk [vmem:[%s6068_s3] sm:$0x3] %vm3898_vm10, %v4043_v29 }
0x4433   : > { %v5402_v36 = vpop.eup %5401  ;;  %v4050_v44 = vmul.f32 %v5400_v9, %v6634_v31  ;;  %4056 = vst.msk [vmem:[%s6068_s3 + $0xa] sm:$0x3] %vm3898_vm10, %v4048_v25  ;;  %v4085_v31 = vld [vmem:[#allocation2] sm:$0x3] (!%p4420_p4) }
0x4434   : > { %v5404_v14 = vpop.eup %5403  ;;  %4057 = vst.msk [vmem:[%s6068_s3 + $0xc] sm:$0x3] %vm3898_vm10, %v4049_v35  ;;  %v4044_v63 = vmul.f32 %v5402_v36, %v6638_v33  ;;  %4084 = sbr.rel (%p4420_p4) target bundleno = 17467 (0x443b), region = 112 }
0x4435   : > { %4058 = vst.msk [vmem:[%s6068_s3 + $0xe] sm:$0x3] %vm3898_vm10, %v4050_v44  ;;  %v4045_v12 = vmul.f32 %v5404_v14, %v6642_v37 }
0x4436   : > { %4052 = vst.msk [vmem:[%s6068_s3 + $0x2] sm:$0x3] %vm3898_vm10, %v4044_v63 }
0x4437   : > { %v5406_v38 = vpop.eup %5405  ;;  %4053 = vst.msk [vmem:[%s6068_s3 + $0x4] sm:$0x3] %vm3898_vm10, %v4045_v12 }
0x4438   : > { %v4046_v53 = vmul.f32 %v5406_v38, %v6646_v34  ;;  %4087 = vst.msk [vmem:[%s6798_s26] sm:$0x3] (!%p4420_p4), %vm4086_vm11, %v4085_v31 }
0x443a   : > { %4054 = vst.msk [vmem:[%s6068_s3 + $0x6] sm:$0x3] %vm3898_vm10, %v4046_v53 }
0x443b PF: > { %s6800_s6 = sld [smem:[#allocation28_spill]]  ;;  %s4428_s30 = sshll.u32 %s5690_s24, 8 }
0x443c   : > { %s6801_s25 = sld [smem:[#allocation34_spill]]  ;;  %s4113_s15 = sshll.u32 %s6068_s3, 4  ;;  %s6690_s15 = int_to_ptr.vmem [resolvable:$true] %s4113_s15 }
0x443d   : > { %s6694_s16 = scalar_lea.sflag [#allocation7], %s658_s20  ;;  %s5604_s29 = scalar_lea.vmem %s6690_s15, 256 }
0x443e   : > { %p5605_p8 = scmp.ne.s32.totalorder %s6690_s15, %s5604_s29  ;;  %s5716_s24 = smov [#allocation17]  }
0x443f   : > { %s5608_s27 = sshll.u32 %s5716_s24, 4  ;;  %s5609_s27 = int_to_ptr.vmem [resolvable:$false] %s5608_s27 }
0x4440   : > { %s5610_s26 = scalar_lea.vmem %s5609_s27, 512  ;;  %p5611_p5 = scmp.lt.s32.totalorder %s6690_s15, %s5609_s27 }
0x4441   : > { %p6803_p10 = scmp.ne.s32.totalorder %s6800_s6, 0  ;;  %p5612_p6 = scmp.lt.s32.totalorder %s5610_s26, %s5604_s29 }
0x4442   : > { %s6802_s14 = smov %s6801_s25  ;;  %s6687_s21 = scalar_lea.hbm %s6801_s25, %s4428_s30 }
0x4443   : > { %p5606_p11 = pnand %p5605_p8, %p6803_p10  ;;  %p5613_p7 = por %p5612_p6, %p5611_p5 }
0x4445   : > { %p5607_p3 = pneg %p5606_p11 }
0x4447   : > { %p5614_p9 = pnand %p5613_p7, %p5607_p3 }
0x4449   : > { %5617 = shalt.err (!%p5614_p9)
}
0x444a   : > { %s5618_s20 = scalar_lea.hbm %s6687_s21, 256  ;;  %s5622_s18 = scalar_lea.hbm %s6802_s14, 512 }
0x444b   : > { %p5619_p12 = scmp.ne.s32.totalorder %s6687_s21, %s5618_s20  ;;  %p5623_p13 = scmp.lt.u32.totalorder %s6687_s21, %s6802_s14 }
0x444c   : > { %p5624_p2 = scmp.lt.u32.totalorder %s5622_s18, %s5618_s20  ;;  %p5626_p8 = scmp.lt.u32.totalorder %s5618_s20, %s6687_s21 }
0x444d   : > { %p5620_p0 = pnand %p5619_p12, %p6803_p10 }
0x444e   : > { %p5625_p4 = por %p5624_p2, %p5623_p13 }
0x444f   : > { %p5621_p1 = pneg %p5620_p0 }
0x4450   : > { %p5627_p11 = por %p5626_p8, %p5625_p4 }
0x4452   : > { %p5628_p3 = pnand %p5627_p11, %p5621_p1 }
0x4454   : > { %5631 = shalt.err (!%p5628_p3)
}
0x4455   : > { %s5717_s28 = smov 2  }
0x4456   : > { %5075 = dma.vmem_to_hbm [thread:$0]  (%p6803_p10), %s6690_s15, 256, %s6687_s21, %s6694_s16, %s5714_s19, %s5714_s19, %s5717_s28  }
0x4457 PF: > { %s6804_s17 = sld [smem:[#allocation26_spill]]  ;;  %s6805_s25 = sld [smem:[#allocation23_spill]] }
0x4458   : > { %s6806_s29 = sld [smem:[#allocation29_spill]] }
0x445d   : > { %p5117_p5 = scmp.ge.s32.totalorder %s6804_s17, 2  ;;  %s4148_s24 = sand.u32 1, %s6805_s25  }
0x445e   : > { %p6807_p6 = scmp.ne.s32.totalorder %s6806_s29, 0  ;;  %s4149_s27 = scalar_lea.sflag [#allocation7], %s4148_s24 }
0x4460   : > { %p5100_p7 = pnand %p5117_p5, %p6807_p6 }
0x4462   : > { %5673 = dma.done.wait (!%p5100_p7), %s4149_s27, 256  }
0x4463   : > { %5675 = vsyncadd (!%p5100_p7), %s4149_s27, 4294967040  ;;  %s34_s26 = sadd.s32 1, %s6804_s17   ;;  %s6808_s6 = sld [smem:[#allocation24_spill]] }
0x4464   : > { %p31_p9 = scmp.ge.s32.totalorder %s34_s26, 4   ;;  %s6809_s23 = sld [smem:[#allocation30_spill]] }
0x4465   : > { %s6810_s24 = sld [smem:[#allocation25_spill]]  ;;  %s6811_s25 = sld [smem:[#allocation27_spill]] }
0x4466   : > { %s6812_s21 = smov %s5682_s22  ;;  %33 = sbr.rel (!%p31_p9) target bundleno = 15 (0xf), region = 178 }
0x4469   : > { %s6813_s22 = smov %s6808_s6 }
0x446d   :  { %4154 = vsyncpa [#allocation6], 1 }
0x446e   :  { %4156 = vsyncpa [#allocation6 + $0x1], 1 }
0x446f   :  { %4157 = vsyncpa [#allocation9], 1 }
0x4470   :  { %4158 = vsyncpa [#allocation12], 1 }
0x4471   :  { %4159 = vsyncpa [#allocation15], 1 }
0x4472   :  { %4160 = vsyncpa [#allocation7], 1 }
0x4473   :  { %4162 = vsyncpa [#allocation7 + $0x1], 1 }

</bundles_post_ra>
